<compile_context>
chip_gen: v7x
topology: tpu7x:2x2x1
jax: 0.10.0
libtpu: 0.0.40
codegen_flags: <defaults>
</compile_context>

<pallas_src>
import functools

import jax
import jax.numpy as jnp
from jax import lax
from jax.experimental import pallas as pl
from jax.experimental.pallas import tpu as pltpu

_MiB = 1024 * 1024


def _round_up(x, m):
    return ((x + m - 1) // m) * m


# --------------------------------------------------------------------------
# Device / VMEM introspection (plain Python, outside jit)
# --------------------------------------------------------------------------
def _device_kind():
    try:
        return jax.devices()[0].device_kind.lower()
    except Exception:
        return ""


def _vmem_capacity_bytes(kind):
    try:
        info = pltpu.get_tpu_info()
        cap = getattr(info, "vmem_capacity_bytes", None)
        if cap:
            return int(cap)
    except Exception:
        pass
    # v7x has 64 MiB / TensorCore; v5e/v6e have 128 MiB.
    return 64 * _MiB if "7" in kind else 128 * _MiB


def _select_tiles(M, D, H, out_itemsize, vmem_budget):
    """Pick (tm, th).  Prefer weight-resident (th == H); otherwise stream."""
    tm_max = max(8, min(512, _round_up(M, 8)))
    th_cands = [H] + [c for c in (4096, 2048, 1024, 512, 256, 128)
                      if c < H and H % c == 0]

    def footprint(tm_, th_):
        w = 2 * 3 * D * th_ * 2            # double-buffered bf16 w13 + w2 chunks
        xb = 2 * tm_ * D * 2               # x, bf16, double-buffered
        ob = 2 * tm_ * D * out_itemsize    # output, double-buffered
        acc = tm_ * D * 4                  # f32 accumulator (chunked path)
        inter = 3 * tm_ * 2 * th_ * 4      # h13 / gate / val live temporaries
        bias = 2 * (2 * th_ + D) * 4 * 2
        return w + xb + ob + acc + inter + bias

    # 1) weight-resident: th = H, largest row tile that fits.
    for tm_ in (tm_max, 256, 128, 64):
        if tm_ > tm_max:
            continue
        if footprint(tm_, H) <= vmem_budget:
            return tm_, H
    # 2) streaming weights: keep tm big (amortize re-reads), then largest th.
    for tm_ in (tm_max, 256, 128, 64, 32, 16, 8):
        if tm_ > tm_max:
            continue
        for th_ in th_cands:
            if footprint(tm_, th_) <= vmem_budget:
                return tm_, th_
    return 8, th_cands[-1]


# --------------------------------------------------------------------------
# Kernels
# --------------------------------------------------------------------------
def _mlp_kernel_resident(x_ref, w13_ref, b13_ref, w2_ref, b2_ref, o_ref,
                         *, swiglu_dtype):
    """Whole hidden dim per step; weights VMEM-resident across row tiles."""
    h = w2_ref.shape[0]
    x = x_ref[...]                                              # (tm, D) bf16
    h13 = jnp.dot(x, w13_ref[...], preferred_element_type=jnp.float32)
    h13 = (h13 + b13_ref[...]).astype(swiglu_dtype)             # (tm, 2H)
    gate = h13[:, :h]
    val = h13[:, h:]
    g = (gate * jax.nn.sigmoid(gate)) * val                     # SwiGLU
    out = jnp.dot(g.astype(w2_ref.dtype), w2_ref[...],
                  preferred_element_type=jnp.float32)
    o_ref[...] = (out + b2_ref[...]).astype(o_ref.dtype)


def _mlp_kernel_chunked(x_ref, w13_ref, b13_ref, w2_ref, b2_ref, o_ref,
                        acc_ref, *, swiglu_dtype):
    """Hidden dim tiled (reduction axis last); f32 accumulator in VMEM."""
    h_idx = pl.program_id(1)

    @pl.when(h_idx == 0)
    def _():
        acc_ref[...] = jnp.zeros_like(acc_ref)

    th = w2_ref.shape[0]
    x = x_ref[...]                                              # (tm, D) bf16
    h13 = jnp.dot(x, w13_ref[...], preferred_element_type=jnp.float32)
    h13 = (h13 + b13_ref[...]).astype(swiglu_dtype)             # (tm, 2*th)
    gate = h13[:, :th]
    val = h13[:, th:]
    g = (gate * jax.nn.sigmoid(gate)) * val                     # SwiGLU chunk

    acc_ref[...] += jnp.dot(g.astype(w2_ref.dtype), w2_ref[...],
                            preferred_element_type=jnp.float32)

    @pl.when(h_idx == pl.num_programs(1) - 1)
    def _():
        o_ref[...] = (acc_ref[...] + b2_ref[...]).astype(o_ref.dtype)


# --------------------------------------------------------------------------
# Wrapper
# --------------------------------------------------------------------------
@functools.partial(
    jax.jit,
    static_argnames=("tm", "th", "vmem_limit_bytes", "swiglu_bf16"))
def _mlp_forward_impl(x, w1, b1, w3, b3, w2, b2, *, tm, th, vmem_limit_bytes,
                      swiglu_bf16):
    orig_shape = x.shape
    D = orig_shape[-1]
    H = w1.shape[1]
    x2d = x.reshape(-1, D)
    M = x2d.shape[0]

    n_h = H // th
    m_tiles = pl.cdiv(M, tm)

    cdt = jnp.bfloat16
    out_dtype = x.dtype
    swiglu_dtype = jnp.bfloat16 if swiglu_bf16 else jnp.float32

    x2d = x2d.astype(cdt)
    w2c = w2.astype(cdt)
    b2c = b2.astype(jnp.float32).reshape(1, D)

    # Fuse w1/w3 (and b1/b3) chunk-interleaved so each hidden chunk h is one
    # contiguous slab: [w1[:, h*th:(h+1)*th] | w3[:, h*th:(h+1)*th]].
    w13 = jnp.concatenate(
        [w1.astype(cdt).reshape(D, n_h, th),
         w3.astype(cdt).reshape(D, n_h, th)], axis=2).reshape(D, 2 * H)
    b13 = jnp.concatenate(
        [b1.astype(jnp.float32).reshape(1, n_h, th),
         b3.astype(jnp.float32).reshape(1, n_h, th)], axis=2).reshape(1, 2 * H)

    if n_h == 1:
        # Weight-resident path: constant weight index_maps -> one HBM read.
        kernel = functools.partial(_mlp_kernel_resident,
                                   swiglu_dtype=swiglu_dtype)
        out2d = pl.pallas_call(
            kernel,
            out_shape=jax.ShapeDtypeStruct((M, D), out_dtype),
            grid_spec=pltpu.PrefetchScalarGridSpec(
                num_scalar_prefetch=0,
                grid=(m_tiles,),
                in_specs=[
                    pl.BlockSpec((tm, D), lambda i: (i, 0)),      # x rows
                    pl.BlockSpec((D, 2 * H), lambda i: (0, 0)),   # w1|w3 resident
                    pl.BlockSpec((1, 2 * H), lambda i: (0, 0)),   # b1|b3
                    pl.BlockSpec((H, D), lambda i: (0, 0)),       # w2 resident
                    pl.BlockSpec((1, D), lambda i: (0, 0)),       # b2
                ],
                out_specs=pl.BlockSpec((tm, D), lambda i: (i, 0)),
            ),
            compiler_params=pltpu.CompilerParams(
                dimension_semantics=("parallel",),
                vmem_limit_bytes=vmem_limit_bytes,
            ),
        )(x2d, w13, b13, w2c, b2c)
    else:
        # Streaming path: hidden dim tiled, reduction axis last, f32 acc.
        kernel = functools.partial(_mlp_kernel_chunked,
                                   swiglu_dtype=swiglu_dtype)
        out2d = pl.pallas_call(
            kernel,
            out_shape=jax.ShapeDtypeStruct((M, D), out_dtype),
            grid_spec=pltpu.PrefetchScalarGridSpec(
                num_scalar_prefetch=0,
                grid=(m_tiles, n_h),
                in_specs=[
                    pl.BlockSpec((tm, D), lambda i, h: (i, 0)),      # x rows
                    pl.BlockSpec((D, 2 * th), lambda i, h: (0, h)),  # w1|w3 chunk
                    pl.BlockSpec((1, 2 * th), lambda i, h: (0, h)),  # b1|b3 chunk
                    pl.BlockSpec((th, D), lambda i, h: (h, 0)),      # w2 chunk
                    pl.BlockSpec((1, D), lambda i, h: (0, 0)),       # b2
                ],
                out_specs=pl.BlockSpec((tm, D), lambda i, h: (i, 0)),
                scratch_shapes=[pltpu.VMEM((tm, D), jnp.float32)],
            ),
            compiler_params=pltpu.CompilerParams(
                dimension_semantics=("parallel", "arbitrary"),
                vmem_limit_bytes=vmem_limit_bytes,
            ),
        )(x2d, w13, b13, w2c, b2c)

    return out2d.reshape(orig_shape)


def mlp_forward(x, w1, b1, w3, b3, w2, b2, *, tm=None, th=None):
    """x: (..., dim). Weights are (in, out); biases are (1, out).

    MXU inputs are bf16, accumulation is f32; output keeps x.dtype."""
    D = x.shape[-1]
    H = w1.shape[1]
    M = 1
    for s in x.shape[:-1]:
        M *= s

    kind = _device_kind()
    vmem_cap = _vmem_capacity_bytes(kind)
    # Leave headroom for Mosaic internal scratch/semaphores; never claim the
    # entire physical VMEM (feedback: ~52 MiB on v7x, ~100 MiB on v5e/v6e).
    vmem_limit = int(min(vmem_cap - 12 * _MiB, 100 * _MiB))
    vmem_limit = max(vmem_limit, 32 * _MiB)

    # bf16 SwiGLU epilogue only where the VPU/EUP support bf16 (v6e/v7x).
    swiglu_bf16 = ("v6" in kind) or ("v7" in kind) or ("7x" in kind)

    if tm is None or th is None:
        tm_auto, th_auto = _select_tiles(
            M, D, H, jnp.dtype(x.dtype).itemsize, vmem_limit - 6 * _MiB)
        tm = tm_auto if tm is None else tm
        th = th_auto if th is None else th
    if H % th != 0:
        th = H
    tm = int(tm)
    th = int(th)

    return _mlp_forward_impl(x, w1, b1, w3, b3, w2, b2,
                             tm=tm, th=th,
                             vmem_limit_bytes=int(vmem_limit),
                             swiglu_bf16=bool(swiglu_bf16))


# --------------------------------------------------------------------------
# Reference / demo
# --------------------------------------------------------------------------
def init_linear_params(key, in_features, out_features, dtype=jnp.float32):
    """PyTorch-style nn.Linear init: U(-1/sqrt(fan_in), +1/sqrt(fan_in)).
    Returned weight is (in, out) (transposed vs PyTorch's (out, in))."""
    kw, kb = jax.random.split(key)
    bound = 1.0 / (in_features ** 0.5)
    w = jax.random.uniform(kw, (in_features, out_features), dtype,
                           minval=-bound, maxval=bound)
    b = jax.random.uniform(kb, (1, out_features), dtype,
                           minval=-bound, maxval=bound)
    return w, b


def mlp_reference(x2d, w1, b1, w3, b3, w2, b2):
    """Pure-JAX reference mirroring the kernel's bf16-input / f32-accum path."""
    f32 = jnp.float32
    hp = lax.Precision.HIGHEST
    xb = x2d.astype(jnp.bfloat16).astype(f32)
    w1b = w1.astype(jnp.bfloat16).astype(f32)
    w3b = w3.astype(jnp.bfloat16).astype(f32)
    w2b = w2.astype(jnp.bfloat16).astype(f32)
    h1 = jnp.dot(xb, w1b, precision=hp) + b1
    h3 = jnp.dot(xb, w3b, precision=hp) + b3
    g = jax.nn.silu(h1) * h3
    g = g.astype(jnp.bfloat16).astype(f32)   # kernel feeds g to the MXU in bf16
    return jnp.dot(g, w2b, precision=hp) + b2


if __name__ == "__main__":
    # Shapes consistent with the module: dim=384 (ModelArgs.dim),
    # hidden = 4*dim = 1536, batch=2, seq=8.
    dim = 384
    hidden = 4 * dim
    batch, seq = 2, 8

    key = jax.random.PRNGKey(0)
    kx, k1, k2, k3 = jax.random.split(key, 4)

    x = jax.random.normal(kx, (batch, seq, dim), jnp.float32)
    w1, b1 = init_linear_params(k1, dim, hidden)
    w2, b2 = init_linear_params(k2, hidden, dim)
    w3, b3 = init_linear_params(k3, dim, hidden)

    out = mlp_forward(x, w1, b1, w3, b3, w2, b2)
    out = jax.block_until_ready(out)

    ref = mlp_reference(x.reshape(-1, dim), w1, b1, w3, b3, w2, b2)
    ref = ref.reshape(batch, seq, dim)

    assert out.shape == (batch, seq, dim)
    assert out.dtype == x.dtype
    err = jnp.max(jnp.abs(out.astype(jnp.float32) - ref))
    assert jnp.allclose(out.astype(jnp.float32), ref, atol=1e-2, rtol=1e-2), (
        f"mismatch vs reference: max abs err {err:.3e}")

    print("KERNEL_OK")
</pallas_src>

<mosaic_0001>
module attributes {stable_mosaic.version = 11 : i64} {
  func.func @_mlp_kernel_resident(%arg0: i32, %arg1: memref<16x384xbf16, #tpu.memory_space<vmem>>, %arg2: memref<384x3072xbf16, #tpu.memory_space<vmem>>, %arg3: memref<1x3072xf32, #tpu.memory_space<vmem>>, %arg4: memref<1536x384xbf16, #tpu.memory_space<vmem>>, %arg5: memref<1x384xf32, #tpu.memory_space<vmem>>, %arg6: memref<16x384xf32, #tpu.memory_space<vmem>>) attributes {dimension_semantics = [#tpu.dimension_semantics<parallel>], iteration_bounds = array<i64: 1>, scalar_prefetch = 0 : i64, scratch_operands = 0 : i64, tpu.core_type = #tpu.core_type<tc>, window_params = [{transform_indices = @transform_0, window_bounds = array<i64: 16, 384>}, {pipeline_mode = #tpu.pipeline_mode<synchronous>, transform_indices = @transform_1, window_bounds = array<i64: 384, 3072>}, {pipeline_mode = #tpu.pipeline_mode<synchronous>, transform_indices = @transform_2, window_bounds = array<i64: 1, 3072>}, {pipeline_mode = #tpu.pipeline_mode<synchronous>, transform_indices = @transform_3, window_bounds = array<i64: 1536, 384>}, {pipeline_mode = #tpu.pipeline_mode<synchronous>, transform_indices = @transform_4, window_bounds = array<i64: 1, 384>}, {transform_indices = @transform_5, window_bounds = array<i64: 16, 384>}]} {
    %c0 = arith.constant 0 : index
    %c0_0 = arith.constant 0 : index
    %0 = vector.load %arg1[%c0, %c0_0] : memref<16x384xbf16, #tpu.memory_space<vmem>>, vector<16x384xbf16>
    %c0_1 = arith.constant 0 : index
    %c0_2 = arith.constant 0 : index
    %1 = vector.load %arg2[%c0_1, %c0_2] : memref<384x3072xbf16, #tpu.memory_space<vmem>>, vector<384x3072xbf16>
    %cst = arith.constant dense<0.000000e+00> : vector<16x3072xf32>
    %2 = tpu.matmul %0, %1, %cst {dimension_numbers = #tpu.dot_dimension_numbers<[1], [0], [0], [1], [0, 0, 1, 1], [], []>} : vector<16x384xbf16>, vector<384x3072xbf16>, vector<16x3072xf32> -> vector<16x3072xf32>
    %c0_3 = arith.constant 0 : index
    %c0_4 = arith.constant 0 : index
    %3 = vector.load %arg3[%c0_3, %c0_4] : memref<1x3072xf32, #tpu.memory_space<vmem>>, vector<1x3072xf32>
    %4 = vector.broadcast %3 : vector<1x3072xf32> to vector<16x3072xf32>
    %5 = arith.addf %2, %4 : vector<16x3072xf32>
    %6 = vector.extract_strided_slice %5 {offsets = [0, 0], sizes = [16, 1536], strides = [1, 1]} : vector<16x3072xf32> to vector<16x1536xf32>
    %7 = vector.extract_strided_slice %5 {offsets = [0, 1536], sizes = [16, 1536], strides = [1, 1]} : vector<16x3072xf32> to vector<16x1536xf32>
    %8 = arith.negf %6 : vector<16x1536xf32>
    %9 = math.exp %8 : vector<16x1536xf32>
    %cst_5 = arith.constant 1.000000e+00 : f32
    %10 = vector.broadcast %cst_5 : f32 to vector<16x1536xf32>
    %11 = arith.addf %10, %9 : vector<16x1536xf32>
    %12 = arith.divf %10, %11 : vector<16x1536xf32>
    %13 = arith.mulf %6, %12 : vector<16x1536xf32>
    %14 = arith.mulf %13, %7 : vector<16x1536xf32>
    %15 = arith.truncf %14 : vector<16x1536xf32> to vector<16x1536xbf16>
    %c0_6 = arith.constant 0 : index
    %c0_7 = arith.constant 0 : index
    %16 = vector.load %arg4[%c0_6, %c0_7] : memref<1536x384xbf16, #tpu.memory_space<vmem>>, vector<1536x384xbf16>
    %cst_8 = arith.constant dense<0.000000e+00> : vector<16x384xf32>
    %17 = tpu.matmul %15, %16, %cst_8 {dimension_numbers = #tpu.dot_dimension_numbers<[1], [0], [0], [1], [0, 0, 1, 1], [], []>} : vector<16x1536xbf16>, vector<1536x384xbf16>, vector<16x384xf32> -> vector<16x384xf32>
    %c0_9 = arith.constant 0 : index
    %c0_10 = arith.constant 0 : index
    %18 = vector.load %arg5[%c0_9, %c0_10] : memref<1x384xf32, #tpu.memory_space<vmem>>, vector<1x384xf32>
    %19 = vector.broadcast %18 : vector<1x384xf32> to vector<16x384xf32>
    %20 = arith.addf %17, %19 : vector<16x384xf32>
    %c0_11 = arith.constant 0 : index
    %c0_12 = arith.constant 0 : index
    %21 = vector.load %arg6[%c0_11, %c0_12] : memref<16x384xf32, #tpu.memory_space<vmem>>, vector<16x384xf32>
    tpu.vector_store %arg6[%c0_11, %c0_12], %20 {strides = array<i32>} : memref<16x384xf32, #tpu.memory_space<vmem>>, vector<16x384xf32>,
    return
  }
  func.func @transform_0(%arg0: i32) -> (i32, i32) {
    %c0_i32 = arith.constant 0 : i32
    %c0_i32_0 = arith.constant 0 : i32
    return %arg0, %c0_i32 : i32, i32
  }
  func.func @transform_1(%arg0: i32) -> (i32, i32) {
    %c0_i32 = arith.constant 0 : i32
    %c0_i32_0 = arith.constant 0 : i32
    %c0_i32_1 = arith.constant 0 : i32
    return %c0_i32, %c0_i32_0 : i32, i32
  }
  func.func @transform_2(%arg0: i32) -> (i32, i32) {
    %c0_i32 = arith.constant 0 : i32
    %c0_i32_0 = arith.constant 0 : i32
    %c0_i32_1 = arith.constant 0 : i32
    return %c0_i32, %c0_i32_0 : i32, i32
  }
  func.func @transform_3(%arg0: i32) -> (i32, i32) {
    %c0_i32 = arith.constant 0 : i32
    %c0_i32_0 = arith.constant 0 : i32
    %c0_i32_1 = arith.constant 0 : i32
    return %c0_i32, %c0_i32_0 : i32, i32
  }
  func.func @transform_4(%arg0: i32) -> (i32, i32) {
    %c0_i32 = arith.constant 0 : i32
    %c0_i32_0 = arith.constant 0 : i32
    %c0_i32_1 = arith.constant 0 : i32
    return %c0_i32, %c0_i32_0 : i32, i32
  }
  func.func @transform_5(%arg0: i32) -> (i32, i32) {
    %c0_i32 = arith.constant 0 : i32
    %c0_i32_0 = arith.constant 0 : i32
    return %arg0, %c0_i32 : i32, i32
  }
}

</mosaic_0001>

<bundles_post_ra>
// kernel: _mlp_forward_impl.1
= control target key start
LH: loop header
LB: loop body
LE: loop exit
PB: predicated region body
PF: predicated region fallthrough
CT: control target
= control target key end

     0   :  { %10 = vsyncpa [#allocation3], 0  ;;  %s9648_s0 = inlined_call_operand.hbm [shape: bf16[16,384], index: 0, kind: input, shape index: {}]   ;;  %s9649_s1 = inlined_call_operand.hbm [shape: bf16[384,3072], index: 1, kind: input, shape index: {}]   ;;  %s9650_s2 = inlined_call_operand.hbm [shape: f32[1,3072], index: 2, kind: input, shape index: {}]   ;;  %s9651_s3 = inlined_call_operand.hbm [shape: bf16[1536,384], index: 3, kind: input, shape index: {}]   ;;  %s9652_s4 = inlined_call_operand.hbm [shape: f32[1,384], index: 4, kind: input, shape index: {}]   ;;  %s9653_s5 = inlined_call_operand.hbm [shape: f32[16,384], index: 5, kind: output, shape index: {}]  }
   0x1   :  { %11 = vsyncpa [#allocation6], 0 }
   0x2   :  { %12 = vsyncpa [#allocation9], 0 }
   0x3   :  { %13 = vsyncpa [#allocation4], 0  ;;  %s9182_s18 = smov [#allocation5]   ;;  %s9042_s22 = scalar_lea.hbm %s9649_s1, 73728 }
   0x4   :  { %s31_s19 = sshll.u32 %s9182_s18, 4  ;;  %p9043_p0 = scmp.ne.s32.totalorder %s9649_s1, %s9042_s22  ;;  %s32_s19 = int_to_ptr.vmem [resolvable:$true] %s31_s19 }
   0x5   :  { %p9046_p1 = scmp.lt.u32.totalorder %s9042_s22, %s9649_s1 }
   0x7   :  { %p9048_p2 = pnand %p9046_p1, %p9043_p0 }
   0x9   :  { %9051 = shalt.err (!%p9048_p2)
}
   0xa   :  { %s9052_s27 = scalar_lea.vmem %s32_s19, 73728  ;;  %p9057_p4 = scmp.lt.s32.totalorder %s32_s19, %s32_s19 }
   0xb   :  { %p9053_p3 = scmp.ne.s32.totalorder %s32_s19, %s9052_s27  ;;  %p9058_p5 = scmp.lt.s32.totalorder %s9052_s27, %s9052_s27 }
   0xd   :  { %p9059_p6 = por %p9058_p5, %p9057_p4 }
   0xf   :  { %p9060_p7 = pnand %p9059_p6, %p9053_p3 }
  0x11   :  { %9063 = shalt.err (!%p9060_p7)
}
  0x12   :  { %s9183_s28 = smov 1536   ;;  %s9184_s29 = smov 96  }
  0x13   :  { %37 = dma.hbm_to_vmem [thread:$0]  %s9649_s1, 73728, %s32_s19, [#allocation6], %s9183_s28, %s9183_s28, %s9184_s29  }
  0x14   :  { %s9185_s7 = smov [#allocation8]   ;;  %s9186_s9 = smov [#allocation2]  }
  0x15   :  { %s53_s8 = sshll.u32 %s9185_s7, 4  ;;  %s19_s10 = sshll.u32 %s9186_s9, 4  ;;  %s54_s8 = int_to_ptr.vmem [resolvable:$true] %s53_s8  ;;  %s20_s10 = int_to_ptr.vmem [resolvable:$true] %s19_s10 }
  0x16   :  { %s9064_s13 = scalar_lea.hbm %s9651_s3, 36864 }
  0x17   :  { %p9065_p8 = scmp.ne.s32.totalorder %s9651_s3, %s9064_s13  ;;  %p9068_p9 = scmp.lt.u32.totalorder %s9064_s13, %s9651_s3 }
  0x19   :  { %p9070_p10 = pnand %p9068_p9, %p9065_p8 }
  0x1b   :  { %9073 = shalt.err (!%p9070_p10)
}
  0x1c   :  { %s9074_s1 = scalar_lea.vmem %s54_s8, 36864  ;;  %p9079_p12 = scmp.lt.s32.totalorder %s54_s8, %s54_s8 }
  0x1d   :  { %p9075_p11 = scmp.ne.s32.totalorder %s54_s8, %s9074_s1  ;;  %p9080_p13 = scmp.lt.s32.totalorder %s9074_s1, %s9074_s1 }
  0x1f   :  { %p9081_p0 = por %p9080_p13, %p9079_p12 }
  0x21   :  { %p9082_p1 = pnand %p9081_p0, %p9075_p11 }
  0x23   :  { %9085 = shalt.err (!%p9082_p1)
}
  0x24   :  { %s9187_s18 = smov 192   ;;  %s9188_s19 = smov 12  }
  0x25   :  { %59 = dma.hbm_to_vmem [thread:$0]  %s9651_s3, 36864, %s54_s8, [#allocation9], %s9187_s18, %s9187_s18, %s9188_s19  }
  0x26   :  { %s9086_s24 = scalar_lea.hbm %s9648_s0, 384 }
  0x27   :  { %p9087_p2 = scmp.ne.s32.totalorder %s9648_s0, %s9086_s24  ;;  %p9090_p3 = scmp.lt.u32.totalorder %s9086_s24, %s9648_s0 }
  0x29   :  { %p9092_p4 = pnand %p9090_p3, %p9087_p2 }
  0x2b   :  { %9095 = shalt.err (!%p9092_p4)
}
  0x2c   :  { %s9096_s29 = scalar_lea.vmem %s20_s10, 384  ;;  %p9101_p6 = scmp.lt.s32.totalorder %s20_s10, %s20_s10 }
  0x2d   :  { %p9097_p5 = scmp.ne.s32.totalorder %s20_s10, %s9096_s29  ;;  %p9102_p7 = scmp.lt.s32.totalorder %s9096_s29, %s9096_s29 }
  0x2f   :  { %p9103_p8 = por %p9102_p7, %p9101_p6 }
  0x31   :  { %p9104_p9 = pnand %p9103_p8, %p9097_p5 }
  0x33   :  { %9107 = shalt.err (!%p9104_p9)
}
  0x34   :  { %25 = dma.hbm_to_vmem [thread:$0]  %s9648_s0, 384, %s20_s10, [#allocation3], %s9187_s18, %s9187_s18, %s9188_s19  }
  0x35   :  { %s9189_s6 = smov [#allocation7]   ;;  %s9190_s8 = smov [#allocation10]  }
  0x36   :  { %s44_s7 = sshll.u32 %s9189_s6, 4  ;;  %s66_s9 = sshll.u32 %s9190_s8, 4  ;;  %s45_s7 = int_to_ptr.vmem [resolvable:$true] %s44_s7  ;;  %s67_s9 = int_to_ptr.vmem [resolvable:$true] %s66_s9 }
  0x37   :  { %s9108_s13 = scalar_lea.hbm %s9650_s2, 384 }
  0x38   :  { %p9109_p10 = scmp.ne.s32.totalorder %s9650_s2, %s9108_s13  ;;  %p9112_p11 = scmp.lt.u32.totalorder %s9108_s13, %s9650_s2 }
  0x3a   :  { %p9114_p12 = pnand %p9112_p11, %p9109_p10 }
  0x3c   :  { %9117 = shalt.err (!%p9114_p12)
}
  0x3d   :  { %s9118_s0 = scalar_lea.vmem %s45_s7, 384  ;;  %p9123_p0 = scmp.lt.s32.totalorder %s45_s7, %s45_s7 }
  0x3e   :  { %p9119_p13 = scmp.ne.s32.totalorder %s45_s7, %s9118_s0  ;;  %p9124_p1 = scmp.lt.s32.totalorder %s9118_s0, %s9118_s0 }
  0x40   :  { %p9125_p2 = por %p9124_p1, %p9123_p0 }
  0x42   :  { %p9126_p3 = pnand %p9125_p2, %p9119_p13 }
  0x44   :  { %9129 = shalt.err (!%p9126_p3)
}
  0x45   :  { %47 = dma.hbm_to_vmem [thread:$0]  %s9650_s2, 384, %s45_s7, [#allocation6]  }
  0x46   :  { %s9130_s20 = scalar_lea.hbm %s9652_s4, 48 }
  0x47   :  { %p9131_p4 = scmp.ne.s32.totalorder %s9652_s4, %s9130_s20  ;;  %p9134_p5 = scmp.lt.u32.totalorder %s9130_s20, %s9652_s4 }
  0x49   :  { %p9136_p6 = pnand %p9134_p5, %p9131_p4 }
  0x4b   :  { %9139 = shalt.err (!%p9136_p6)
}
  0x4c   :  { %s9140_s25 = scalar_lea.vmem %s67_s9, 48  ;;  %s9144_s26 = scalar_lea.vmem %s67_s9, 64 }
  0x4d   :  { %p9141_p7 = scmp.ne.s32.totalorder %s67_s9, %s9140_s25  ;;  %p9145_p8 = scmp.lt.s32.totalorder %s67_s9, %s67_s9 }
  0x4e   :  { %p9146_p9 = scmp.lt.s32.totalorder %s9144_s26, %s9140_s25 }
  0x50   :  { %p9147_p10 = por %p9146_p9, %p9145_p8 }
  0x52   :  { %p9148_p11 = pnand %p9147_p10, %p9141_p7 }
  0x54   :  { %9151 = shalt.err (!%p9148_p11)
}
  0x55   :  { %69 = dma.hbm_to_vmem [thread:$0]  %s9652_s4, 48, %s67_s9, [#allocation9]  }
  0x56   :  { %9174 = dma.done.wait [#allocation3], 384  }
  0x57   :  { %9175 = vsyncadd [#allocation3], 4294966912 }
  0x58   :  { %9176 = dma.done.wait [#allocation6], 74112  }
  0x59   :  { %9177 = vsyncadd [#allocation6], 4294893184 }
  0x5a   :  { %9178 = dma.done.wait [#allocation9], 36912  }
  0x5b   :  { %9179 = vsyncadd [#allocation9], 4294930384  ;;  %v90_v0 = vld [vmem:[#allocation5] sm:$0xff]  ;;  %v92_v2 = vld [vmem:[#allocation5 + $0x10] sm:$0xff]  ;;  %s9192_s4 = smov [#allocation11]  }
  0x5c   :  { %v102_v1 = vld [vmem:[#allocation5 + $0x60] sm:$0xff]  ;;  %v104_v4 = vld [vmem:[#allocation5 + $0x70] sm:$0xff]  ;;  %v9285_v56 = vld [vmem:[#allocation2 + $0x4] ss:$12 sps:$4 sm:$0xff]   ;;  %s7376_s28 = sshll.u32 %s9192_s4, 4  ;;  %s7377_s28 = int_to_ptr.vmem [resolvable:$true] %s7376_s28 }
  0x5d   :  { %v7394_v3 = vcombine.high %v90_v0, %v102_v1  ;;  %v7393_v5 = vcombine.low %v90_v0, %v102_v1  ;;  %v114_v6 = vld [vmem:[#allocation5 + $0xc0] sm:$0xff]  ;;  %v7398_v8 = vcombine.high %v92_v2, %v104_v4  ;;  %v7397_v9 = vcombine.low %v92_v2, %v104_v4  ;;  %v116_v11 = vld [vmem:[#allocation5 + $0xd0] sm:$0xff]  ;;  %3720 = vmatprep.mubr.bf16.mxu1 %v9285_v56  ;;  %s9152_s29 = scalar_lea.vmem %s7377_s28, 768  ;;  %p9157_p13 = scmp.lt.s32.totalorder %s7377_s28, %s7377_s28 }
  0x5e   :  { %v126_v7 = vld [vmem:[#allocation5 + $0x120] sm:$0xff]  ;;  %v128_v12 = vld [vmem:[#allocation5 + $0x130] sm:$0xff]  ;;  %3892 = vmatprep.mubr.bf16.mxu0 %v9285_v56  ;;  %p9153_p12 = scmp.ne.s32.totalorder %s7377_s28, %s9152_s29  ;;  %p9158_p0 = scmp.lt.s32.totalorder %s9152_s29, %s9152_s29 }
  0x5f   :  { %v7418_v10 = vcombine.high %v114_v6, %v126_v7  ;;  %v138_v13 = vld [vmem:[#allocation5 + $0x180] sm:$0xff]  ;;  %3688 = vmatprep.subr.bf16.mxu1 %v7394_v3  ;;  %v7422_v14 = vcombine.high %v116_v11, %v128_v12  ;;  %v140_v16 = vld [vmem:[#allocation5 + $0x190] sm:$0xff]  ;;  %3860 = vmatprep.subr.bf16.mxu0 %v7398_v8  ;;  %v7417_v18 = vcombine.low %v114_v6, %v126_v7 }
  0x60   :  { %v150_v15 = vld [vmem:[#allocation5 + $0x1e0] sm:$0xff]  ;;  %v152_v17 = vld [vmem:[#allocation5 + $0x1f0] sm:$0xff]  ;;  %3689 = vmatpush1.bf16.msra.mxu1 %v7393_v5  ;;  %3861 = vmatpush1.bf16.msra.mxu0 %v7397_v9  ;;  %v7421_v19 = vcombine.low %v116_v11, %v128_v12  ;;  %p9159_p1 = por %p9158_p0, %p9157_p13 }
  0x61   :  { %3690 = vmatprep.subr.bf16.mxu1 %v7418_v10  ;;  %v7442_v20 = vcombine.high %v138_v13, %v150_v15  ;;  %3862 = vmatprep.subr.bf16.mxu0 %v7422_v14  ;;  %v7446_v21 = vcombine.high %v140_v16, %v152_v17  ;;  %v162_v22 = vld [vmem:[#allocation5 + $0x240] sm:$0xff]  ;;  %v164_v24 = vld [vmem:[#allocation5 + $0x250] sm:$0xff]  ;;  %v7441_v26 = vcombine.low %v138_v13, %v150_v15 }
  0x62   :  { %v174_v23 = vld [vmem:[#allocation5 + $0x2a0] sm:$0xff]  ;;  %v176_v25 = vld [vmem:[#allocation5 + $0x2b0] sm:$0xff]  ;;  %v7445_v27 = vcombine.low %v140_v16, %v152_v17  ;;  %p9160_p2 = pnand %p9159_p1, %p9153_p12 }
  0x63   :  { %v7466_v28 = vcombine.high %v162_v22, %v174_v23  ;;  %v7470_v29 = vcombine.high %v164_v24, %v176_v25  ;;  %v186_v30 = vld [vmem:[#allocation5 + $0x300] sm:$0xff]  ;;  %v188_v32 = vld [vmem:[#allocation5 + $0x310] sm:$0xff]  ;;  %v7465_v34 = vcombine.low %v162_v22, %v174_v23  ;;  %v7469_v35 = vcombine.low %v164_v24, %v176_v25 }
  0x64   :  { %3691 = vmatpush1.bf16.msra.mxu1 %v7417_v18  ;;  %3863 = vmatpush1.bf16.msra.mxu0 %v7421_v19  ;;  %v198_v31 = vld [vmem:[#allocation5 + $0x360] sm:$0xff]  ;;  %v200_v33 = vld [vmem:[#allocation5 + $0x370] sm:$0xff] }
  0x65   :  { %3692 = vmatprep.subr.bf16.mxu1 %v7442_v20  ;;  %3864 = vmatprep.subr.bf16.mxu0 %v7446_v21  ;;  %v7490_v36 = vcombine.high %v186_v30, %v198_v31  ;;  %v7494_v37 = vcombine.high %v188_v32, %v200_v33  ;;  %v210_v38 = vld [vmem:[#allocation5 + $0x3c0] sm:$0xff]  ;;  %v212_v40 = vld [vmem:[#allocation5 + $0x3d0] sm:$0xff]  ;;  %v7489_v42 = vcombine.low %v186_v30, %v198_v31 }
  0x66   :  { %v222_v39 = vld [vmem:[#allocation5 + $0x420] sm:$0xff]  ;;  %v224_v41 = vld [vmem:[#allocation5 + $0x430] sm:$0xff]  ;;  %v7493_v43 = vcombine.low %v188_v32, %v200_v33 }
  0x67   :  { %v7514_v44 = vcombine.high %v210_v38, %v222_v39  ;;  %v7518_v45 = vcombine.high %v212_v40, %v224_v41  ;;  %v234_v46 = vld [vmem:[#allocation5 + $0x480] sm:$0xff]  ;;  %v236_v48 = vld [vmem:[#allocation5 + $0x490] sm:$0xff]  ;;  %v7513_v50 = vcombine.low %v210_v38, %v222_v39  ;;  %v7517_v51 = vcombine.low %v212_v40, %v224_v41 }
  0x68   :  { %3693 = vmatpush1.bf16.msra.mxu1 %v7441_v26  ;;  %3865 = vmatpush1.bf16.msra.mxu0 %v7445_v27  ;;  %v246_v47 = vld [vmem:[#allocation5 + $0x4e0] sm:$0xff]  ;;  %v248_v49 = vld [vmem:[#allocation5 + $0x4f0] sm:$0xff] }
  0x69   :  { %3694 = vmatprep.subr.bf16.mxu1 %v7466_v28  ;;  %3866 = vmatprep.subr.bf16.mxu0 %v7470_v29  ;;  %v7538_v52 = vcombine.high %v234_v46, %v246_v47  ;;  %v7542_v53 = vcombine.high %v236_v48, %v248_v49  ;;  %v258_v54 = vld [vmem:[#allocation5 + $0x540] sm:$0xff]  ;;  %v260_v57 = vld [vmem:[#allocation5 + $0x550] sm:$0xff]  ;;  %v7537_v59 = vcombine.low %v234_v46, %v246_v47 }
  0x6a   :  { %v270_v55 = vld [vmem:[#allocation5 + $0x5a0] sm:$0xff]  ;;  %v272_v58 = vld [vmem:[#allocation5 + $0x5b0] sm:$0xff]  ;;  %v7541_v60 = vcombine.low %v236_v48, %v248_v49 }
  0x6b   :  { %v7562_v61 = vcombine.high %v258_v54, %v270_v55  ;;  %v7566_v62 = vcombine.high %v260_v57, %v272_v58  ;;  %v282_v63 = vld [vmem:[#allocation5 + $0x600] sm:$0xff]  ;;  %v284_v1 = vld [vmem:[#allocation5 + $0x610] sm:$0xff]  ;;  %v7561_v3 = vcombine.low %v258_v54, %v270_v55  ;;  %v7565_v4 = vcombine.low %v260_v57, %v272_v58 }
  0x6c   :  { %3695 = vmatpush1.bf16.msra.mxu1 %v7465_v34  ;;  %3867 = vmatpush1.bf16.msra.mxu0 %v7469_v35  ;;  %v294_v0 = vld [vmem:[#allocation5 + $0x660] sm:$0xff]  ;;  %v296_v2 = vld [vmem:[#allocation5 + $0x670] sm:$0xff] }
  0x6d   :  { %3696 = vmatprep.subr.bf16.mxu1 %v7490_v36  ;;  %3868 = vmatprep.subr.bf16.mxu0 %v7494_v37  ;;  %v7586_v5 = vcombine.high %v282_v63, %v294_v0  ;;  %v7590_v6 = vcombine.high %v284_v1, %v296_v2  ;;  %v306_v7 = vld [vmem:[#allocation5 + $0x6c0] sm:$0xff]  ;;  %v308_v9 = vld [vmem:[#allocation5 + $0x6d0] sm:$0xff]  ;;  %v7585_v11 = vcombine.low %v282_v63, %v294_v0 }
  0x6e   :  { %v318_v8 = vld [vmem:[#allocation5 + $0x720] sm:$0xff]  ;;  %v320_v10 = vld [vmem:[#allocation5 + $0x730] sm:$0xff]  ;;  %v7589_v12 = vcombine.low %v284_v1, %v296_v2 }
  0x6f   :  { %v7610_v13 = vcombine.high %v306_v7, %v318_v8  ;;  %v7614_v14 = vcombine.high %v308_v9, %v320_v10  ;;  %v330_v15 = vld [vmem:[#allocation5 + $0x780] sm:$0xff]  ;;  %v332_v17 = vld [vmem:[#allocation5 + $0x790] sm:$0xff]  ;;  %v7609_v19 = vcombine.low %v306_v7, %v318_v8  ;;  %v7613_v20 = vcombine.low %v308_v9, %v320_v10 }
  0x70   :  { %3697 = vmatpush1.bf16.msra.mxu1 %v7489_v42  ;;  %3869 = vmatpush1.bf16.msra.mxu0 %v7493_v43  ;;  %v342_v16 = vld [vmem:[#allocation5 + $0x7e0] sm:$0xff]  ;;  %v344_v18 = vld [vmem:[#allocation5 + $0x7f0] sm:$0xff] }
  0x71   :  { %3698 = vmatprep.subr.bf16.mxu1 %v7514_v44  ;;  %3870 = vmatprep.subr.bf16.mxu0 %v7518_v45  ;;  %v7634_v21 = vcombine.high %v330_v15, %v342_v16  ;;  %v7638_v22 = vcombine.high %v332_v17, %v344_v18  ;;  %v354_v23 = vld [vmem:[#allocation5 + $0x840] sm:$0xff]  ;;  %v356_v25 = vld [vmem:[#allocation5 + $0x850] sm:$0xff]  ;;  %v7633_v27 = vcombine.low %v330_v15, %v342_v16 }
  0x72   :  { %v366_v24 = vld [vmem:[#allocation5 + $0x8a0] sm:$0xff]  ;;  %v368_v26 = vld [vmem:[#allocation5 + $0x8b0] sm:$0xff]  ;;  %v7637_v28 = vcombine.low %v332_v17, %v344_v18 }
  0x73   :  { %v7658_v29 = vcombine.high %v354_v23, %v366_v24  ;;  %v7662_v30 = vcombine.high %v356_v25, %v368_v26  ;;  %v378_v31 = vld [vmem:[#allocation5 + $0x900] sm:$0xff]  ;;  %v380_v33 = vld [vmem:[#allocation5 + $0x910] sm:$0xff]  ;;  %v7657_v35 = vcombine.low %v354_v23, %v366_v24  ;;  %v7661_v36 = vcombine.low %v356_v25, %v368_v26 }
  0x74   :  { %3699 = vmatpush1.bf16.msra.mxu1 %v7513_v50  ;;  %3871 = vmatpush1.bf16.msra.mxu0 %v7517_v51  ;;  %v390_v32 = vld [vmem:[#allocation5 + $0x960] sm:$0xff]  ;;  %v392_v34 = vld [vmem:[#allocation5 + $0x970] sm:$0xff] }
  0x75   :  { %3700 = vmatprep.subr.bf16.mxu1 %v7538_v52  ;;  %3872 = vmatprep.subr.bf16.mxu0 %v7542_v53  ;;  %v7682_v37 = vcombine.high %v378_v31, %v390_v32  ;;  %v7686_v38 = vcombine.high %v380_v33, %v392_v34  ;;  %v402_v39 = vld [vmem:[#allocation5 + $0x9c0] sm:$0xff]  ;;  %v404_v41 = vld [vmem:[#allocation5 + $0x9d0] sm:$0xff]  ;;  %v7681_v43 = vcombine.low %v378_v31, %v390_v32 }
  0x76   :  { %v414_v40 = vld [vmem:[#allocation5 + $0xa20] sm:$0xff]  ;;  %v416_v42 = vld [vmem:[#allocation5 + $0xa30] sm:$0xff]  ;;  %v7685_v44 = vcombine.low %v380_v33, %v392_v34 }
  0x77   :  { %v7706_v45 = vcombine.high %v402_v39, %v414_v40  ;;  %v7710_v46 = vcombine.high %v404_v41, %v416_v42  ;;  %v426_v47 = vld [vmem:[#allocation5 + $0xa80] sm:$0xff]  ;;  %v428_v49 = vld [vmem:[#allocation5 + $0xa90] sm:$0xff]  ;;  %v7705_v51 = vcombine.low %v402_v39, %v414_v40  ;;  %v7709_v52 = vcombine.low %v404_v41, %v416_v42 }
  0x78   :  { %3701 = vmatpush1.bf16.msra.mxu1 %v7537_v59  ;;  %3873 = vmatpush1.bf16.msra.mxu0 %v7541_v60  ;;  %v438_v48 = vld [vmem:[#allocation5 + $0xae0] sm:$0xff]  ;;  %v440_v50 = vld [vmem:[#allocation5 + $0xaf0] sm:$0xff] }
  0x79   :  { %3702 = vmatprep.subr.bf16.mxu1 %v7562_v61  ;;  %3874 = vmatprep.subr.bf16.mxu0 %v7566_v62  ;;  %v7730_v53 = vcombine.high %v426_v47, %v438_v48  ;;  %v7734_v54 = vcombine.high %v428_v49, %v440_v50  ;;  %v450_v55 = vld [vmem:[#allocation5 + $0xb40] sm:$0xff]  ;;  %v452_v58 = vld [vmem:[#allocation5 + $0xb50] sm:$0xff]  ;;  %v7729_v60 = vcombine.low %v426_v47, %v438_v48 }
  0x7a   :  { %v462_v57 = vld [vmem:[#allocation5 + $0xba0] sm:$0xff]  ;;  %v464_v59 = vld [vmem:[#allocation5 + $0xbb0] sm:$0xff]  ;;  %v7733_v61 = vcombine.low %v428_v49, %v440_v50 }
  0x7b   :  { %v7754_v62 = vcombine.high %v450_v55, %v462_v57  ;;  %v7758_v63 = vcombine.high %v452_v58, %v464_v59  ;;  %v474_v0 = vld [vmem:[#allocation5 + $0xc00] sm:$0xff]  ;;  %v476_v2 = vld [vmem:[#allocation5 + $0xc10] sm:$0xff] }
  0x7c   :  { %3703 = vmatpush1.bf16.msra.mxu1 %v7561_v3  ;;  %3875 = vmatpush1.bf16.msra.mxu0 %v7565_v4  ;;  %v486_v1 = vld [vmem:[#allocation5 + $0xc60] sm:$0xff]  ;;  %v488_v3 = vld [vmem:[#allocation5 + $0xc70] sm:$0xff]  ;;  %v7753_v4 = vcombine.low %v450_v55, %v462_v57 }
  0x7d   :  { %3704 = vmatprep.subr.bf16.mxu1 %v7586_v5  ;;  %3876 = vmatprep.subr.bf16.mxu0 %v7590_v6  ;;  %v7757_v5 = vcombine.low %v452_v58, %v464_v59  ;;  %v7778_v6 = vcombine.high %v474_v0, %v486_v1  ;;  %v7782_v7 = vcombine.high %v476_v2, %v488_v3  ;;  %v498_v8 = vld [vmem:[#allocation5 + $0xcc0] sm:$0xff]  ;;  %v9289_v10 = vld [vmem:[#allocation2] ss:$12 sps:$4 sm:$0xff]  }
  0x7e   :  { %v510_v9 = vld [vmem:[#allocation5 + $0xd20] sm:$0xff]  ;;  %v548_v26 = vld [vmem:[#allocation5 + $0xe50] sm:$0xff] }
  0x7f   :  { %v7802_v15 = vcombine.high %v498_v8, %v510_v9  ;;  %v522_v17 = vld [vmem:[#allocation5 + $0xd80] sm:$0xff] }
  0x80   :  { %3705 = vmatpush1.bf16.msra.mxu1 %v7585_v11  ;;  %3877 = vmatpush1.bf16.msra.mxu0 %v7589_v12  ;;  %v500_v11 = vld [vmem:[#allocation5 + $0xcd0] sm:$0xff]  ;;  %v534_v18 = vld [vmem:[#allocation5 + $0xde0] sm:$0xff] }
  0x81   :  { %3706 = vmatprep.subr.bf16.mxu1 %v7610_v13  ;;  %3878 = vmatprep.subr.bf16.mxu0 %v7614_v14  ;;  %v512_v12 = vld [vmem:[#allocation5 + $0xd30] sm:$0xff]  ;;  %v7777_v13 = vcombine.low %v474_v0, %v486_v1  ;;  %v7781_v14 = vcombine.low %v476_v2, %v488_v3  ;;  %v7826_v23 = vcombine.high %v522_v17, %v534_v18  ;;  %v546_v24 = vld [vmem:[#allocation5 + $0xe40] sm:$0xff]  ;;  %v91_v2 = vld [vmem:[#allocation5 + $0x8] sm:$0xff] }
  0x82   :  { %v7806_v16 = vcombine.high %v500_v11, %v512_v12  ;;  %v558_v25 = vld [vmem:[#allocation5 + $0xea0] sm:$0xff]  ;;  %v103_v3 = vld [vmem:[#allocation5 + $0x68] sm:$0xff] }
  0x83   :  { %v7850_v32 = vcombine.high %v546_v24, %v558_v25  ;;  %v570_v33 = vld [vmem:[#allocation5 + $0xf00] sm:$0xff] }
  0x84   :  { %3707 = vmatpush1.bf16.msra.mxu1 %v7609_v19  ;;  %3879 = vmatpush1.bf16.msra.mxu0 %v7613_v20  ;;  %v524_v19 = vld [vmem:[#allocation5 + $0xd90] sm:$0xff]  ;;  %v582_v34 = vld [vmem:[#allocation5 + $0xf60] sm:$0xff] }
  0x85   :  { %3708 = vmatprep.subr.bf16.mxu1 %v7634_v21  ;;  %3880 = vmatprep.subr.bf16.mxu0 %v7638_v22  ;;  %v536_v20 = vld [vmem:[#allocation5 + $0xdf0] sm:$0xff]  ;;  %v7801_v21 = vcombine.low %v498_v8, %v510_v9  ;;  %v7805_v22 = vcombine.low %v500_v11, %v512_v12  ;;  %v7874_v40 = vcombine.high %v570_v33, %v582_v34  ;;  %v594_v41 = vld [vmem:[#allocation5 + $0xfc0] sm:$0xff]  ;;  %v115_v12 = vld [vmem:[#allocation5 + $0xc8] sm:$0xff] }
  0x86   :  { %v7829_v31 = vcombine.low %v524_v19, %v536_v20  ;;  %v606_v42 = vld [vmem:[#allocation5 + $0x1020] sm:$0xff]  ;;  %v8549_v9 = vld [vmem:[#allocation2 + $0x8] ss:$12 sps:$4 sm:$0xff]   ;;  %v7396_v11 = vcombine.high %v91_v2, %v103_v3 }
  0x87   :  { %v7898_v48 = vcombine.high %v594_v41, %v606_v42  ;;  %v618_v49 = vld [vmem:[#allocation5 + $0x1080] sm:$0xff] }
  0x88   :  { %3709 = vmatpush1.bf16.msra.mxu1 %v7633_v27  ;;  %3881 = vmatpush1.bf16.msra.mxu0 %v7637_v28  ;;  %v7830_v27 = vcombine.high %v524_v19, %v536_v20  ;;  %v560_v28 = vld [vmem:[#allocation5 + $0xeb0] sm:$0xff]  ;;  %v630_v50 = vld [vmem:[#allocation5 + $0x10e0] sm:$0xff]  ;;  %v139_v20 = vld [vmem:[#allocation5 + $0x188] sm:$0xff] }
  0x89   :  { %3710 = vmatprep.subr.bf16.mxu1 %v7658_v29  ;;  %3882 = vmatprep.subr.bf16.mxu0 %v7662_v30  ;;  %v9191_v29 = vmov 0   ;;  %v7825_v30 = vcombine.low %v522_v17, %v534_v18  ;;  %v7853_v39 = vcombine.low %v548_v26, %v560_v28  ;;  %v7922_v57 = vcombine.high %v618_v49, %v630_v50  ;;  %v642_v58 = vld [vmem:[#allocation5 + $0x1140] sm:$0xff] }
  0x8a   :  { %v654_v59 = vld [vmem:[#allocation5 + $0x11a0] sm:$0xff]  ;;  %v7395_v17 = vcombine.low %v91_v2, %v103_v3 }
  0x8b   :  { %v7946_v1 = vcombine.high %v642_v58, %v654_v59 }
  0x8c   :  { %3711 = vmatpush1.bf16.msra.mxu1 %v7657_v35  ;;  %3883 = vmatpush1.bf16.msra.mxu0 %v7661_v36  ;;  %v572_v35 = vld [vmem:[#allocation5 + $0xf10] sm:$0xff]  ;;  %v7854_v36 = vcombine.high %v548_v26, %v560_v28  ;;  %v163_v28 = vld [vmem:[#allocation5 + $0x248] sm:$0xff] }
  0x8d   :  { %3712 = vmatprep.subr.bf16.mxu1 %v7682_v37  ;;  %3884 = vmatprep.subr.bf16.mxu0 %v7686_v38  ;;  %v584_v37 = vld [vmem:[#allocation5 + $0xf70] sm:$0xff]  ;;  %v7849_v38 = vcombine.low %v546_v24, %v558_v25  ;;  %v154_v24 = vld [vmem:[#allocation5 + $0x200] sm:$0xff] }
  0x8e   :  { %v7877_v47 = vcombine.low %v572_v35, %v584_v37 }
  0x90   :  { %3713 = vmatpush1.bf16.msra.mxu1 %v7681_v43  ;;  %3885 = vmatpush1.bf16.msra.mxu0 %v7685_v44  ;;  %v596_v43 = vld [vmem:[#allocation5 + $0xfd0] sm:$0xff]  ;;  %v7878_v44 = vcombine.high %v572_v35, %v584_v37  ;;  %v187_v37 = vld [vmem:[#allocation5 + $0x308] sm:$0xff] }
  0x91   :  { %3714 = vmatprep.subr.bf16.mxu1 %v7706_v45  ;;  %3886 = vmatprep.subr.bf16.mxu0 %v7710_v46  ;;  %v608_v45 = vld [vmem:[#allocation5 + $0x1030] sm:$0xff]  ;;  %v7873_v46 = vcombine.low %v570_v33, %v582_v34  ;;  %v178_v33 = vld [vmem:[#allocation5 + $0x2c0] sm:$0xff] }
  0x92   :  { %v7901_v55 = vcombine.low %v596_v43, %v608_v45 }
  0x94   :  { %3715 = vmatpush1.bf16.msra.mxu1 %v7705_v51  ;;  %3887 = vmatpush1.bf16.msra.mxu0 %v7709_v52  ;;  %v620_v51 = vld [vmem:[#allocation5 + $0x1090] sm:$0xff]  ;;  %v7902_v52 = vcombine.high %v596_v43, %v608_v45  ;;  %v211_v45 = vld [vmem:[#allocation5 + $0x3c8] sm:$0xff] }
  0x95   :  { %3716 = vmatprep.subr.bf16.mxu1 %v7730_v53  ;;  %3888 = vmatprep.subr.bf16.mxu0 %v7734_v54  ;;  %v632_v53 = vld [vmem:[#allocation5 + $0x10f0] sm:$0xff]  ;;  %v7897_v54 = vcombine.low %v594_v41, %v606_v42  ;;  %v202_v41 = vld [vmem:[#allocation5 + $0x380] sm:$0xff] }
  0x96   :  { %v7925_v0 = vcombine.low %v620_v51, %v632_v53 }
  0x98   :  { %3717 = vmatpush1.bf16.msra.mxu1 %v7729_v60  ;;  %3889 = vmatpush1.bf16.msra.mxu0 %v7733_v61  ;;  %v644_v60 = vld [vmem:[#allocation5 + $0x1150] sm:$0xff]  ;;  %v7926_v61 = vcombine.high %v620_v51, %v632_v53  ;;  %v247_v53 = vld [vmem:[#allocation5 + $0x4e8] sm:$0xff] }
  0x99   :  { %3718 = vmatprep.subr.bf16.mxu1 %v7754_v62  ;;  %3890 = vmatprep.subr.bf16.mxu0 %v7758_v63  ;;  %v656_v62 = vld [vmem:[#allocation5 + $0x11b0] sm:$0xff]  ;;  %v7921_v63 = vcombine.low %v618_v49, %v630_v50 }
  0x9a   :  { %v7949_v8 = vcombine.low %v644_v60, %v656_v62 }
  0x9c   :  { %3719 = vmatpush1.bf16.msra.mxu1 %v7753_v4  ;;  %3891 = vmatpush1.bf16.msra.mxu0 %v7757_v5  ;;  %v94_v4 = vld [vmem:[#allocation5 + $0x20] sm:$0xff]  ;;  %v7950_v5 = vcombine.high %v644_v60, %v656_v62  ;;  %v271_v62 = vld [vmem:[#allocation5 + $0x5a8] sm:$0xff] }
  0x9d   :  { %3731 = vmatprep.subr.bf16.mxu1 %v7778_v6  ;;  %3903 = vmatprep.subr.bf16.mxu0 %v7782_v7  ;;  %v106_v6 = vld [vmem:[#allocation5 + $0x80] sm:$0xff]  ;;  %v7945_v7 = vcombine.low %v642_v58, %v654_v59 }
  0x9e   :  { %v7401_v18 = vcombine.low %v94_v4, %v106_v6 }
  0x9f   :  { %3721 = vmatmul.mubr.bf16.vlgmr.msra.gmra.mrb[0].mxu1 %v9289_v10  ;;  %3893 = vmatmul.mubr.bf16.vlgmr.msra.gmra.mrb[0].mxu0 %v9289_v10 }
  0xa0   :  { %3732 = vmatpush1.bf16.msra.mxu1 %v7777_v13  ;;  %3904 = vmatpush1.bf16.msra.mxu0 %v7781_v14  ;;  %v127_v13 = vld [vmem:[#allocation5 + $0x128] sm:$0xff]  ;;  %v118_v14 = vld [vmem:[#allocation5 + $0xe0] sm:$0xff] }
  0xa1   :  { %3733 = vmatprep.subr.bf16.mxu1 %v7802_v15  ;;  %3905 = vmatprep.subr.bf16.mxu0 %v7806_v16  ;;  %v7402_v15 = vcombine.high %v94_v4, %v106_v6  ;;  %v130_v16 = vld [vmem:[#allocation5 + $0x140] sm:$0xff]  ;;  %v7420_v19 = vcombine.high %v115_v12, %v127_v13  ;;  %v7419_v25 = vcombine.low %v115_v12, %v127_v13  ;;  %v295_v6 = vld [vmem:[#allocation5 + $0x668] sm:$0xff] }
  0xa2   :  { %3763 = vmatprep.mubr.bf16.mxu1 %v9191_v29  ;;  %3935 = vmatprep.mubr.bf16.mxu0 %v9191_v29  ;;  %v7425_v26 = vcombine.low %v118_v14, %v130_v16 }
  0xa4   :  { %3734 = vmatpush1.bf16.msra.mxu1 %v7801_v21  ;;  %3906 = vmatpush1.bf16.msra.mxu0 %v7805_v22  ;;  %v151_v21 = vld [vmem:[#allocation5 + $0x1e8] sm:$0xff]  ;;  %v142_v22 = vld [vmem:[#allocation5 + $0x1a0] sm:$0xff] }
  0xa5   :  { %3735 = vmatprep.subr.bf16.mxu1 %v7826_v23  ;;  %3907 = vmatprep.subr.bf16.mxu0 %v7830_v27  ;;  %v7426_v23 = vcombine.high %v118_v14, %v130_v16  ;;  %v7444_v27 = vcombine.high %v139_v20, %v151_v21  ;;  %v7443_v34 = vcombine.low %v139_v20, %v151_v21  ;;  %v307_v14 = vld [vmem:[#allocation5 + $0x6c8] sm:$0xff]  ;;  %v310_v16 = vld [vmem:[#allocation5 + $0x6e0] sm:$0xff] }
  0xa6   :  { %v7449_v35 = vcombine.low %v142_v22, %v154_v24 }
  0xa8   :  { %3736 = vmatpush1.bf16.msra.mxu1 %v7825_v30  ;;  %3908 = vmatpush1.bf16.msra.mxu0 %v7829_v31  ;;  %v175_v30 = vld [vmem:[#allocation5 + $0x2a8] sm:$0xff]  ;;  %v166_v31 = vld [vmem:[#allocation5 + $0x260] sm:$0xff] }
  0xa9   :  { %3737 = vmatprep.subr.bf16.mxu1 %v7850_v32  ;;  %3909 = vmatprep.subr.bf16.mxu0 %v7854_v36  ;;  %v7450_v32 = vcombine.high %v142_v22, %v154_v24  ;;  %v7468_v36 = vcombine.high %v163_v28, %v175_v30  ;;  %v7467_v42 = vcombine.low %v163_v28, %v175_v30  ;;  %v331_v22 = vld [vmem:[#allocation5 + $0x788] sm:$0xff]  ;;  %v334_v24 = vld [vmem:[#allocation5 + $0x7a0] sm:$0xff] }
  0xaa   :  { %v7473_v43 = vcombine.low %v166_v31, %v178_v33 }
  0xac   :  { %3738 = vmatpush1.bf16.msra.mxu1 %v7849_v38  ;;  %3910 = vmatpush1.bf16.msra.mxu0 %v7853_v39  ;;  %v199_v38 = vld [vmem:[#allocation5 + $0x368] sm:$0xff]  ;;  %v190_v39 = vld [vmem:[#allocation5 + $0x320] sm:$0xff] }
  0xad   :  { %3739 = vmatprep.subr.bf16.mxu1 %v7874_v40  ;;  %3911 = vmatprep.subr.bf16.mxu0 %v7878_v44  ;;  %v7474_v40 = vcombine.high %v166_v31, %v178_v33  ;;  %v7492_v44 = vcombine.high %v187_v37, %v199_v38  ;;  %v7491_v49 = vcombine.low %v187_v37, %v199_v38  ;;  %v355_v31 = vld [vmem:[#allocation5 + $0x848] sm:$0xff]  ;;  %v358_v33 = vld [vmem:[#allocation5 + $0x860] sm:$0xff] }
  0xae   :  { %v7497_v50 = vcombine.low %v190_v39, %v202_v41 }
  0xb0   :  { %3740 = vmatpush1.bf16.msra.mxu1 %v7873_v46  ;;  %3912 = vmatpush1.bf16.msra.mxu0 %v7877_v47  ;;  %v214_v46 = vld [vmem:[#allocation5 + $0x3e0] sm:$0xff]  ;;  %v7498_v47 = vcombine.high %v190_v39, %v202_v41  ;;  %v379_v39 = vld [vmem:[#allocation5 + $0x908] sm:$0xff] }
  0xb1   :  { %3741 = vmatprep.subr.bf16.mxu1 %v7898_v48  ;;  %3913 = vmatprep.subr.bf16.mxu0 %v7902_v52  ;;  %v226_v48 = vld [vmem:[#allocation5 + $0x440] sm:$0xff]  ;;  %v235_v52 = vld [vmem:[#allocation5 + $0x488] sm:$0xff] }
  0xb2   :  { %v7521_v59 = vcombine.low %v214_v46, %v226_v48  ;;  %v7540_v60 = vcombine.high %v235_v52, %v247_v53  ;;  %v7539_v2 = vcombine.low %v235_v52, %v247_v53  ;;  %v382_v41 = vld [vmem:[#allocation5 + $0x920] sm:$0xff] }
  0xb4   :  { %3742 = vmatpush1.bf16.msra.mxu1 %v7897_v54  ;;  %3914 = vmatpush1.bf16.msra.mxu0 %v7901_v55  ;;  %v238_v54 = vld [vmem:[#allocation5 + $0x4a0] sm:$0xff]  ;;  %v7522_v55 = vcombine.high %v214_v46, %v226_v48  ;;  %v403_v46 = vld [vmem:[#allocation5 + $0x9c8] sm:$0xff] }
  0xb5   :  { %3743 = vmatprep.subr.bf16.mxu1 %v7922_v57  ;;  %3915 = vmatprep.subr.bf16.mxu0 %v7926_v61  ;;  %v250_v57 = vld [vmem:[#allocation5 + $0x500] sm:$0xff]  ;;  %v259_v61 = vld [vmem:[#allocation5 + $0x548] sm:$0xff] }
  0xb6   :  { %v7545_v3 = vcombine.low %v238_v54, %v250_v57  ;;  %v7564_v4 = vcombine.high %v259_v61, %v271_v62  ;;  %v406_v48 = vld [vmem:[#allocation5 + $0x9e0] sm:$0xff] }
  0xb8   :  { %3744 = vmatpush1.bf16.msra.mxu1 %v7921_v63  ;;  %3916 = vmatpush1.bf16.msra.mxu0 %v7925_v0  ;;  %v262_v63 = vld [vmem:[#allocation5 + $0x560] sm:$0xff]  ;;  %v7546_v0 = vcombine.high %v238_v54, %v250_v57  ;;  %v427_v54 = vld [vmem:[#allocation5 + $0xa88] sm:$0xff] }
  0xb9   :  { %3745 = vmatprep.subr.bf16.mxu1 %v7946_v1  ;;  %3917 = vmatprep.subr.bf16.mxu0 %v7950_v5  ;;  %v274_v1 = vld [vmem:[#allocation5 + $0x5c0] sm:$0xff]  ;;  %v283_v5 = vld [vmem:[#allocation5 + $0x608] sm:$0xff] }
  0xba   :  { %v7569_v12 = vcombine.low %v262_v63, %v274_v1  ;;  %v7588_v13 = vcombine.high %v283_v5, %v295_v6  ;;  %v430_v57 = vld [vmem:[#allocation5 + $0xaa0] sm:$0xff] }
  0xbc   :  { %3746 = vmatpush1.bf16.msra.mxu1 %v7945_v7  ;;  %3918 = vmatpush1.bf16.msra.mxu0 %v7949_v8  ;;  %v286_v7 = vld [vmem:[#allocation5 + $0x620] sm:$0xff]  ;;  %v7570_v8 = vcombine.high %v262_v63, %v274_v1  ;;  %v451_v63 = vld [vmem:[#allocation5 + $0xb48] sm:$0xff] }
  0xbd   :  { %3774 = vmatprep.subr.bf16.mxu1 %v7396_v11  ;;  %4032 = vmatprep.subr.bf16.mxu0 %v7402_v15  ;;  %v7563_v11 = vcombine.low %v259_v61, %v271_v62  ;;  %v319_v15 = vld [vmem:[#allocation5 + $0x728] sm:$0xff]  ;;  %v454_v1 = vld [vmem:[#allocation5 + $0xb60] sm:$0xff] }
  0xbe   :  { %v7612_v21 = vcombine.high %v307_v14, %v319_v15 }
  0xbf   :  { %3764 = vmatmul.mubr.bf16.vlgmr.msra.gmra.mrb[0].mxu1 %v8549_v9  ;;  %3936 = vmatmul.mubr.bf16.vlgmr.msra.gmra.mrb[0].mxu0 %v8549_v9  ;;  %v298_v9 = vld [vmem:[#allocation5 + $0x680] sm:$0xff] }
  0xc0   :  { %3775 = vmatpush1.bf16.msra.mxu1 %v7395_v17  ;;  %4033 = vmatpush1.bf16.msra.mxu0 %v7401_v18  ;;  %v7594_v17 = vcombine.high %v286_v7, %v298_v9  ;;  %v322_v18 = vld [vmem:[#allocation5 + $0x740] sm:$0xff]  ;;  %v7593_v20 = vcombine.low %v286_v7, %v298_v9  ;;  %v475_v7 = vld [vmem:[#allocation5 + $0xc08] sm:$0xff] }
  0xc1   :  { %3776 = vmatprep.subr.bf16.mxu1 %v7420_v19  ;;  %4034 = vmatprep.subr.bf16.mxu0 %v7426_v23  ;;  %v7587_v19 = vcombine.low %v283_v5, %v295_v6  ;;  %v343_v23 = vld [vmem:[#allocation5 + $0x7e8] sm:$0xff]  ;;  %v7617_v28 = vcombine.low %v310_v16, %v322_v18  ;;  %v478_v9 = vld [vmem:[#allocation5 + $0xc20] sm:$0xff] }
  0xc2   :  { %3806 = vmatprep.mubr.bf16.mxu1 %v9285_v56  ;;  %4064 = vmatprep.mubr.bf16.mxu0 %v9285_v56  ;;  %v223_v56 = vld [vmem:[#allocation5 + $0x428] sm:$0xff]  ;;  %v7636_v30 = vcombine.high %v331_v22, %v343_v23 }
  0xc3   :  { %v7516_v51 = vcombine.high %v211_v45, %v223_v56  ;;  %v7515_v58 = vcombine.low %v211_v45, %v223_v56 }
  0xc4   :  { %3777 = vmatpush1.bf16.msra.mxu1 %v7419_v25  ;;  %4035 = vmatpush1.bf16.msra.mxu0 %v7425_v26  ;;  %v7618_v25 = vcombine.high %v310_v16, %v322_v18  ;;  %v346_v26 = vld [vmem:[#allocation5 + $0x800] sm:$0xff]  ;;  %v499_v16 = vld [vmem:[#allocation5 + $0xcc8] sm:$0xff] }
  0xc5   :  { %3778 = vmatprep.subr.bf16.mxu1 %v7444_v27  ;;  %4036 = vmatprep.subr.bf16.mxu0 %v7450_v32  ;;  %v7611_v27 = vcombine.low %v307_v14, %v319_v15  ;;  %v367_v32 = vld [vmem:[#allocation5 + $0x8a8] sm:$0xff]  ;;  %v7641_v37 = vcombine.low %v334_v24, %v346_v26  ;;  %v502_v18 = vld [vmem:[#allocation5 + $0xce0] sm:$0xff] }
  0xc6   :  { %v7660_v38 = vcombine.high %v355_v31, %v367_v32 }
  0xc8   :  { %3779 = vmatpush1.bf16.msra.mxu1 %v7443_v34  ;;  %4037 = vmatpush1.bf16.msra.mxu0 %v7449_v35  ;;  %v7642_v34 = vcombine.high %v334_v24, %v346_v26  ;;  %v370_v35 = vld [vmem:[#allocation5 + $0x8c0] sm:$0xff]  ;;  %v523_v24 = vld [vmem:[#allocation5 + $0xd88] sm:$0xff] }
  0xc9   :  { %3780 = vmatprep.subr.bf16.mxu1 %v7468_v36  ;;  %4038 = vmatprep.subr.bf16.mxu0 %v7474_v40  ;;  %v7635_v36 = vcombine.low %v331_v22, %v343_v23  ;;  %v391_v40 = vld [vmem:[#allocation5 + $0x968] sm:$0xff]  ;;  %v7665_v45 = vcombine.low %v358_v33, %v370_v35  ;;  %v526_v26 = vld [vmem:[#allocation5 + $0xda0] sm:$0xff] }
  0xca   :  { %v7684_v56 = vcombine.high %v379_v39, %v391_v40 }
  0xcc   :  { %3781 = vmatpush1.bf16.msra.mxu1 %v7467_v42  ;;  %4039 = vmatpush1.bf16.msra.mxu0 %v7473_v43  ;;  %v7666_v42 = vcombine.high %v358_v33, %v370_v35  ;;  %v394_v43 = vld [vmem:[#allocation5 + $0x980] sm:$0xff]  ;;  %v547_v33 = vld [vmem:[#allocation5 + $0xe48] sm:$0xff] }
  0xcd   :  { %3782 = vmatprep.subr.bf16.mxu1 %v7492_v44  ;;  %4040 = vmatprep.subr.bf16.mxu0 %v7498_v47  ;;  %v7659_v44 = vcombine.low %v355_v31, %v367_v32  ;;  %v415_v47 = vld [vmem:[#allocation5 + $0xa28] sm:$0xff]  ;;  %v7689_v52 = vcombine.low %v382_v41, %v394_v43  ;;  %v550_v35 = vld [vmem:[#allocation5 + $0xe60] sm:$0xff] }
  0xce   :  { %v7708_v53 = vcombine.high %v403_v46, %v415_v47 }
  0xd0   :  { %3783 = vmatpush1.bf16.msra.mxu1 %v7491_v49  ;;  %4041 = vmatpush1.bf16.msra.mxu0 %v7497_v50  ;;  %v7690_v49 = vcombine.high %v382_v41, %v394_v43  ;;  %v418_v50 = vld [vmem:[#allocation5 + $0xa40] sm:$0xff]  ;;  %v583_v41 = vld [vmem:[#allocation5 + $0xf68] sm:$0xff] }
  0xd1   :  { %3784 = vmatprep.subr.bf16.mxu1 %v7516_v51  ;;  %4042 = vmatprep.subr.bf16.mxu0 %v7522_v55  ;;  %v7683_v51 = vcombine.low %v379_v39, %v391_v40  ;;  %v439_v55 = vld [vmem:[#allocation5 + $0xae8] sm:$0xff]  ;;  %v7713_v61 = vcombine.low %v406_v48, %v418_v50 }
  0xd2   :  { %v7732_v62 = vcombine.high %v427_v54, %v439_v55  ;;  %v571_v40 = vld [vmem:[#allocation5 + $0xf08] sm:$0xff] }
  0xd4   :  { %3785 = vmatpush1.bf16.msra.mxu1 %v7515_v58  ;;  %4043 = vmatpush1.bf16.msra.mxu0 %v7521_v59  ;;  %v7714_v58 = vcombine.high %v406_v48, %v418_v50  ;;  %v442_v59 = vld [vmem:[#allocation5 + $0xb00] sm:$0xff]  ;;  %v607_v48 = vld [vmem:[#allocation5 + $0x1028] sm:$0xff] }
  0xd5   :  { %3786 = vmatprep.subr.bf16.mxu1 %v7540_v60  ;;  %4044 = vmatprep.subr.bf16.mxu0 %v7546_v0  ;;  %v7707_v60 = vcombine.low %v403_v46, %v415_v47  ;;  %v463_v0 = vld [vmem:[#allocation5 + $0xba8] sm:$0xff]  ;;  %v7737_v5 = vcombine.low %v430_v57, %v442_v59  ;;  %v7876_v46 = vcombine.high %v571_v40, %v583_v41 }
  0xd6   :  { %v7756_v6 = vcombine.high %v451_v63, %v463_v0  ;;  %v595_v47 = vld [vmem:[#allocation5 + $0xfc8] sm:$0xff] }
  0xd8   :  { %3787 = vmatpush1.bf16.msra.mxu1 %v7539_v2  ;;  %4045 = vmatpush1.bf16.msra.mxu0 %v7545_v3  ;;  %v7738_v2 = vcombine.high %v430_v57, %v442_v59  ;;  %v466_v3 = vld [vmem:[#allocation5 + $0xbc0] sm:$0xff]  ;;  %v631_v57 = vld [vmem:[#allocation5 + $0x10e8] sm:$0xff] }
  0xd9   :  { %3788 = vmatprep.subr.bf16.mxu1 %v7564_v4  ;;  %4046 = vmatprep.subr.bf16.mxu0 %v7570_v8  ;;  %v7731_v4 = vcombine.low %v427_v54, %v439_v55  ;;  %v487_v8 = vld [vmem:[#allocation5 + $0xc68] sm:$0xff]  ;;  %v7761_v14 = vcombine.low %v454_v1, %v466_v3  ;;  %v7900_v54 = vcombine.high %v595_v47, %v607_v48 }
  0xda   :  { %v7780_v15 = vcombine.high %v475_v7, %v487_v8  ;;  %v619_v55 = vld [vmem:[#allocation5 + $0x1088] sm:$0xff] }
  0xdc   :  { %3789 = vmatpush1.bf16.msra.mxu1 %v7563_v11  ;;  %4047 = vmatpush1.bf16.msra.mxu0 %v7569_v12  ;;  %v7762_v11 = vcombine.high %v454_v1, %v466_v3  ;;  %v490_v12 = vld [vmem:[#allocation5 + $0xc80] sm:$0xff]  ;;  %v655_v1 = vld [vmem:[#allocation5 + $0x11a8] sm:$0xff] }
  0xdd   :  { %3790 = vmatprep.subr.bf16.mxu1 %v7588_v13  ;;  %4048 = vmatprep.subr.bf16.mxu0 %v7594_v17  ;;  %v7755_v13 = vcombine.low %v451_v63, %v463_v0  ;;  %v511_v17 = vld [vmem:[#allocation5 + $0xd28] sm:$0xff]  ;;  %v7785_v22 = vcombine.low %v478_v9, %v490_v12  ;;  %v7924_v63 = vcombine.high %v619_v55, %v631_v57  ;;  %v646_v3 = vld [vmem:[#allocation5 + $0x1160] sm:$0xff] }
  0xde   :  { %v7804_v23 = vcombine.high %v499_v16, %v511_v17  ;;  %v643_v0 = vld [vmem:[#allocation5 + $0x1148] sm:$0xff] }
  0xe0   :  { %3791 = vmatpush1.bf16.msra.mxu1 %v7587_v19  ;;  %4049 = vmatpush1.bf16.msra.mxu0 %v7593_v20  ;;  %v7786_v19 = vcombine.high %v478_v9, %v490_v12  ;;  %v514_v20 = vld [vmem:[#allocation5 + $0xd40] sm:$0xff]  ;;  %v105_v9 = vld [vmem:[#allocation5 + $0x78] sm:$0xff] }
  0xe1   :  { %3792 = vmatprep.subr.bf16.mxu1 %v7612_v21  ;;  %4050 = vmatprep.subr.bf16.mxu0 %v7618_v25  ;;  %v7779_v21 = vcombine.low %v475_v7, %v487_v8  ;;  %v535_v25 = vld [vmem:[#allocation5 + $0xde8] sm:$0xff]  ;;  %v7809_v31 = vcombine.low %v502_v18, %v514_v20  ;;  %v7948_v7 = vcombine.high %v643_v0, %v655_v1  ;;  %v93_v8 = vld [vmem:[#allocation5 + $0x18] sm:$0xff] }
  0xe2   :  { %v7828_v32 = vcombine.high %v523_v24, %v535_v25 }
  0xe4   :  { %3793 = vmatpush1.bf16.msra.mxu1 %v7611_v27  ;;  %4051 = vmatpush1.bf16.msra.mxu0 %v7617_v28  ;;  %v7810_v27 = vcombine.high %v502_v18, %v514_v20  ;;  %v538_v28 = vld [vmem:[#allocation5 + $0xe00] sm:$0xff]  ;;  %v129_v18 = vld [vmem:[#allocation5 + $0x138] sm:$0xff] }
  0xe5   :  { %3794 = vmatprep.subr.bf16.mxu1 %v7636_v30  ;;  %4052 = vmatprep.subr.bf16.mxu0 %v7642_v34  ;;  %v7803_v30 = vcombine.low %v499_v16, %v511_v17  ;;  %v559_v34 = vld [vmem:[#allocation5 + $0xea8] sm:$0xff]  ;;  %v7400_v16 = vcombine.high %v93_v8, %v105_v9  ;;  %v117_v17 = vld [vmem:[#allocation5 + $0xd8] sm:$0xff] }
  0xe6   :  { %v7852_v39 = vcombine.high %v547_v33, %v559_v34 }
  0xe8   :  { %3795 = vmatpush1.bf16.msra.mxu1 %v7635_v36  ;;  %4053 = vmatpush1.bf16.msra.mxu0 %v7641_v37  ;;  %v7834_v36 = vcombine.high %v526_v26, %v538_v28  ;;  %v562_v37 = vld [vmem:[#allocation5 + $0xec0] sm:$0xff] }
  0xe9   :  { %3796 = vmatprep.subr.bf16.mxu1 %v7660_v38  ;;  %4054 = vmatprep.subr.bf16.mxu0 %v7666_v42  ;;  %v7827_v38 = vcombine.low %v523_v24, %v535_v25  ;;  %v574_v42 = vld [vmem:[#allocation5 + $0xf20] sm:$0xff]  ;;  %v7858_v43 = vcombine.high %v550_v35, %v562_v37  ;;  %v7424_v24 = vcombine.high %v117_v17, %v129_v18  ;;  %v141_v25 = vld [vmem:[#allocation5 + $0x198] sm:$0xff] }
  0xec   :  { %3797 = vmatpush1.bf16.msra.mxu1 %v7659_v44  ;;  %4055 = vmatpush1.bf16.msra.mxu0 %v7665_v45  ;;  %v586_v44 = vld [vmem:[#allocation5 + $0xf80] sm:$0xff]  ;;  %v7851_v45 = vcombine.low %v547_v33, %v559_v34 }
  0xed   :  { %3798 = vmatprep.subr.bf16.mxu1 %v7684_v56  ;;  %4056 = vmatprep.subr.bf16.mxu0 %v7690_v49  ;;  %v7857_v56 = vcombine.low %v550_v35, %v562_v37  ;;  %v598_v49 = vld [vmem:[#allocation5 + $0xfe0] sm:$0xff]  ;;  %v7882_v50 = vcombine.high %v574_v42, %v586_v44  ;;  %v165_v35 = vld [vmem:[#allocation5 + $0x258] sm:$0xff]  ;;  %v168_v37 = vld [vmem:[#allocation5 + $0x270] sm:$0xff] }
  0xf0   :  { %3799 = vmatpush1.bf16.msra.mxu1 %v7683_v51  ;;  %4057 = vmatpush1.bf16.msra.mxu0 %v7689_v52  ;;  %v610_v51 = vld [vmem:[#allocation5 + $0x1040] sm:$0xff]  ;;  %v7875_v52 = vcombine.low %v571_v40, %v583_v41 }
  0xf1   :  { %3800 = vmatprep.subr.bf16.mxu1 %v7708_v53  ;;  %4058 = vmatprep.subr.bf16.mxu0 %v7714_v58  ;;  %v7881_v53 = vcombine.low %v574_v42, %v586_v44  ;;  %v622_v58 = vld [vmem:[#allocation5 + $0x10a0] sm:$0xff]  ;;  %v7906_v59 = vcombine.high %v598_v49, %v610_v51  ;;  %v201_v44 = vld [vmem:[#allocation5 + $0x378] sm:$0xff] }
  0xf4   :  { %3801 = vmatpush1.bf16.msra.mxu1 %v7707_v60  ;;  %4059 = vmatpush1.bf16.msra.mxu0 %v7713_v61  ;;  %v634_v60 = vld [vmem:[#allocation5 + $0x1100] sm:$0xff]  ;;  %v7899_v61 = vcombine.low %v595_v47, %v607_v48 }
  0xf5   :  { %3802 = vmatprep.subr.bf16.mxu1 %v7732_v62  ;;  %4060 = vmatprep.subr.bf16.mxu0 %v7738_v2  ;;  %v7905_v62 = vcombine.low %v598_v49, %v610_v51  ;;  %v7930_v2 = vcombine.high %v622_v58, %v634_v60  ;;  %v225_v51 = vld [vmem:[#allocation5 + $0x438] sm:$0xff] }
  0xf8   :  { %3803 = vmatpush1.bf16.msra.mxu1 %v7731_v4  ;;  %4061 = vmatpush1.bf16.msra.mxu0 %v7737_v5  ;;  %v658_v4 = vld [vmem:[#allocation5 + $0x11c0] sm:$0xff]  ;;  %v7923_v5 = vcombine.low %v619_v55, %v631_v57 }
  0xf9   :  { %3804 = vmatprep.subr.bf16.mxu1 %v7756_v6  ;;  %4062 = vmatprep.subr.bf16.mxu0 %v7762_v11  ;;  %v7929_v6 = vcombine.low %v622_v58, %v634_v60  ;;  %v96_v11 = vld [vmem:[#allocation5 + $0x30] sm:$0xff]  ;;  %v7954_v12 = vcombine.high %v646_v3, %v658_v4  ;;  %v249_v60 = vld [vmem:[#allocation5 + $0x4f8] sm:$0xff] }
  0xfc   :  { %3805 = vmatpush1.bf16.msra.mxu1 %v7755_v13  ;;  %4063 = vmatpush1.bf16.msra.mxu0 %v7761_v14  ;;  %v108_v13 = vld [vmem:[#allocation5 + $0x90] sm:$0xff]  ;;  %v7947_v14 = vcombine.low %v643_v0, %v655_v1 }
  0xfd   :  { %3817 = vmatprep.subr.bf16.mxu1 %v7780_v15  ;;  %4075 = vmatprep.subr.bf16.mxu0 %v7786_v19  ;;  %v7953_v15 = vcombine.low %v646_v3, %v658_v4  ;;  %v120_v19 = vld [vmem:[#allocation5 + $0xf0] sm:$0xff]  ;;  %v7406_v20 = vcombine.high %v96_v11, %v108_v13  ;;  %v261_v3 = vld [vmem:[#allocation5 + $0x558] sm:$0xff] }
  0xfe   :  { %v273_v4 = vld [vmem:[#allocation5 + $0x5b8] sm:$0xff] }
  0xff   :  { %3807 = vmatmul.mubr.bf16.vlgmr.msra.gmra.mrb[4].mxu1 %v9289_v10  ;;  %4065 = vmatmul.mubr.bf16.vlgmr.msra.gmra.mrb[4].mxu0 %v9289_v10  ;;  %v7833_v10 = vcombine.low %v526_v26, %v538_v28  ;;  %v153_v26 = vld [vmem:[#allocation5 + $0x1f8] sm:$0xff] }
 0x100   :  { %3818 = vmatpush1.bf16.msra.mxu1 %v7779_v21  ;;  %4076 = vmatpush1.bf16.msra.mxu0 %v7785_v22  ;;  %v132_v21 = vld [vmem:[#allocation5 + $0x150] sm:$0xff]  ;;  %v7399_v22 = vcombine.low %v93_v8, %v105_v9  ;;  %v7448_v34 = vcombine.high %v141_v25, %v153_v26  ;;  %v7447_v40 = vcombine.low %v141_v25, %v153_v26 }
 0x101   :  { %3819 = vmatprep.subr.bf16.mxu1 %v7804_v23  ;;  %4077 = vmatprep.subr.bf16.mxu0 %v7810_v27  ;;  %v7405_v23 = vcombine.low %v96_v11, %v108_v13  ;;  %v144_v27 = vld [vmem:[#allocation5 + $0x1b0] sm:$0xff]  ;;  %v7430_v28 = vcombine.high %v120_v19, %v132_v21  ;;  %v7429_v33 = vcombine.low %v120_v19, %v132_v21  ;;  %v297_v13 = vld [vmem:[#allocation5 + $0x678] sm:$0xff] }
 0x102   :  { %3849 = vmatprep.mubr.bf16.mxu1 %v9191_v29  ;;  %4107 = vmatprep.mubr.bf16.mxu0 %v9191_v29  ;;  %v7568_v11 = vcombine.high %v261_v3, %v273_v4  ;;  %v321_v21 = vld [vmem:[#allocation5 + $0x738] sm:$0xff] }
 0x104   :  { %3820 = vmatpush1.bf16.msra.mxu1 %v7803_v30  ;;  %4078 = vmatpush1.bf16.msra.mxu0 %v7809_v31  ;;  %v156_v30 = vld [vmem:[#allocation5 + $0x210] sm:$0xff] }
 0x105   :  { %3821 = vmatprep.subr.bf16.mxu1 %v7828_v32  ;;  %4079 = vmatprep.subr.bf16.mxu0 %v7834_v36  ;;  %v9301_v31 = vld [vmem:[#allocation2 + $0x8] ss:$12 sps:$4 sm:$0xff]   ;;  %v7423_v32 = vcombine.low %v117_v17, %v129_v18  ;;  %v7453_v41 = vcombine.low %v144_v27, %v156_v30  ;;  %v7567_v17 = vcombine.low %v261_v3, %v273_v4 }
 0x106   :  { %v177_v36 = vld [vmem:[#allocation5 + $0x2b8] sm:$0xff] }
 0x107   :  { %v7472_v42 = vcombine.high %v165_v35, %v177_v36  ;;  %v7471_v47 = vcombine.low %v165_v35, %v177_v36 }
 0x108   :  { %3822 = vmatpush1.bf16.msra.mxu1 %v7827_v38  ;;  %4080 = vmatpush1.bf16.msra.mxu0 %v7833_v10  ;;  %v7454_v38 = vcombine.high %v144_v27, %v156_v30  ;;  %v180_v10 = vld [vmem:[#allocation5 + $0x2d0] sm:$0xff]  ;;  %v345_v30 = vld [vmem:[#allocation5 + $0x7f8] sm:$0xff] }
 0x109   :  { %3823 = vmatprep.subr.bf16.mxu1 %v7852_v39  ;;  %4081 = vmatprep.subr.bf16.mxu0 %v7858_v43  ;;  %v9305_v39 = vld [vmem:[#allocation2 + $0x4] ss:$12 sps:$4 sm:$0xff]   ;;  %v7477_v48 = vcombine.low %v168_v37, %v180_v10 }
 0x10a   :  { %v189_v43 = vld [vmem:[#allocation5 + $0x318] sm:$0xff] }
 0x10b   :  { %v7496_v49 = vcombine.high %v189_v43, %v201_v44  ;;  %v7495_v55 = vcombine.low %v189_v43, %v201_v44 }
 0x10c   :  { %3824 = vmatpush1.bf16.msra.mxu1 %v7851_v45  ;;  %4082 = vmatpush1.bf16.msra.mxu0 %v7857_v56  ;;  %v192_v45 = vld [vmem:[#allocation5 + $0x330] sm:$0xff]  ;;  %v7478_v56 = vcombine.high %v168_v37, %v180_v10  ;;  %v369_v10 = vld [vmem:[#allocation5 + $0x8b8] sm:$0xff] }
 0x10d   :  { %3825 = vmatprep.subr.bf16.mxu1 %v7876_v46  ;;  %4083 = vmatprep.subr.bf16.mxu0 %v7882_v50  ;;  %v204_v46 = vld [vmem:[#allocation5 + $0x390] sm:$0xff]  ;;  %v213_v50 = vld [vmem:[#allocation5 + $0x3d8] sm:$0xff] }
 0x10e   :  { %v7501_v57 = vcombine.low %v192_v45, %v204_v46  ;;  %v7520_v58 = vcombine.high %v213_v50, %v225_v51  ;;  %v7519_v0 = vcombine.low %v213_v50, %v225_v51 }
 0x110   :  { %3826 = vmatpush1.bf16.msra.mxu1 %v7875_v52  ;;  %4084 = vmatpush1.bf16.msra.mxu0 %v7881_v53  ;;  %v216_v52 = vld [vmem:[#allocation5 + $0x3f0] sm:$0xff]  ;;  %v7502_v53 = vcombine.high %v192_v45, %v204_v46  ;;  %v393_v46 = vld [vmem:[#allocation5 + $0x978] sm:$0xff] }
 0x111   :  { %3827 = vmatprep.subr.bf16.mxu1 %v7900_v54  ;;  %4085 = vmatprep.subr.bf16.mxu0 %v7906_v59  ;;  %v228_v54 = vld [vmem:[#allocation5 + $0x450] sm:$0xff]  ;;  %v237_v59 = vld [vmem:[#allocation5 + $0x498] sm:$0xff] }
 0x112   :  { %v7525_v1 = vcombine.low %v216_v52, %v228_v54  ;;  %v7543_v8 = vcombine.low %v237_v59, %v249_v60 }
 0x114   :  { %3828 = vmatpush1.bf16.msra.mxu1 %v7899_v61  ;;  %4086 = vmatpush1.bf16.msra.mxu0 %v7905_v62  ;;  %v240_v61 = vld [vmem:[#allocation5 + $0x4b0] sm:$0xff]  ;;  %v7526_v62 = vcombine.high %v216_v52, %v228_v54  ;;  %v417_v54 = vld [vmem:[#allocation5 + $0xa38] sm:$0xff] }
 0x115   :  { %3829 = vmatprep.subr.bf16.mxu1 %v7924_v63  ;;  %4087 = vmatprep.subr.bf16.mxu0 %v7930_v2  ;;  %v252_v63 = vld [vmem:[#allocation5 + $0x510] sm:$0xff]  ;;  %v7544_v2 = vcombine.high %v237_v59, %v249_v60 }
 0x116   :  { %v7549_v9 = vcombine.low %v240_v61, %v252_v63 }
 0x118   :  { %3830 = vmatpush1.bf16.msra.mxu1 %v7923_v5  ;;  %4088 = vmatpush1.bf16.msra.mxu0 %v7929_v6  ;;  %v264_v5 = vld [vmem:[#allocation5 + $0x570] sm:$0xff]  ;;  %v7550_v6 = vcombine.high %v240_v61, %v252_v63  ;;  %v441_v63 = vld [vmem:[#allocation5 + $0xaf8] sm:$0xff] }
 0x119   :  { %3831 = vmatprep.subr.bf16.mxu1 %v7948_v7  ;;  %4089 = vmatprep.subr.bf16.mxu0 %v7954_v12  ;;  %v276_v7 = vld [vmem:[#allocation5 + $0x5d0] sm:$0xff]  ;;  %v285_v12 = vld [vmem:[#allocation5 + $0x618] sm:$0xff] }
 0x11a   :  { %v7573_v18 = vcombine.low %v264_v5, %v276_v7  ;;  %v7592_v19 = vcombine.high %v285_v12, %v297_v13  ;;  %v7591_v25 = vcombine.low %v285_v12, %v297_v13 }
 0x11c   :  { %3832 = vmatpush1.bf16.msra.mxu1 %v7947_v14  ;;  %4090 = vmatpush1.bf16.msra.mxu0 %v7953_v15  ;;  %v288_v14 = vld [vmem:[#allocation5 + $0x630] sm:$0xff]  ;;  %v7574_v15 = vcombine.high %v264_v5, %v276_v7  ;;  %v465_v7 = vld [vmem:[#allocation5 + $0xbb8] sm:$0xff] }
 0x11d   :  { %3946 = vmatprep.subr.bf16.mxu1 %v7400_v16  ;;  %4204 = vmatprep.subr.bf16.mxu0 %v7406_v20  ;;  %v300_v16 = vld [vmem:[#allocation5 + $0x690] sm:$0xff]  ;;  %v309_v20 = vld [vmem:[#allocation5 + $0x6d8] sm:$0xff] }
 0x11e   :  { %v7597_v26 = vcombine.low %v288_v14, %v300_v16  ;;  %v7616_v27 = vcombine.high %v309_v20, %v321_v21  ;;  %v7615_v35 = vcombine.low %v309_v20, %v321_v21 }
 0x11f   :  { %3850 = vmatmul.mubr.bf16.vlgmr.msra.gmra.mrb[4].mxu1 %v9301_v31  ;;  %4108 = vmatmul.mubr.bf16.vlgmr.msra.gmra.mrb[4].mxu0 %v9301_v31 }
 0x120   :  { %3947 = vmatpush1.bf16.msra.mxu1 %v7399_v22  ;;  %4205 = vmatpush1.bf16.msra.mxu0 %v7405_v23  ;;  %v312_v22 = vld [vmem:[#allocation5 + $0x6f0] sm:$0xff]  ;;  %v7598_v23 = vcombine.high %v288_v14, %v300_v16  ;;  %v489_v16 = vld [vmem:[#allocation5 + $0xc78] sm:$0xff] }
 0x121   :  { %3948 = vmatprep.subr.bf16.mxu1 %v7424_v24  ;;  %4206 = vmatprep.subr.bf16.mxu0 %v7430_v28  ;;  %v324_v24 = vld [vmem:[#allocation5 + $0x750] sm:$0xff]  ;;  %v333_v28 = vld [vmem:[#allocation5 + $0x798] sm:$0xff] }
 0x122   :  { %3978 = vmatprep.mubr.bf16.mxu1 %v9305_v39  ;;  %4236 = vmatprep.mubr.bf16.mxu0 %v9305_v39  ;;  %v7621_v36 = vcombine.low %v312_v22, %v324_v24  ;;  %v7640_v37 = vcombine.high %v333_v28, %v345_v30  ;;  %v7639_v43 = vcombine.low %v333_v28, %v345_v30 }
 0x124   :  { %3949 = vmatpush1.bf16.msra.mxu1 %v7423_v32  ;;  %4207 = vmatpush1.bf16.msra.mxu0 %v7429_v33  ;;  %v336_v32 = vld [vmem:[#allocation5 + $0x7b0] sm:$0xff]  ;;  %v7622_v33 = vcombine.high %v312_v22, %v324_v24  ;;  %v513_v24 = vld [vmem:[#allocation5 + $0xd38] sm:$0xff] }
 0x125   :  { %3950 = vmatprep.subr.bf16.mxu1 %v7448_v34  ;;  %4208 = vmatprep.subr.bf16.mxu0 %v7454_v38  ;;  %v348_v34 = vld [vmem:[#allocation5 + $0x810] sm:$0xff]  ;;  %v357_v38 = vld [vmem:[#allocation5 + $0x858] sm:$0xff] }
 0x126   :  { %v7645_v44 = vcombine.low %v336_v32, %v348_v34  ;;  %v7664_v45 = vcombine.high %v357_v38, %v369_v10  ;;  %v7663_v50 = vcombine.low %v357_v38, %v369_v10  ;;  %v9309_v38 = vld [vmem:[#allocation2] ss:$12 sps:$4 sm:$0xff]  }
 0x128   :  { %3951 = vmatpush1.bf16.msra.mxu1 %v7447_v40  ;;  %4209 = vmatpush1.bf16.msra.mxu0 %v7453_v41  ;;  %v360_v40 = vld [vmem:[#allocation5 + $0x870] sm:$0xff]  ;;  %v7646_v41 = vcombine.high %v336_v32, %v348_v34  ;;  %v537_v34 = vld [vmem:[#allocation5 + $0xdf8] sm:$0xff] }
 0x129   :  { %3952 = vmatprep.subr.bf16.mxu1 %v7472_v42  ;;  %4210 = vmatprep.subr.bf16.mxu0 %v7478_v56  ;;  %v372_v42 = vld [vmem:[#allocation5 + $0x8d0] sm:$0xff]  ;;  %v381_v56 = vld [vmem:[#allocation5 + $0x918] sm:$0xff] }
 0x12a   :  { %v7669_v51 = vcombine.low %v360_v40, %v372_v42  ;;  %v7688_v52 = vcombine.high %v381_v56, %v393_v46  ;;  %v7687_v59 = vcombine.low %v381_v56, %v393_v46  ;;  %v564_v56 = vld [vmem:[#allocation5 + $0xed0] sm:$0xff] }
 0x12c   :  { %3953 = vmatpush1.bf16.msra.mxu1 %v7471_v47  ;;  %4211 = vmatpush1.bf16.msra.mxu0 %v7477_v48  ;;  %v384_v47 = vld [vmem:[#allocation5 + $0x930] sm:$0xff]  ;;  %v7670_v48 = vcombine.high %v360_v40, %v372_v42 }
 0x12d   :  { %3954 = vmatprep.subr.bf16.mxu1 %v7496_v49  ;;  %4212 = vmatprep.subr.bf16.mxu0 %v7502_v53  ;;  %v396_v49 = vld [vmem:[#allocation5 + $0x990] sm:$0xff]  ;;  %v405_v53 = vld [vmem:[#allocation5 + $0x9d8] sm:$0xff] }
 0x12e   :  { %v7693_v60 = vcombine.low %v384_v47, %v396_v49  ;;  %v7712_v61 = vcombine.high %v405_v53, %v417_v54  ;;  %v7711_v3 = vcombine.low %v405_v53, %v417_v54  ;;  %v588_v53 = vld [vmem:[#allocation5 + $0xf90] sm:$0xff] }
 0x130   :  { %3955 = vmatpush1.bf16.msra.mxu1 %v7495_v55  ;;  %4213 = vmatpush1.bf16.msra.mxu0 %v7501_v57  ;;  %v408_v55 = vld [vmem:[#allocation5 + $0x9f0] sm:$0xff]  ;;  %v7694_v57 = vcombine.high %v384_v47, %v396_v49 }
 0x131   :  { %3956 = vmatprep.subr.bf16.mxu1 %v7520_v58  ;;  %4214 = vmatprep.subr.bf16.mxu0 %v7526_v62  ;;  %v420_v58 = vld [vmem:[#allocation5 + $0xa50] sm:$0xff]  ;;  %v429_v62 = vld [vmem:[#allocation5 + $0xa98] sm:$0xff] }
 0x132   :  { %v7717_v4 = vcombine.low %v408_v55, %v420_v58  ;;  %v7736_v5 = vcombine.high %v429_v62, %v441_v63  ;;  %v7735_v12 = vcombine.low %v429_v62, %v441_v63  ;;  %v612_v62 = vld [vmem:[#allocation5 + $0x1050] sm:$0xff] }
 0x134   :  { %3957 = vmatpush1.bf16.msra.mxu1 %v7519_v0  ;;  %4215 = vmatpush1.bf16.msra.mxu0 %v7525_v1  ;;  %v432_v0 = vld [vmem:[#allocation5 + $0xab0] sm:$0xff]  ;;  %v7718_v1 = vcombine.high %v408_v55, %v420_v58 }
 0x135   :  { %3958 = vmatprep.subr.bf16.mxu1 %v7544_v2  ;;  %4216 = vmatprep.subr.bf16.mxu0 %v7550_v6  ;;  %v444_v2 = vld [vmem:[#allocation5 + $0xb10] sm:$0xff]  ;;  %v453_v6 = vld [vmem:[#allocation5 + $0xb58] sm:$0xff] }
 0x136   :  { %v7741_v13 = vcombine.low %v432_v0, %v444_v2  ;;  %v7760_v14 = vcombine.high %v453_v6, %v465_v7  ;;  %v7759_v20 = vcombine.low %v453_v6, %v465_v7  ;;  %v636_v6 = vld [vmem:[#allocation5 + $0x1110] sm:$0xff] }
 0x138   :  { %3959 = vmatpush1.bf16.msra.mxu1 %v7543_v8  ;;  %4217 = vmatpush1.bf16.msra.mxu0 %v7549_v9  ;;  %v456_v8 = vld [vmem:[#allocation5 + $0xb70] sm:$0xff]  ;;  %v7742_v9 = vcombine.high %v432_v0, %v444_v2 }
 0x139   :  { %3960 = vmatprep.subr.bf16.mxu1 %v7568_v11  ;;  %4218 = vmatprep.subr.bf16.mxu0 %v7574_v15  ;;  %v468_v11 = vld [vmem:[#allocation5 + $0xbd0] sm:$0xff]  ;;  %v477_v15 = vld [vmem:[#allocation5 + $0xc18] sm:$0xff] }
 0x13a   :  { %v7765_v21 = vcombine.low %v456_v8, %v468_v11  ;;  %v7784_v22 = vcombine.high %v477_v15, %v489_v16  ;;  %v7783_v28 = vcombine.low %v477_v15, %v489_v16  ;;  %v660_v15 = vld [vmem:[#allocation5 + $0x11d0] sm:$0xff] }
 0x13c   :  { %3961 = vmatpush1.bf16.msra.mxu1 %v7567_v17  ;;  %4219 = vmatpush1.bf16.msra.mxu0 %v7573_v18  ;;  %v480_v17 = vld [vmem:[#allocation5 + $0xc30] sm:$0xff]  ;;  %v7766_v18 = vcombine.high %v456_v8, %v468_v11 }
 0x13d   :  { %3962 = vmatprep.subr.bf16.mxu1 %v7592_v19  ;;  %4220 = vmatprep.subr.bf16.mxu0 %v7598_v23  ;;  %v492_v19 = vld [vmem:[#allocation5 + $0xc90] sm:$0xff]  ;;  %v501_v23 = vld [vmem:[#allocation5 + $0xcd8] sm:$0xff] }
 0x13e   :  { %v7789_v30 = vcombine.low %v480_v17, %v492_v19  ;;  %v7808_v32 = vcombine.high %v501_v23, %v513_v24  ;;  %v7807_v10 = vcombine.low %v501_v23, %v513_v24  ;;  %v110_v23 = vld [vmem:[#allocation5 + $0xa0] sm:$0xff] }
 0x140   :  { %3963 = vmatpush1.bf16.msra.mxu1 %v7591_v25  ;;  %4221 = vmatpush1.bf16.msra.mxu0 %v7597_v26  ;;  %v504_v25 = vld [vmem:[#allocation5 + $0xcf0] sm:$0xff]  ;;  %v7790_v26 = vcombine.high %v480_v17, %v492_v19 }
 0x141   :  { %3964 = vmatprep.subr.bf16.mxu1 %v7616_v27  ;;  %4222 = vmatprep.subr.bf16.mxu0 %v7622_v33  ;;  %v516_v27 = vld [vmem:[#allocation5 + $0xd50] sm:$0xff]  ;;  %v525_v33 = vld [vmem:[#allocation5 + $0xd98] sm:$0xff] }
 0x142   :  { %v7813_v40 = vcombine.low %v504_v25, %v516_v27  ;;  %v7831_v46 = vcombine.low %v525_v33, %v537_v34 }
 0x144   :  { %3965 = vmatpush1.bf16.msra.mxu1 %v7615_v35  ;;  %4223 = vmatpush1.bf16.msra.mxu0 %v7621_v36  ;;  %v528_v35 = vld [vmem:[#allocation5 + $0xdb0] sm:$0xff]  ;;  %v7814_v36 = vcombine.high %v504_v25, %v516_v27 }
 0x145   :  { %3966 = vmatprep.subr.bf16.mxu1 %v7640_v37  ;;  %4224 = vmatprep.subr.bf16.mxu0 %v7646_v41  ;;  %v540_v37 = vld [vmem:[#allocation5 + $0xe10] sm:$0xff]  ;;  %v7832_v41 = vcombine.high %v525_v33, %v537_v34  ;;  %v134_v33 = vld [vmem:[#allocation5 + $0x160] sm:$0xff] }
 0x146   :  { %v7838_v42 = vcombine.high %v528_v35, %v540_v37  ;;  %v7837_v47 = vcombine.low %v528_v35, %v540_v37 }
 0x148   :  { %3967 = vmatpush1.bf16.msra.mxu1 %v7639_v43  ;;  %4225 = vmatpush1.bf16.msra.mxu0 %v7645_v44  ;;  %v549_v43 = vld [vmem:[#allocation5 + $0xe58] sm:$0xff] }
 0x149   :  { %3968 = vmatprep.subr.bf16.mxu1 %v7664_v45  ;;  %4226 = vmatprep.subr.bf16.mxu0 %v7670_v48  ;;  %v561_v44 = vld [vmem:[#allocation5 + $0xeb8] sm:$0xff]  ;;  %v552_v45 = vld [vmem:[#allocation5 + $0xe70] sm:$0xff] }
 0x14a   :  { %v7856_v48 = vcombine.high %v549_v43, %v561_v44  ;;  %v7862_v49 = vcombine.high %v552_v45, %v564_v56  ;;  %v7855_v54 = vcombine.low %v549_v43, %v561_v44  ;;  %v7861_v55 = vcombine.low %v552_v45, %v564_v56 }
 0x14c   :  { %3969 = vmatpush1.bf16.msra.mxu1 %v7663_v50  ;;  %4227 = vmatpush1.bf16.msra.mxu0 %v7669_v51  ;;  %v573_v50 = vld [vmem:[#allocation5 + $0xf18] sm:$0xff] }
 0x14d   :  { %3970 = vmatprep.subr.bf16.mxu1 %v7688_v52  ;;  %4228 = vmatprep.subr.bf16.mxu0 %v7694_v57  ;;  %v585_v51 = vld [vmem:[#allocation5 + $0xf78] sm:$0xff]  ;;  %v576_v52 = vld [vmem:[#allocation5 + $0xf30] sm:$0xff] }
 0x14e   :  { %v7880_v57 = vcombine.high %v573_v50, %v585_v51  ;;  %v7886_v58 = vcombine.high %v576_v52, %v588_v53  ;;  %v7879_v63 = vcombine.low %v573_v50, %v585_v51  ;;  %v7885_v0 = vcombine.low %v576_v52, %v588_v53  ;;  %v191_v53 = vld [vmem:[#allocation5 + $0x328] sm:$0xff] }
 0x150   :  { %3971 = vmatpush1.bf16.msra.mxu1 %v7687_v59  ;;  %4229 = vmatpush1.bf16.msra.mxu0 %v7693_v60  ;;  %v597_v59 = vld [vmem:[#allocation5 + $0xfd8] sm:$0xff] }
 0x151   :  { %3972 = vmatprep.subr.bf16.mxu1 %v7712_v61  ;;  %4230 = vmatprep.subr.bf16.mxu0 %v7718_v1  ;;  %v609_v60 = vld [vmem:[#allocation5 + $0x1038] sm:$0xff]  ;;  %v600_v61 = vld [vmem:[#allocation5 + $0xff0] sm:$0xff] }
 0x152   :  { %v7904_v1 = vcombine.high %v597_v59, %v609_v60  ;;  %v7910_v2 = vcombine.high %v600_v61, %v612_v62  ;;  %v7903_v7 = vcombine.low %v597_v59, %v609_v60  ;;  %v7909_v8 = vcombine.low %v600_v61, %v612_v62  ;;  %v215_v61 = vld [vmem:[#allocation5 + $0x3e8] sm:$0xff] }
 0x153   :  { %v227_v62 = vld [vmem:[#allocation5 + $0x448] sm:$0xff] }
 0x154   :  { %3973 = vmatpush1.bf16.msra.mxu1 %v7711_v3  ;;  %4231 = vmatpush1.bf16.msra.mxu0 %v7717_v4  ;;  %v621_v3 = vld [vmem:[#allocation5 + $0x1098] sm:$0xff] }
 0x155   :  { %3974 = vmatprep.subr.bf16.mxu1 %v7736_v5  ;;  %4232 = vmatprep.subr.bf16.mxu0 %v7742_v9  ;;  %v633_v4 = vld [vmem:[#allocation5 + $0x10f8] sm:$0xff]  ;;  %v624_v5 = vld [vmem:[#allocation5 + $0x10b0] sm:$0xff] }
 0x156   :  { %v7928_v9 = vcombine.high %v621_v3, %v633_v4  ;;  %v7934_v11 = vcombine.high %v624_v5, %v636_v6  ;;  %v7927_v16 = vcombine.low %v621_v3, %v633_v4  ;;  %v7933_v17 = vcombine.low %v624_v5, %v636_v6  ;;  %v239_v5 = vld [vmem:[#allocation5 + $0x4a8] sm:$0xff] }
 0x157   :  { %v7524_v3 = vcombine.high %v215_v61, %v227_v62  ;;  %v251_v6 = vld [vmem:[#allocation5 + $0x508] sm:$0xff] }
 0x158   :  { %3975 = vmatpush1.bf16.msra.mxu1 %v7735_v12  ;;  %4233 = vmatpush1.bf16.msra.mxu0 %v7741_v13  ;;  %v645_v12 = vld [vmem:[#allocation5 + $0x1158] sm:$0xff] }
 0x159   :  { %3976 = vmatprep.subr.bf16.mxu1 %v7760_v14  ;;  %4234 = vmatprep.subr.bf16.mxu0 %v7766_v18  ;;  %v657_v13 = vld [vmem:[#allocation5 + $0x11b8] sm:$0xff]  ;;  %v648_v14 = vld [vmem:[#allocation5 + $0x1170] sm:$0xff] }
 0x15a   :  { %v7952_v18 = vcombine.high %v645_v12, %v657_v13  ;;  %v7958_v19 = vcombine.high %v648_v14, %v660_v15  ;;  %v7951_v24 = vcombine.low %v645_v12, %v657_v13  ;;  %v7957_v25 = vcombine.low %v648_v14, %v660_v15  ;;  %v263_v15 = vld [vmem:[#allocation5 + $0x568] sm:$0xff] }
 0x15b   :  { %v7548_v12 = vcombine.high %v239_v5, %v251_v6 }
 0x15c   :  { %3977 = vmatpush1.bf16.msra.mxu1 %v7759_v20  ;;  %4235 = vmatpush1.bf16.msra.mxu0 %v7765_v21  ;;  %v95_v20 = vld [vmem:[#allocation5 + $0x28] sm:$0xff] }
 0x15d   :  { %3989 = vmatprep.subr.bf16.mxu1 %v7784_v22  ;;  %4247 = vmatprep.subr.bf16.mxu0 %v7790_v26  ;;  %v107_v21 = vld [vmem:[#allocation5 + $0x88] sm:$0xff]  ;;  %v98_v22 = vld [vmem:[#allocation5 + $0x40] sm:$0xff] }
 0x15e   :  { %v7404_v26 = vcombine.high %v95_v20, %v107_v21  ;;  %v7410_v27 = vcombine.high %v98_v22, %v110_v23  ;;  %v7403_v34 = vcombine.low %v95_v20, %v107_v21  ;;  %v7409_v35 = vcombine.low %v98_v22, %v110_v23 }
 0x15f   :  { %3979 = vmatmul.mubr.bf16.vlgmr.msra.gmra.mrb[8].mxu1 %v9309_v38  ;;  %4237 = vmatmul.mubr.bf16.vlgmr.msra.gmra.mrb[8].mxu0 %v9309_v38  ;;  %v7547_v22 = vcombine.low %v239_v5, %v251_v6 }
 0x160   :  { %3990 = vmatpush1.bf16.msra.mxu1 %v7783_v28  ;;  %4248 = vmatpush1.bf16.msra.mxu0 %v7789_v30  ;;  %v119_v28 = vld [vmem:[#allocation5 + $0xe8] sm:$0xff] }
 0x161   :  { %3991 = vmatprep.subr.bf16.mxu1 %v7808_v32  ;;  %4249 = vmatprep.subr.bf16.mxu0 %v7814_v36  ;;  %v131_v30 = vld [vmem:[#allocation5 + $0x148] sm:$0xff]  ;;  %v122_v32 = vld [vmem:[#allocation5 + $0x100] sm:$0xff] }
 0x162   :  { %4021 = vmatprep.mubr.bf16.mxu1 %v9191_v29  ;;  %4279 = vmatprep.mubr.bf16.mxu0 %v9191_v29  ;;  %v7428_v36 = vcombine.high %v119_v28, %v131_v30  ;;  %v7434_v37 = vcombine.high %v122_v32, %v134_v33  ;;  %v7427_v43 = vcombine.low %v119_v28, %v131_v30  ;;  %v287_v30 = vld [vmem:[#allocation5 + $0x628] sm:$0xff] }
 0x163   :  { %v7433_v44 = vcombine.low %v122_v32, %v134_v33  ;;  %v299_v32 = vld [vmem:[#allocation5 + $0x688] sm:$0xff] }
 0x164   :  { %3992 = vmatpush1.bf16.msra.mxu1 %v7807_v10  ;;  %4250 = vmatpush1.bf16.msra.mxu0 %v7813_v40  ;;  %v143_v10 = vld [vmem:[#allocation5 + $0x1a8] sm:$0xff] }
 0x165   :  { %3993 = vmatprep.subr.bf16.mxu1 %v7832_v41  ;;  %4251 = vmatprep.subr.bf16.mxu0 %v7838_v42  ;;  %v155_v40 = vld [vmem:[#allocation5 + $0x208] sm:$0xff]  ;;  %v146_v41 = vld [vmem:[#allocation5 + $0x1c0] sm:$0xff] }
 0x166   :  { %v158_v42 = vld [vmem:[#allocation5 + $0x220] sm:$0xff]  ;;  %v7452_v45 = vcombine.high %v143_v10, %v155_v40  ;;  %v7451_v50 = vcombine.low %v143_v10, %v155_v40  ;;  %v7596_v10 = vcombine.high %v287_v30, %v299_v32 }
 0x167   :  { %v7458_v56 = vcombine.high %v146_v41, %v158_v42 }
 0x168   :  { %3994 = vmatpush1.bf16.msra.mxu1 %v7831_v46  ;;  %4252 = vmatpush1.bf16.msra.mxu0 %v7837_v47  ;;  %v167_v46 = vld [vmem:[#allocation5 + $0x268] sm:$0xff] }
 0x169   :  { %3995 = vmatprep.subr.bf16.mxu1 %v7856_v48  ;;  %4253 = vmatprep.subr.bf16.mxu0 %v7862_v49  ;;  %v179_v47 = vld [vmem:[#allocation5 + $0x2c8] sm:$0xff]  ;;  %v170_v48 = vld [vmem:[#allocation5 + $0x280] sm:$0xff] }
 0x16a   :  { %v182_v49 = vld [vmem:[#allocation5 + $0x2e0] sm:$0xff]  ;;  %v7476_v51 = vcombine.high %v167_v46, %v179_v47 }
 0x16b   :  { %v7482_v52 = vcombine.high %v170_v48, %v182_v49  ;;  %v7481_v59 = vcombine.low %v170_v48, %v182_v49  ;;  %v335_v48 = vld [vmem:[#allocation5 + $0x7a8] sm:$0xff] }
 0x16c   :  { %3996 = vmatpush1.bf16.msra.mxu1 %v7855_v54  ;;  %4254 = vmatpush1.bf16.msra.mxu0 %v7861_v55  ;;  %v203_v54 = vld [vmem:[#allocation5 + $0x388] sm:$0xff]  ;;  %v194_v55 = vld [vmem:[#allocation5 + $0x340] sm:$0xff] }
 0x16d   :  { %3997 = vmatprep.subr.bf16.mxu1 %v7880_v57  ;;  %4255 = vmatprep.subr.bf16.mxu0 %v7886_v58  ;;  %v206_v57 = vld [vmem:[#allocation5 + $0x3a0] sm:$0xff]  ;;  %v7475_v58 = vcombine.low %v167_v46, %v179_v47  ;;  %v7500_v60 = vcombine.high %v191_v53, %v203_v54  ;;  %v347_v49 = vld [vmem:[#allocation5 + $0x808] sm:$0xff] }
 0x170   :  { %3998 = vmatpush1.bf16.msra.mxu1 %v7879_v63  ;;  %4256 = vmatpush1.bf16.msra.mxu0 %v7885_v0  ;;  %v218_v63 = vld [vmem:[#allocation5 + $0x400] sm:$0xff] }
 0x171   :  { %3999 = vmatprep.subr.bf16.mxu1 %v7904_v1  ;;  %4257 = vmatprep.subr.bf16.mxu0 %v7910_v2  ;;  %v230_v0 = vld [vmem:[#allocation5 + $0x460] sm:$0xff]  ;;  %v7499_v1 = vcombine.low %v191_v53, %v203_v54  ;;  %v7505_v2 = vcombine.low %v194_v55, %v206_v57  ;;  %v7644_v53 = vcombine.high %v335_v48, %v347_v49 }
 0x172   :  { %v7530_v4 = vcombine.high %v218_v63, %v230_v0 }
 0x174   :  { %4000 = vmatpush1.bf16.msra.mxu1 %v7903_v7  ;;  %4258 = vmatpush1.bf16.msra.mxu0 %v7909_v8  ;;  %v242_v7 = vld [vmem:[#allocation5 + $0x4c0] sm:$0xff] }
 0x175   :  { %4001 = vmatprep.subr.bf16.mxu1 %v7928_v9  ;;  %4259 = vmatprep.subr.bf16.mxu0 %v7934_v11  ;;  %v254_v8 = vld [vmem:[#allocation5 + $0x520] sm:$0xff]  ;;  %v7523_v9 = vcombine.low %v215_v61, %v227_v62  ;;  %v7529_v11 = vcombine.low %v218_v63, %v230_v0  ;;  %v383_v63 = vld [vmem:[#allocation5 + $0x928] sm:$0xff] }
 0x176   :  { %v7554_v14 = vcombine.high %v242_v7, %v254_v8  ;;  %v395_v0 = vld [vmem:[#allocation5 + $0x988] sm:$0xff] }
 0x177   :  { %v7692_v5 = vcombine.high %v383_v63, %v395_v0 }
 0x178   :  { %4002 = vmatpush1.bf16.msra.mxu1 %v7927_v16  ;;  %4260 = vmatpush1.bf16.msra.mxu0 %v7933_v17  ;;  %v275_v16 = vld [vmem:[#allocation5 + $0x5c8] sm:$0xff] }
 0x179   :  { %4003 = vmatprep.subr.bf16.mxu1 %v7952_v18  ;;  %4261 = vmatprep.subr.bf16.mxu0 %v7958_v19  ;;  %v266_v18 = vld [vmem:[#allocation5 + $0x580] sm:$0xff] }
 0x17a   :  { %v278_v19 = vld [vmem:[#allocation5 + $0x5e0] sm:$0xff] }
 0x17b   :  { %v7578_v28 = vcombine.high %v266_v18, %v278_v19 }
 0x17c   :  { %4004 = vmatpush1.bf16.msra.mxu1 %v7951_v24  ;;  %4262 = vmatpush1.bf16.msra.mxu0 %v7957_v25  ;;  %v7553_v25 = vcombine.low %v242_v7, %v254_v8  ;;  %v407_v7 = vld [vmem:[#allocation5 + $0x9e8] sm:$0xff] }
 0x17d   :  { %4118 = vmatprep.subr.bf16.mxu1 %v7404_v26  ;;  %4376 = vmatprep.subr.bf16.mxu0 %v7410_v27  ;;  %v7572_v26 = vcombine.high %v263_v15, %v275_v16  ;;  %v419_v8 = vld [vmem:[#allocation5 + $0xa48] sm:$0xff] }
 0x17f   :  { %4022 = vmatmul.mubr.bf16.vlgmr.msra.gmra.mrb[8].mxu1 %v9301_v31  ;;  %4280 = vmatmul.mubr.bf16.vlgmr.msra.gmra.mrb[8].mxu0 %v9301_v31  ;;  %v7457_v31 = vcombine.low %v146_v41, %v158_v42  ;;  %v311_v41 = vld [vmem:[#allocation5 + $0x6e8] sm:$0xff] }
 0x180   :  { %4119 = vmatpush1.bf16.msra.mxu1 %v7403_v34  ;;  %4377 = vmatpush1.bf16.msra.mxu0 %v7409_v35  ;;  %v290_v34 = vld [vmem:[#allocation5 + $0x640] sm:$0xff]  ;;  %v323_v42 = vld [vmem:[#allocation5 + $0x748] sm:$0xff] }
 0x181   :  { %4120 = vmatprep.subr.bf16.mxu1 %v7428_v36  ;;  %4378 = vmatprep.subr.bf16.mxu0 %v7434_v37  ;;  %v302_v35 = vld [vmem:[#allocation5 + $0x6a0] sm:$0xff]  ;;  %v7571_v36 = vcombine.low %v263_v15, %v275_v16  ;;  %v7577_v37 = vcombine.low %v266_v18, %v278_v19  ;;  %v7620_v46 = vcombine.high %v311_v41, %v323_v42  ;;  %v431_v18 = vld [vmem:[#allocation5 + $0xaa8] sm:$0xff] }
 0x182   :  { %4150 = vmatprep.mubr.bf16.mxu1 %v9305_v39  ;;  %4408 = vmatprep.mubr.bf16.mxu0 %v9305_v39  ;;  %v7506_v39 = vcombine.high %v194_v55, %v206_v57  ;;  %v7602_v40 = vcombine.high %v290_v34, %v302_v35  ;;  %v359_v55 = vld [vmem:[#allocation5 + $0x868] sm:$0xff]  ;;  %v7716_v15 = vcombine.high %v407_v7, %v419_v8 }
 0x183   :  { %v371_v57 = vld [vmem:[#allocation5 + $0x8c8] sm:$0xff] }
 0x184   :  { %4121 = vmatpush1.bf16.msra.mxu1 %v7427_v43  ;;  %4379 = vmatpush1.bf16.msra.mxu0 %v7433_v44  ;;  %v314_v43 = vld [vmem:[#allocation5 + $0x700] sm:$0xff]  ;;  %v7668_v61 = vcombine.high %v359_v55, %v371_v57  ;;  %v443_v19 = vld [vmem:[#allocation5 + $0xb08] sm:$0xff] }
 0x185   :  { %4122 = vmatprep.subr.bf16.mxu1 %v7452_v45  ;;  %4380 = vmatprep.subr.bf16.mxu0 %v7458_v56  ;;  %v326_v44 = vld [vmem:[#allocation5 + $0x760] sm:$0xff]  ;;  %v7595_v45 = vcombine.low %v287_v30, %v299_v32  ;;  %v7601_v56 = vcombine.low %v290_v34, %v302_v35  ;;  %v7740_v30 = vcombine.high %v431_v18, %v443_v19  ;;  %v455_v34 = vld [vmem:[#allocation5 + $0xb68] sm:$0xff] }
 0x186   :  { %v7626_v47 = vcombine.high %v314_v43, %v326_v44  ;;  %v467_v35 = vld [vmem:[#allocation5 + $0xbc8] sm:$0xff] }
 0x188   :  { %4123 = vmatpush1.bf16.msra.mxu1 %v7451_v50  ;;  %4381 = vmatpush1.bf16.msra.mxu0 %v7457_v31  ;;  %v338_v50 = vld [vmem:[#allocation5 + $0x7c0] sm:$0xff] }
 0x189   :  { %4124 = vmatprep.subr.bf16.mxu1 %v7476_v51  ;;  %4382 = vmatprep.subr.bf16.mxu0 %v7482_v52  ;;  %v350_v31 = vld [vmem:[#allocation5 + $0x820] sm:$0xff]  ;;  %v7619_v51 = vcombine.low %v311_v41, %v323_v42  ;;  %v7625_v52 = vcombine.low %v314_v43, %v326_v44  ;;  %v7764_v41 = vcombine.high %v455_v34, %v467_v35  ;;  %v479_v43 = vld [vmem:[#allocation5 + $0xc28] sm:$0xff] }
 0x18a   :  { %v7650_v54 = vcombine.high %v338_v50, %v350_v31  ;;  %v491_v44 = vld [vmem:[#allocation5 + $0xc88] sm:$0xff] }
 0x18c   :  { %4125 = vmatpush1.bf16.msra.mxu1 %v7475_v58  ;;  %4383 = vmatpush1.bf16.msra.mxu0 %v7481_v59  ;;  %v362_v58 = vld [vmem:[#allocation5 + $0x880] sm:$0xff] }
 0x18d   :  { %4126 = vmatprep.subr.bf16.mxu1 %v7500_v60  ;;  %4384 = vmatprep.subr.bf16.mxu0 %v7506_v39  ;;  %v374_v59 = vld [vmem:[#allocation5 + $0x8e0] sm:$0xff]  ;;  %v7643_v60 = vcombine.low %v335_v48, %v347_v49  ;;  %v7649_v39 = vcombine.low %v338_v50, %v350_v31  ;;  %v7788_v48 = vcombine.high %v479_v43, %v491_v44  ;;  %v503_v50 = vld [vmem:[#allocation5 + $0xce8] sm:$0xff] }
 0x18e   :  { %v7674_v62 = vcombine.high %v362_v58, %v374_v59  ;;  %v515_v31 = vld [vmem:[#allocation5 + $0xd48] sm:$0xff] }
 0x190   :  { %4127 = vmatpush1.bf16.msra.mxu1 %v7499_v1  ;;  %4385 = vmatpush1.bf16.msra.mxu0 %v7505_v2  ;;  %v386_v1 = vld [vmem:[#allocation5 + $0x940] sm:$0xff] }
 0x191   :  { %4128 = vmatprep.subr.bf16.mxu1 %v7524_v3  ;;  %4386 = vmatprep.subr.bf16.mxu0 %v7530_v4  ;;  %v398_v2 = vld [vmem:[#allocation5 + $0x9a0] sm:$0xff]  ;;  %v7667_v3 = vcombine.low %v359_v55, %v371_v57  ;;  %v7673_v4 = vcombine.low %v362_v58, %v374_v59  ;;  %v7812_v55 = vcombine.high %v503_v50, %v515_v31  ;;  %v527_v58 = vld [vmem:[#allocation5 + $0xda8] sm:$0xff] }
 0x192   :  { %v9319_v13 = vpop.f32.mrb[0].mxu1  ;;  %v9323_v20 = vpop.f32.mrb[0].mxu0  ;;  %v7698_v6 = vcombine.high %v386_v1, %v398_v2  ;;  %v539_v59 = vld [vmem:[#allocation5 + $0xe08] sm:$0xff] }
 0x193   :  { %v9321_v17 = vpop.f32.mrb[1].mxu1  ;;  %v9327_v23 = vpop.f32.mrb[1].mxu0 }
 0x194   :  { %v9325_v21 = vpop.f32.mrb[2].mxu1  ;;  %4129 = vmatpush1.bf16.msra.mxu1 %v7523_v9  ;;  %4387 = vmatpush1.bf16.msra.mxu0 %v7529_v11  ;;  %v9331_v27 = vpop.f32.mrb[2].mxu0  ;;  %v410_v9 = vld [vmem:[#allocation5 + $0xa00] sm:$0xff] }
 0x195   :  { %v9329_v24 = vpop.f32.mrb[3].mxu1  ;;  %4130 = vmatprep.subr.bf16.mxu1 %v7548_v12  ;;  %4388 = vmatprep.subr.bf16.mxu0 %v7554_v14  ;;  %v9333_v33 = vpop.f32.mrb[3].mxu0  ;;  %v422_v11 = vld [vmem:[#allocation5 + $0xa60] sm:$0xff]  ;;  %v7691_v12 = vcombine.low %v383_v63, %v395_v0  ;;  %v7697_v14 = vcombine.low %v386_v1, %v398_v2  ;;  %v7836_v63 = vcombine.high %v527_v58, %v539_v59  ;;  %v551_v1 = vld [vmem:[#allocation5 + $0xe68] sm:$0xff] }
 0x196   :  { %v7722_v16 = vcombine.high %v410_v9, %v422_v11  ;;  %v563_v2 = vld [vmem:[#allocation5 + $0xec8] sm:$0xff] }
 0x198   :  { %4131 = vmatpush1.bf16.msra.mxu1 %v7547_v22  ;;  %4389 = vmatpush1.bf16.msra.mxu0 %v7553_v25  ;;  %v434_v22 = vld [vmem:[#allocation5 + $0xac0] sm:$0xff] }
 0x199   :  { %4132 = vmatprep.subr.bf16.mxu1 %v7572_v26  ;;  %4390 = vmatprep.subr.bf16.mxu0 %v7578_v28  ;;  %v446_v25 = vld [vmem:[#allocation5 + $0xb20] sm:$0xff]  ;;  %v7715_v26 = vcombine.low %v407_v7, %v419_v8  ;;  %v7721_v28 = vcombine.low %v410_v9, %v422_v11  ;;  %v575_v8 = vld [vmem:[#allocation5 + $0xf28] sm:$0xff] }
 0x19a   :  { %v7746_v32 = vcombine.high %v434_v22, %v446_v25  ;;  %v587_v9 = vld [vmem:[#allocation5 + $0xf88] sm:$0xff]  ;;  %v578_v11 = vld [vmem:[#allocation5 + $0xf40] sm:$0xff] }
 0x19c   :  { %4133 = vmatpush1.bf16.msra.mxu1 %v7571_v36  ;;  %4391 = vmatpush1.bf16.msra.mxu0 %v7577_v37  ;;  %v458_v36 = vld [vmem:[#allocation5 + $0xb80] sm:$0xff] }
 0x19d   :  { %4134 = vmatprep.subr.bf16.mxu1 %v7596_v10  ;;  %4392 = vmatprep.subr.bf16.mxu0 %v7602_v40  ;;  %v470_v37 = vld [vmem:[#allocation5 + $0xbe0] sm:$0xff]  ;;  %v7739_v10 = vcombine.low %v431_v18, %v443_v19  ;;  %v7745_v40 = vcombine.low %v434_v22, %v446_v25  ;;  %v599_v19 = vld [vmem:[#allocation5 + $0xfe8] sm:$0xff] }
 0x19e   :  { %v7770_v42 = vcombine.high %v458_v36, %v470_v37  ;;  %v611_v22 = vld [vmem:[#allocation5 + $0x1048] sm:$0xff]  ;;  %v602_v25 = vld [vmem:[#allocation5 + $0x1000] sm:$0xff] }
 0x1a0   :  { %4135 = vmatpush1.bf16.msra.mxu1 %v7595_v45  ;;  %4393 = vmatpush1.bf16.msra.mxu0 %v7601_v56  ;;  %v482_v45 = vld [vmem:[#allocation5 + $0xc40] sm:$0xff] }
 0x1a1   :  { %4136 = vmatprep.subr.bf16.mxu1 %v7620_v46  ;;  %4394 = vmatprep.subr.bf16.mxu0 %v7626_v47  ;;  %v494_v56 = vld [vmem:[#allocation5 + $0xca0] sm:$0xff]  ;;  %v7763_v46 = vcombine.low %v455_v34, %v467_v35  ;;  %v7769_v47 = vcombine.low %v458_v36, %v470_v37  ;;  %v623_v35 = vld [vmem:[#allocation5 + $0x10a8] sm:$0xff] }
 0x1a2   :  { %v7794_v49 = vcombine.high %v482_v45, %v494_v56  ;;  %v635_v36 = vld [vmem:[#allocation5 + $0x1108] sm:$0xff]  ;;  %v626_v37 = vld [vmem:[#allocation5 + $0x10c0] sm:$0xff] }
 0x1a4   :  { %4137 = vmatpush1.bf16.msra.mxu1 %v7619_v51  ;;  %4395 = vmatpush1.bf16.msra.mxu0 %v7625_v52  ;;  %v506_v51 = vld [vmem:[#allocation5 + $0xd00] sm:$0xff] }
 0x1a5   :  { %4138 = vmatprep.subr.bf16.mxu1 %v7644_v53  ;;  %4396 = vmatprep.subr.bf16.mxu0 %v7650_v54  ;;  %v518_v52 = vld [vmem:[#allocation5 + $0xd60] sm:$0xff]  ;;  %v7787_v53 = vcombine.low %v479_v43, %v491_v44  ;;  %v7793_v54 = vcombine.low %v482_v45, %v494_v56  ;;  %v647_v44 = vld [vmem:[#allocation5 + $0x1168] sm:$0xff] }
 0x1a6   :  { %v7818_v57 = vcombine.high %v506_v51, %v518_v52  ;;  %v659_v45 = vld [vmem:[#allocation5 + $0x11c8] sm:$0xff]  ;;  %v650_v56 = vld [vmem:[#allocation5 + $0x1180] sm:$0xff] }
 0x1a8   :  { %4139 = vmatpush1.bf16.msra.mxu1 %v7643_v60  ;;  %4397 = vmatpush1.bf16.msra.mxu0 %v7649_v39  ;;  %v530_v60 = vld [vmem:[#allocation5 + $0xdc0] sm:$0xff] }
 0x1a9   :  { %4140 = vmatprep.subr.bf16.mxu1 %v7668_v61  ;;  %4398 = vmatprep.subr.bf16.mxu0 %v7674_v62  ;;  %v542_v39 = vld [vmem:[#allocation5 + $0xe20] sm:$0xff]  ;;  %v7811_v61 = vcombine.low %v503_v50, %v515_v31  ;;  %v7817_v62 = vcombine.low %v506_v51, %v518_v52  ;;  %v97_v31 = vld [vmem:[#allocation5 + $0x38] sm:$0xff]  ;;  %v100_v52 = vld [vmem:[#allocation5 + $0x50] sm:$0xff] }
 0x1aa   :  { %v7842_v0 = vcombine.high %v530_v60, %v542_v39  ;;  %v109_v51 = vld [vmem:[#allocation5 + $0x98] sm:$0xff] }
 0x1ac   :  { %4141 = vmatpush1.bf16.msra.mxu1 %v7667_v3  ;;  %4399 = vmatpush1.bf16.msra.mxu0 %v7673_v4  ;;  %v554_v3 = vld [vmem:[#allocation5 + $0xe80] sm:$0xff] }
 0x1ad   :  { %4142 = vmatprep.subr.bf16.mxu1 %v7692_v5  ;;  %4400 = vmatprep.subr.bf16.mxu0 %v7698_v6  ;;  %v566_v4 = vld [vmem:[#allocation5 + $0xee0] sm:$0xff]  ;;  %v7835_v5 = vcombine.low %v527_v58, %v539_v59  ;;  %v7860_v6 = vcombine.high %v551_v1, %v563_v2  ;;  %v121_v59 = vld [vmem:[#allocation5 + $0xf8] sm:$0xff] }
 0x1ae   :  { %v7866_v7 = vcombine.high %v554_v3, %v566_v4 }
 0x1b0   :  { %4143 = vmatpush1.bf16.msra.mxu1 %v7691_v12  ;;  %4401 = vmatpush1.bf16.msra.mxu0 %v7697_v14  ;;  %v590_v12 = vld [vmem:[#allocation5 + $0xfa0] sm:$0xff]  ;;  %v7859_v14 = vcombine.low %v551_v1, %v563_v2  ;;  %v145_v2 = vld [vmem:[#allocation5 + $0x1b8] sm:$0xff] }
 0x1b1   :  { %4144 = vmatprep.subr.bf16.mxu1 %v7716_v15  ;;  %4402 = vmatprep.subr.bf16.mxu0 %v7722_v16  ;;  %v7865_v15 = vcombine.low %v554_v3, %v566_v4  ;;  %v7884_v16 = vcombine.high %v575_v8, %v587_v9  ;;  %v7890_v18 = vcombine.high %v578_v11, %v590_v12  ;;  %v157_v3 = vld [vmem:[#allocation5 + $0x218] sm:$0xff] }
 0x1b2   :  { %v9339_v4 = vld [vmem:[#allocation2 + $0x8] ss:$12 sps:$4 sm:$0xff]  }
 0x1b4   :  { %4145 = vmatpush1.bf16.msra.mxu1 %v7715_v26  ;;  %4403 = vmatpush1.bf16.msra.mxu0 %v7721_v28  ;;  %v614_v26 = vld [vmem:[#allocation5 + $0x1060] sm:$0xff]  ;;  %v7883_v28 = vcombine.low %v575_v8, %v587_v9  ;;  %v7456_v8 = vcombine.high %v145_v2, %v157_v3 }
 0x1b5   :  { %4146 = vmatprep.subr.bf16.mxu1 %v7740_v30  ;;  %4404 = vmatprep.subr.bf16.mxu0 %v7746_v32  ;;  %v7889_v30 = vcombine.low %v578_v11, %v590_v12  ;;  %v7908_v32 = vcombine.high %v599_v19, %v611_v22  ;;  %v7914_v34 = vcombine.high %v602_v25, %v614_v26  ;;  %v169_v11 = vld [vmem:[#allocation5 + $0x278] sm:$0xff] }
 0x1b6   :  { %v181_v12 = vld [vmem:[#allocation5 + $0x2d8] sm:$0xff] }
 0x1b8   :  { %4147 = vmatpush1.bf16.msra.mxu1 %v7739_v10  ;;  %4405 = vmatpush1.bf16.msra.mxu0 %v7745_v40  ;;  %v638_v10 = vld [vmem:[#allocation5 + $0x1120] sm:$0xff]  ;;  %v7907_v40 = vcombine.low %v599_v19, %v611_v22  ;;  %v7480_v22 = vcombine.high %v169_v11, %v181_v12 }
 0x1b9   :  { %4148 = vmatprep.subr.bf16.mxu1 %v7764_v41  ;;  %4406 = vmatprep.subr.bf16.mxu0 %v7770_v42  ;;  %v7913_v41 = vcombine.low %v602_v25, %v614_v26  ;;  %v7932_v42 = vcombine.high %v623_v35, %v635_v36  ;;  %v7938_v43 = vcombine.high %v626_v37, %v638_v10  ;;  %v193_v26 = vld [vmem:[#allocation5 + $0x338] sm:$0xff] }
 0x1bc   :  { %4149 = vmatpush1.bf16.msra.mxu1 %v7763_v46  ;;  %4407 = vmatpush1.bf16.msra.mxu0 %v7769_v47  ;;  %v662_v46 = vld [vmem:[#allocation5 + $0x11e0] sm:$0xff]  ;;  %v7931_v47 = vcombine.low %v623_v35, %v635_v36 }
 0x1bd   :  { %4161 = vmatprep.subr.bf16.mxu1 %v7788_v48  ;;  %4419 = vmatprep.subr.bf16.mxu0 %v7794_v49  ;;  %v7937_v48 = vcombine.low %v626_v37, %v638_v10  ;;  %v7956_v49 = vcombine.high %v647_v44, %v659_v45  ;;  %v7962_v50 = vcombine.high %v650_v56, %v662_v46  ;;  %v217_v10 = vld [vmem:[#allocation5 + $0x3f8] sm:$0xff] }
 0x1bf   :  { %4151 = vmatmul.mubr.bf16.vlgmr.msra.gmra.mrb[12].mxu1 %v9309_v38  ;;  %4409 = vmatmul.mubr.bf16.vlgmr.msra.gmra.mrb[12].mxu0 %v9309_v38  ;;  %v7841_v38 = vcombine.low %v530_v60, %v542_v39  ;;  %v133_v60 = vld [vmem:[#allocation5 + $0x158] sm:$0xff]  ;;  %v124_v39 = vld [vmem:[#allocation5 + $0x110] sm:$0xff] }
 0x1c0   :  { %4162 = vmatpush1.bf16.msra.mxu1 %v7787_v53  ;;  %4420 = vmatpush1.bf16.msra.mxu0 %v7793_v54  ;;  %v112_v53 = vld [vmem:[#allocation5 + $0xb0] sm:$0xff]  ;;  %v7955_v54 = vcombine.low %v647_v44, %v659_v45 }
 0x1c1   :  { %4163 = vmatprep.subr.bf16.mxu1 %v7812_v55  ;;  %4421 = vmatprep.subr.bf16.mxu0 %v7818_v57  ;;  %v7961_v55 = vcombine.low %v650_v56, %v662_v46  ;;  %v7408_v57 = vcombine.high %v97_v31, %v109_v51  ;;  %v7414_v58 = vcombine.high %v100_v52, %v112_v53  ;;  %v241_v46 = vld [vmem:[#allocation5 + $0x4b8] sm:$0xff] }
 0x1c2   :  { %4193 = vmatprep.mubr.bf16.mxu1 %v9191_v29  ;;  %4451 = vmatprep.mubr.bf16.mxu0 %v9191_v29 }
 0x1c4   :  { %4164 = vmatpush1.bf16.msra.mxu1 %v7811_v61  ;;  %4422 = vmatpush1.bf16.msra.mxu0 %v7817_v62  ;;  %v136_v61 = vld [vmem:[#allocation5 + $0x170] sm:$0xff]  ;;  %v7407_v62 = vcombine.low %v97_v31, %v109_v51 }
 0x1c5   :  { %4165 = vmatprep.subr.bf16.mxu1 %v7836_v63  ;;  %4423 = vmatprep.subr.bf16.mxu0 %v7842_v0  ;;  %v7413_v63 = vcombine.low %v100_v52, %v112_v53  ;;  %v7432_v0 = vcombine.high %v121_v59, %v133_v60  ;;  %v7438_v1 = vcombine.high %v124_v39, %v136_v61 }
 0x1c8   :  { %4166 = vmatpush1.bf16.msra.mxu1 %v7835_v5  ;;  %4424 = vmatpush1.bf16.msra.mxu0 %v7841_v38  ;;  %v148_v5 = vld [vmem:[#allocation5 + $0x1d0] sm:$0xff] }
 0x1c9   :  { %4167 = vmatprep.subr.bf16.mxu1 %v7860_v6  ;;  %4425 = vmatprep.subr.bf16.mxu0 %v7866_v7  ;;  %v160_v38 = vld [vmem:[#allocation5 + $0x230] sm:$0xff]  ;;  %v7431_v6 = vcombine.low %v121_v59, %v133_v60  ;;  %v7437_v7 = vcombine.low %v124_v39, %v136_v61 }
 0x1ca   :  { %v7462_v9 = vcombine.high %v148_v5, %v160_v38  ;;  %v7461_v19 = vcombine.low %v148_v5, %v160_v38  ;;  %v280_v59 = vld [vmem:[#allocation5 + $0x5f0] sm:$0xff]  ;;  %v289_v5 = vld [vmem:[#allocation5 + $0x638] sm:$0xff] }
 0x1cb   :  { %v301_v38 = vld [vmem:[#allocation5 + $0x698] sm:$0xff] }
 0x1cc   :  { %4168 = vmatpush1.bf16.msra.mxu1 %v7859_v14  ;;  %4426 = vmatpush1.bf16.msra.mxu0 %v7865_v15  ;;  %v9343_v14 = vld [vmem:[#allocation2 + $0x4] ss:$12 sps:$4 sm:$0xff]   ;;  %v172_v15 = vld [vmem:[#allocation5 + $0x290] sm:$0xff] }
 0x1cd   :  { %4169 = vmatprep.subr.bf16.mxu1 %v7884_v16  ;;  %4427 = vmatprep.subr.bf16.mxu0 %v7890_v18  ;;  %v184_v16 = vld [vmem:[#allocation5 + $0x2f0] sm:$0xff]  ;;  %v7455_v18 = vcombine.low %v145_v2, %v157_v3 }
 0x1ce   :  { %v7486_v25 = vcombine.high %v172_v15, %v184_v16  ;;  %v7485_v35 = vcombine.low %v172_v15, %v184_v16  ;;  %v313_v16 = vld [vmem:[#allocation5 + $0x6f8] sm:$0xff] }
 0x1d0   :  { %4170 = vmatpush1.bf16.msra.mxu1 %v7883_v28  ;;  %4428 = vmatpush1.bf16.msra.mxu0 %v7889_v30  ;;  %v205_v28 = vld [vmem:[#allocation5 + $0x398] sm:$0xff]  ;;  %v196_v30 = vld [vmem:[#allocation5 + $0x350] sm:$0xff] }
 0x1d1   :  { %4171 = vmatprep.subr.bf16.mxu1 %v7908_v32  ;;  %4429 = vmatprep.subr.bf16.mxu0 %v7914_v34  ;;  %v208_v32 = vld [vmem:[#allocation5 + $0x3b0] sm:$0xff]  ;;  %v7479_v34 = vcombine.low %v169_v11, %v181_v12  ;;  %v7504_v36 = vcombine.high %v193_v26, %v205_v28  ;;  %v7600_v12 = vcombine.high %v289_v5, %v301_v38 }
 0x1d2   :  { %v7510_v37 = vcombine.high %v196_v30, %v208_v32  ;;  %v7509_v44 = vcombine.low %v196_v30, %v208_v32  ;;  %v337_v32 = vld [vmem:[#allocation5 + $0x7b8] sm:$0xff] }
 0x1d4   :  { %4172 = vmatpush1.bf16.msra.mxu1 %v7907_v40  ;;  %4430 = vmatpush1.bf16.msra.mxu0 %v7913_v41  ;;  %v229_v40 = vld [vmem:[#allocation5 + $0x458] sm:$0xff]  ;;  %v220_v41 = vld [vmem:[#allocation5 + $0x410] sm:$0xff] }
 0x1d5   :  { %4173 = vmatprep.subr.bf16.mxu1 %v7932_v42  ;;  %4431 = vmatprep.subr.bf16.mxu0 %v7938_v43  ;;  %v232_v42 = vld [vmem:[#allocation5 + $0x470] sm:$0xff]  ;;  %v7503_v43 = vcombine.low %v193_v26, %v205_v28  ;;  %v7528_v45 = vcombine.high %v217_v10, %v229_v40 }
 0x1d6   :  { %v7534_v56 = vcombine.high %v220_v41, %v232_v42  ;;  %v7533_v31 = vcombine.low %v220_v41, %v232_v42  ;;  %v361_v42 = vld [vmem:[#allocation5 + $0x878] sm:$0xff] }
 0x1d8   :  { %4174 = vmatpush1.bf16.msra.mxu1 %v7931_v47  ;;  %4432 = vmatpush1.bf16.msra.mxu0 %v7937_v48  ;;  %v253_v47 = vld [vmem:[#allocation5 + $0x518] sm:$0xff]  ;;  %v244_v48 = vld [vmem:[#allocation5 + $0x4d0] sm:$0xff] }
 0x1d9   :  { %4175 = vmatprep.subr.bf16.mxu1 %v7956_v49  ;;  %4433 = vmatprep.subr.bf16.mxu0 %v7962_v50  ;;  %v256_v49 = vld [vmem:[#allocation5 + $0x530] sm:$0xff]  ;;  %v7527_v50 = vcombine.low %v217_v10, %v229_v40  ;;  %v7552_v51 = vcombine.high %v241_v46, %v253_v47  ;;  %v7551_v61 = vcombine.low %v241_v46, %v253_v47 }
 0x1da   :  { %v7558_v53 = vcombine.high %v244_v48, %v256_v49 }
 0x1dc   :  { %4176 = vmatpush1.bf16.msra.mxu1 %v7955_v54  ;;  %4434 = vmatpush1.bf16.msra.mxu0 %v7961_v55  ;;  %v265_v54 = vld [vmem:[#allocation5 + $0x578] sm:$0xff] }
 0x1dd   :  { %4290 = vmatprep.subr.bf16.mxu1 %v7408_v57  ;;  %4548 = vmatprep.subr.bf16.mxu0 %v7414_v58  ;;  %v277_v55 = vld [vmem:[#allocation5 + $0x5d8] sm:$0xff]  ;;  %v268_v58 = vld [vmem:[#allocation5 + $0x590] sm:$0xff] }
 0x1de   :  { %v7582_v3 = vcombine.high %v268_v58, %v280_v59  ;;  %v7581_v11 = vcombine.low %v268_v58, %v280_v59  ;;  %v409_v59 = vld [vmem:[#allocation5 + $0x9f8] sm:$0xff] }
 0x1df   :  { %4194 = vmatmul.mubr.bf16.vlgmr.msra.gmra.mrb[12].mxu1 %v9339_v4  ;;  %4452 = vmatmul.mubr.bf16.vlgmr.msra.gmra.mrb[12].mxu0 %v9339_v4 }
 0x1e0   :  { %4291 = vmatpush1.bf16.msra.mxu1 %v7407_v62  ;;  %4549 = vmatpush1.bf16.msra.mxu0 %v7413_v63 }
 0x1e1   :  { %4292 = vmatprep.subr.bf16.mxu1 %v7432_v0  ;;  %4550 = vmatprep.subr.bf16.mxu0 %v7438_v1  ;;  %v7557_v0 = vcombine.low %v244_v48, %v256_v49  ;;  %v7576_v1 = vcombine.high %v265_v54, %v277_v55  ;;  %v385_v49 = vld [vmem:[#allocation5 + $0x938] sm:$0xff] }
 0x1e2   :  { %4322 = vmatprep.mubr.bf16.mxu1 %v9343_v14  ;;  %4580 = vmatprep.mubr.bf16.mxu0 %v9343_v14 }
 0x1e4   :  { %4293 = vmatpush1.bf16.msra.mxu1 %v7431_v6  ;;  %4551 = vmatpush1.bf16.msra.mxu0 %v7437_v7  ;;  %v292_v7 = vld [vmem:[#allocation5 + $0x650] sm:$0xff] }
 0x1e5   :  { %4294 = vmatprep.subr.bf16.mxu1 %v7456_v8  ;;  %4552 = vmatprep.subr.bf16.mxu0 %v7462_v9  ;;  %v304_v8 = vld [vmem:[#allocation5 + $0x6b0] sm:$0xff]  ;;  %v7575_v9 = vcombine.low %v265_v54, %v277_v55 }
 0x1e6   :  { %v7606_v15 = vcombine.high %v292_v7, %v304_v8  ;;  %v7605_v26 = vcombine.low %v292_v7, %v304_v8  ;;  %v433_v8 = vld [vmem:[#allocation5 + $0xab8] sm:$0xff] }
 0x1e8   :  { %4295 = vmatpush1.bf16.msra.mxu1 %v7455_v18  ;;  %4553 = vmatpush1.bf16.msra.mxu0 %v7461_v19  ;;  %v325_v18 = vld [vmem:[#allocation5 + $0x758] sm:$0xff]  ;;  %v316_v19 = vld [vmem:[#allocation5 + $0x710] sm:$0xff] }
 0x1e9   :  { %4296 = vmatprep.subr.bf16.mxu1 %v7480_v22  ;;  %4554 = vmatprep.subr.bf16.mxu0 %v7486_v25  ;;  %v328_v22 = vld [vmem:[#allocation5 + $0x770] sm:$0xff]  ;;  %v7599_v25 = vcombine.low %v289_v5, %v301_v38  ;;  %v7624_v28 = vcombine.high %v313_v16, %v325_v18 }
 0x1ea   :  { %v7630_v30 = vcombine.high %v316_v19, %v328_v22  ;;  %v7629_v10 = vcombine.low %v316_v19, %v328_v22  ;;  %v457_v22 = vld [vmem:[#allocation5 + $0xb78] sm:$0xff] }
 0x1ec   :  { %4297 = vmatpush1.bf16.msra.mxu1 %v7479_v34  ;;  %4555 = vmatpush1.bf16.msra.mxu0 %v7485_v35  ;;  %v349_v34 = vld [vmem:[#allocation5 + $0x818] sm:$0xff]  ;;  %v340_v35 = vld [vmem:[#allocation5 + $0x7d0] sm:$0xff] }
 0x1ed   :  { %4298 = vmatprep.subr.bf16.mxu1 %v7504_v36  ;;  %4556 = vmatprep.subr.bf16.mxu0 %v7510_v37  ;;  %v352_v36 = vld [vmem:[#allocation5 + $0x830] sm:$0xff]  ;;  %v7623_v37 = vcombine.low %v313_v16, %v325_v18  ;;  %v7648_v40 = vcombine.high %v337_v32, %v349_v34 }
 0x1ee   :  { %v7654_v41 = vcombine.high %v340_v35, %v352_v36  ;;  %v7653_v46 = vcombine.low %v340_v35, %v352_v36  ;;  %v481_v36 = vld [vmem:[#allocation5 + $0xc38] sm:$0xff] }
 0x1f0   :  { %4299 = vmatpush1.bf16.msra.mxu1 %v7503_v43  ;;  %4557 = vmatpush1.bf16.msra.mxu0 %v7509_v44  ;;  %v373_v43 = vld [vmem:[#allocation5 + $0x8d8] sm:$0xff]  ;;  %v364_v44 = vld [vmem:[#allocation5 + $0x890] sm:$0xff] }
 0x1f1   :  { %4300 = vmatprep.subr.bf16.mxu1 %v7528_v45  ;;  %4558 = vmatprep.subr.bf16.mxu0 %v7534_v56  ;;  %v376_v45 = vld [vmem:[#allocation5 + $0x8f0] sm:$0xff]  ;;  %v7647_v56 = vcombine.low %v337_v32, %v349_v34  ;;  %v7672_v47 = vcombine.high %v361_v42, %v373_v43 }
 0x1f2   :  { %v9347_v52 = vpop.f32.mrb[4].mxu1  ;;  %v9351_v60 = vpop.f32.mrb[4].mxu0  ;;  %v7678_v48 = vcombine.high %v364_v44, %v376_v45  ;;  %v7677_v54 = vcombine.low %v364_v44, %v376_v45  ;;  %v505_v45 = vld [vmem:[#allocation5 + $0xcf8] sm:$0xff] }
 0x1f3   :  { %v9349_v57 = vpop.f32.mrb[5].mxu1  ;;  %v9355_v62 = vpop.f32.mrb[5].mxu0 }
 0x1f4   :  { %v9353_v39 = vpop.f32.mrb[6].mxu1  ;;  %4301 = vmatpush1.bf16.msra.mxu1 %v7527_v50  ;;  %4559 = vmatpush1.bf16.msra.mxu0 %v7533_v31  ;;  %v9359_v2 = vpop.f32.mrb[6].mxu0  ;;  %v397_v50 = vld [vmem:[#allocation5 + $0x998] sm:$0xff]  ;;  %v388_v31 = vld [vmem:[#allocation5 + $0x950] sm:$0xff] }
 0x1f5   :  { %v9357_v63 = vpop.f32.mrb[7].mxu1  ;;  %4302 = vmatprep.subr.bf16.mxu1 %v7552_v51  ;;  %4560 = vmatprep.subr.bf16.mxu0 %v7558_v53  ;;  %v9361_v6 = vpop.f32.mrb[7].mxu0  ;;  %v400_v51 = vld [vmem:[#allocation5 + $0x9b0] sm:$0xff]  ;;  %v7671_v53 = vcombine.low %v361_v42, %v373_v43  ;;  %v7696_v55 = vcombine.high %v385_v49, %v397_v50 }
 0x1f6   :  { %v7702_v58 = vcombine.high %v388_v31, %v400_v51  ;;  %v7701_v5 = vcombine.low %v388_v31, %v400_v51  ;;  %v672_v31 = vlaneseq }
 0x1f8   :  { %4303 = vmatpush1.bf16.msra.mxu1 %v7551_v61  ;;  %4561 = vmatpush1.bf16.msra.mxu0 %v7557_v0  ;;  %v421_v61 = vld [vmem:[#allocation5 + $0xa58] sm:$0xff]  ;;  %v412_v0 = vld [vmem:[#allocation5 + $0xa10] sm:$0xff] }
 0x1f9   :  { %4304 = vmatprep.subr.bf16.mxu1 %v7576_v1  ;;  %4562 = vmatprep.subr.bf16.mxu0 %v7582_v3  ;;  %v424_v1 = vld [vmem:[#allocation5 + $0xa70] sm:$0xff]  ;;  %v7695_v3 = vcombine.low %v385_v49, %v397_v50  ;;  %v7720_v38 = vcombine.high %v409_v59, %v421_v61 }
 0x1fa   :  { %v7726_v7 = vcombine.high %v412_v0, %v424_v1  ;;  %v7725_v16 = vcombine.low %v412_v0, %v424_v1 }
 0x1fc   :  { %4305 = vmatpush1.bf16.msra.mxu1 %v7575_v9  ;;  %4563 = vmatpush1.bf16.msra.mxu0 %v7581_v11  ;;  %v445_v9 = vld [vmem:[#allocation5 + $0xb18] sm:$0xff]  ;;  %v436_v11 = vld [vmem:[#allocation5 + $0xad0] sm:$0xff] }
 0x1fd   :  { %4306 = vmatprep.subr.bf16.mxu1 %v7600_v12  ;;  %4564 = vmatprep.subr.bf16.mxu0 %v7606_v15  ;;  %v448_v12 = vld [vmem:[#allocation5 + $0xb30] sm:$0xff]  ;;  %v7719_v15 = vcombine.low %v409_v59, %v421_v61  ;;  %v7744_v18 = vcombine.high %v433_v8, %v445_v9 }
 0x1fe   :  { %v7750_v19 = vcombine.high %v436_v11, %v448_v12  ;;  %v7749_v32 = vcombine.low %v436_v11, %v448_v12  ;;  %v544_v59 = vld [vmem:[#allocation5 + $0xe30] sm:$0xff] }
 0x200   :  { %4307 = vmatpush1.bf16.msra.mxu1 %v7599_v25  ;;  %4565 = vmatpush1.bf16.msra.mxu0 %v7605_v26  ;;  %v469_v25 = vld [vmem:[#allocation5 + $0xbd8] sm:$0xff]  ;;  %v460_v26 = vld [vmem:[#allocation5 + $0xb90] sm:$0xff] }
 0x201   :  { %4308 = vmatprep.subr.bf16.mxu1 %v7624_v28  ;;  %4566 = vmatprep.subr.bf16.mxu0 %v7630_v30  ;;  %v472_v28 = vld [vmem:[#allocation5 + $0xbf0] sm:$0xff]  ;;  %v7743_v30 = vcombine.low %v433_v8, %v445_v9  ;;  %v7768_v34 = vcombine.high %v457_v22, %v469_v25 }
 0x202   :  { %v7774_v35 = vcombine.high %v460_v26, %v472_v28  ;;  %v7773_v42 = vcombine.low %v460_v26, %v472_v28  ;;  %v556_v8 = vld [vmem:[#allocation5 + $0xe90] sm:$0xff] }
 0x203   :  { %v568_v9 = vld [vmem:[#allocation5 + $0xef0] sm:$0xff] }
 0x204   :  { %4309 = vmatpush1.bf16.msra.mxu1 %v7623_v37  ;;  %4567 = vmatpush1.bf16.msra.mxu0 %v7629_v10  ;;  %v493_v37 = vld [vmem:[#allocation5 + $0xc98] sm:$0xff]  ;;  %v484_v10 = vld [vmem:[#allocation5 + $0xc50] sm:$0xff] }
 0x205   :  { %4310 = vmatprep.subr.bf16.mxu1 %v7648_v40  ;;  %4568 = vmatprep.subr.bf16.mxu0 %v7654_v41  ;;  %v496_v40 = vld [vmem:[#allocation5 + $0xcb0] sm:$0xff]  ;;  %v7767_v41 = vcombine.low %v457_v22, %v469_v25  ;;  %v7792_v43 = vcombine.high %v481_v36, %v493_v37  ;;  %v589_v22 = vld [vmem:[#allocation5 + $0xf98] sm:$0xff]  ;;  %v9374_v25 = vld [vmem:[#allocation7] sm:$0xff] }
 0x206   :  { %v7798_v44 = vcombine.high %v484_v10, %v496_v40  ;;  %v7797_v49 = vcombine.low %v484_v10, %v496_v40  ;;  %v580_v28 = vld [vmem:[#allocation5 + $0xf50] sm:$0xff]  ;;  %v601_v10 = vld [vmem:[#allocation5 + $0xff8] sm:$0xff] }
 0x207   :  { %v613_v40 = vld [vmem:[#allocation5 + $0x1058] sm:$0xff] }
 0x208   :  { %4311 = vmatpush1.bf16.msra.mxu1 %v7647_v56  ;;  %4569 = vmatpush1.bf16.msra.mxu0 %v7653_v46  ;;  %v517_v56 = vld [vmem:[#allocation5 + $0xd58] sm:$0xff]  ;;  %v508_v46 = vld [vmem:[#allocation5 + $0xd10] sm:$0xff] }
 0x209   :  { %4312 = vmatprep.subr.bf16.mxu1 %v7672_v47  ;;  %4570 = vmatprep.subr.bf16.mxu0 %v7678_v48  ;;  %v520_v47 = vld [vmem:[#allocation5 + $0xd70] sm:$0xff]  ;;  %v7791_v48 = vcombine.low %v481_v36, %v493_v37  ;;  %v7816_v50 = vcombine.high %v505_v45, %v517_v56  ;;  %v7815_v61 = vcombine.low %v505_v45, %v517_v56 }
 0x20a   :  { %v7822_v51 = vcombine.high %v508_v46, %v520_v47  ;;  %v7821_v0 = vcombine.low %v508_v46, %v520_v47  ;;  %v7912_v56 = vcombine.high %v601_v10, %v613_v40 }
 0x20c   :  { %4313 = vmatpush1.bf16.msra.mxu1 %v7671_v53  ;;  %4571 = vmatpush1.bf16.msra.mxu0 %v7677_v54  ;;  %v529_v53 = vld [vmem:[#allocation5 + $0xdb8] sm:$0xff] }
 0x20d   :  { %4314 = vmatprep.subr.bf16.mxu1 %v7696_v55  ;;  %4572 = vmatprep.subr.bf16.mxu0 %v7702_v58  ;;  %v541_v54 = vld [vmem:[#allocation5 + $0xe18] sm:$0xff]  ;;  %v9363_v55 = vld [vmem:[#allocation2] ss:$12 sps:$4 sm:$0xff]  }
 0x20e   :  { %v532_v58 = vld [vmem:[#allocation5 + $0xdd0] sm:$0xff]  ;;  %v7840_v1 = vcombine.high %v529_v53, %v541_v54  ;;  %v7839_v11 = vcombine.low %v529_v53, %v541_v54  ;;  %v7911_v54 = vcombine.low %v601_v10, %v613_v40  ;;  %v147_v40 = vld [vmem:[#allocation5 + $0x1c8] sm:$0xff] }
 0x20f   :  { %v7845_v12 = vcombine.low %v532_v58, %v544_v59  ;;  %v8555_v10 = vld [vmem:[#allocation8 + $0x1c] ss:$12 sps:$4 sm:$0xff]  }
 0x210   :  { %4315 = vmatpush1.bf16.msra.mxu1 %v7695_v3  ;;  %4573 = vmatpush1.bf16.msra.mxu0 %v7701_v5  ;;  %v9367_v3 = vshrl.u32 %v672_v31, 7  ;;  %v7846_v5 = vcombine.high %v532_v58, %v544_v59  ;;  %v628_v31 = vld [vmem:[#allocation5 + $0x10d0] sm:$0xff] }
 0x211   :  { %4316 = vmatprep.subr.bf16.mxu1 %v7720_v38  ;;  %4574 = vmatprep.subr.bf16.mxu0 %v7726_v7  ;;  %v553_v38 = vld [vmem:[#allocation5 + $0xe78] sm:$0xff] }
 0x212   :  { %v565_v7 = vld [vmem:[#allocation5 + $0xed8] sm:$0xff]  ;;  %v9377_v26 = vsub.s32 1, %v9367_v3 }
 0x214   :  { %4317 = vmatpush1.bf16.msra.mxu1 %v7719_v15  ;;  %4575 = vmatpush1.bf16.msra.mxu0 %v7725_v16  ;;  %v7864_v15 = vcombine.high %v553_v38, %v565_v7  ;;  %v9372_v16 = vsub.s32 0, %v9367_v3 }
 0x215   :  { %4318 = vmatprep.subr.bf16.mxu1 %v7744_v18  ;;  %4576 = vmatprep.subr.bf16.mxu0 %v7750_v19  ;;  %v7870_v18 = vcombine.high %v556_v8, %v568_v9  ;;  %v577_v19 = vld [vmem:[#allocation5 + $0xf38] sm:$0xff] }
 0x216   :  { %v675_v36 = vrot.slane %v9374_v25, %v9372_v16 }
 0x218   :  { %4319 = vmatpush1.bf16.msra.mxu1 %v7743_v30  ;;  %4577 = vmatpush1.bf16.msra.mxu0 %v7749_v32  ;;  %v592_v30 = vld [vmem:[#allocation5 + $0xfb0] sm:$0xff]  ;;  %v7863_v32 = vcombine.low %v553_v38, %v565_v7  ;;  %v9384_v46 = vadd.f32 %v9319_v13, %v675_v36  ;;  %v9390_v53 = vadd.f32 %v9325_v21, %v675_v36  ;;  %v8550_v36 = vld [vmem:[#allocation8] ss:$12 sps:$4 sm:$0xff]  }
 0x219   :  { %4320 = vmatprep.subr.bf16.mxu1 %v7768_v34  ;;  %4578 = vmatprep.subr.bf16.mxu0 %v7774_v35  ;;  %v7869_v34 = vcombine.low %v556_v8, %v568_v9  ;;  %v7888_v35 = vcombine.high %v577_v19, %v589_v22  ;;  %v7894_v37 = vcombine.high %v580_v28, %v592_v30  ;;  %v652_v38 = vld [vmem:[#allocation5 + $0x1190] sm:$0xff] }
 0x21a   :  { %v7893_v45 = vcombine.low %v580_v28, %v592_v30  ;;  %v664_v21 = vld [vmem:[#allocation5 + $0x11f0] sm:$0xff]  ;;  %v7981_v7 = vmul.f32 -1.442695, %v9390_v53  ;;  %v8552_v30 = vld [vmem:[#allocation8 + $0x4] ss:$12 sps:$4 sm:$0xff]  }
 0x21c   :  { %4321 = vmatpush1.bf16.msra.mxu1 %v7767_v41  ;;  %4579 = vmatpush1.bf16.msra.mxu0 %v7773_v42  ;;  %v679_v41 = vrot.slane %v9374_v25, %v9377_v26  ;;  %v604_v42 = vld [vmem:[#allocation5 + $0x1010] sm:$0xff] }
 0x21d   :  { %4333 = vmatprep.subr.bf16.mxu1 %v7792_v43  ;;  %4591 = vmatprep.subr.bf16.mxu0 %v7798_v44  ;;  %v616_v43 = vld [vmem:[#allocation5 + $0x1070] sm:$0xff]  ;;  %v7887_v44 = vcombine.low %v577_v19, %v589_v22  ;;  %v7965_v22 = vcombine.low %v652_v38, %v664_v21 }
 0x21e   :  { %v7918_v47 = vcombine.high %v604_v42, %v616_v43  ;;  %v9393_v58 = vadd.f32 %v9329_v24, %v679_v41  ;;  %v7917_v13 = vcombine.low %v604_v42, %v616_v43 }
 0x21f   :  { %4323 = vmatmul.mubr.bf16.vlgmr.msra.gmra.mrb[16].mxu1 %v9363_v55  ;;  %4581 = vmatmul.mubr.bf16.vlgmr.msra.gmra.mrb[16].mxu0 %v9363_v55 }
 0x220   :  { %4334 = vmatpush1.bf16.msra.mxu1 %v7791_v48  ;;  %4592 = vmatpush1.bf16.msra.mxu0 %v7797_v49  ;;  %v625_v48 = vld [vmem:[#allocation5 + $0x10b8] sm:$0xff]  ;;  %v7982_v24 = vmul.f32 -1.442695, %v9393_v58 }
 0x221   :  { %4335 = vmatprep.subr.bf16.mxu1 %v7816_v50  ;;  %4593 = vmatprep.subr.bf16.mxu0 %v7822_v51  ;;  %v637_v49 = vld [vmem:[#allocation5 + $0x1118] sm:$0xff]  ;;  %v9387_v50 = vadd.f32 %v9321_v17, %v679_v41  ;;  %v640_v51 = vld [vmem:[#allocation5 + $0x1130] sm:$0xff]  ;;  %v159_v41 = vld [vmem:[#allocation5 + $0x228] sm:$0xff] }
 0x222   :  { %4365 = vmatprep.mubr.bf16.mxu1 %v9191_v29  ;;  %4623 = vmatprep.mubr.bf16.mxu0 %v9191_v29  ;;  %v7936_v59 = vcombine.high %v625_v48, %v637_v49  ;;  %v649_v17 = vld [vmem:[#allocation5 + $0x1178] sm:$0xff]  ;;  %v7935_v8 = vcombine.low %v625_v48, %v637_v49  ;;  %v7941_v9 = vcombine.low %v628_v31, %v640_v51  ;;  %v171_v49 = vld [vmem:[#allocation5 + $0x288] sm:$0xff] }
 0x223   :  { %v8558_v48 = vld [vmem:[#allocation8 + $0x34] ss:$12 sps:$4 sm:$0xff]  }
 0x224   :  { %4336 = vmatpush1.bf16.msra.mxu1 %v7815_v61  ;;  %4594 = vmatpush1.bf16.msra.mxu0 %v7821_v0  ;;  %v7969_v61 = vmul.f32 -1.442695, %v9384_v46  ;;  %v7942_v0 = vcombine.high %v628_v31, %v640_v51  ;;  %v183_v31 = vld [vmem:[#allocation5 + $0x2e8] sm:$0xff] }
 0x225   :  { %4337 = vmatprep.subr.bf16.mxu1 %v7840_v1  ;;  %4595 = vmatprep.subr.bf16.mxu0 %v7846_v5  ;;  %v661_v1 = vld [vmem:[#allocation5 + $0x11d8] sm:$0xff]  ;;  %v7970_v5 = vmul.f32 -1.442695, %v9387_v50 }
 0x226   :  { %8934 = vpow2.f32 %v7969_v61  ;;  %v7959_v19 = vcombine.low %v649_v17, %v661_v1  ;;  %v8556_v61 = vld [vmem:[#allocation8 + $0x30] ss:$12 sps:$4 sm:$0xff]  }
 0x227   :  { %8936 = vpow2.f32 %v7970_v5  ;;  %v195_v5 = vld [vmem:[#allocation5 + $0x348] sm:$0xff] }
 0x228   :  { %4338 = vmatpush1.bf16.msra.mxu1 %v7839_v11  ;;  %4596 = vmatpush1.bf16.msra.mxu0 %v7845_v12  ;;  %v7960_v11 = vcombine.high %v649_v17, %v661_v1  ;;  %v7966_v12 = vcombine.high %v652_v38, %v664_v21  ;;  %8938 = vpow2.f32 %v7981_v7  ;;  %v8561_v1 = vld [vmem:[#allocation8 + $0x4c] ss:$12 sps:$4 sm:$0xff]   ;;  %v207_v38 = vld [vmem:[#allocation5 + $0x3a8] sm:$0xff]  ;;  %v7483_v21 = vcombine.low %v171_v49, %v183_v31 }
 0x229   :  { %4339 = vmatprep.subr.bf16.mxu1 %v7864_v15  ;;  %4597 = vmatprep.subr.bf16.mxu0 %v7870_v18  ;;  %v99_v15 = vld [vmem:[#allocation5 + $0x48] sm:$0xff]  ;;  %8940 = vpow2.f32 %v7982_v24  ;;  %v7508_v7 = vcombine.high %v195_v5, %v207_v38 }
 0x22a   :  { %v111_v18 = vld [vmem:[#allocation5 + $0xa8] sm:$0xff] }
 0x22b   :  { %v7412_v28 = vcombine.high %v99_v15, %v111_v18  ;;  %v219_v24 = vld [vmem:[#allocation5 + $0x408] sm:$0xff] }
 0x22c   :  { %4340 = vmatpush1.bf16.msra.mxu1 %v7863_v32  ;;  %4598 = vmatpush1.bf16.msra.mxu0 %v7869_v34  ;;  %v123_v32 = vld [vmem:[#allocation5 + $0x108] sm:$0xff] }
 0x22d   :  { %4341 = vmatprep.subr.bf16.mxu1 %v7888_v35  ;;  %4599 = vmatprep.subr.bf16.mxu0 %v7894_v37  ;;  %v135_v34 = vld [vmem:[#allocation5 + $0x168] sm:$0xff]  ;;  %v7411_v35 = vcombine.low %v99_v15, %v111_v18  ;;  %v9403_v18 = vsub.s32 4, %v9367_v3 }
 0x22e   :  { %v7436_v37 = vcombine.high %v123_v32, %v135_v34  ;;  %v7435_v43 = vcombine.low %v123_v32, %v135_v34  ;;  %v9408_v32 = vld [vmem:[#allocation7 + $0x8] sm:$0xff] }
 0x22f   :  { %v723_v34 = vrot.slane %v9408_v32, %v9403_v18 }
 0x230   :  { %4342 = vmatpush1.bf16.msra.mxu1 %v7887_v44  ;;  %4600 = vmatpush1.bf16.msra.mxu0 %v7893_v45  ;;  %v8935_v42 = vpop.eup %8934  ;;  %v8553_v45 = vld [vmem:[#allocation8 + $0x18] ss:$12 sps:$4 sm:$0xff]  }
 0x231   :  { %4343 = vmatprep.subr.bf16.mxu1 %v7912_v56  ;;  %4601 = vmatprep.subr.bf16.mxu0 %v7918_v47  ;;  %v8937_v44 = vpop.eup %8936  ;;  %v7460_v56 = vcombine.high %v147_v40, %v159_v41 }
 0x232   :  { %v8939_v47 = vpop.eup %8938 }
 0x233   :  { %v8941_v51 = vpop.eup %8940 }
 0x234   :  { %4344 = vmatpush1.bf16.msra.mxu1 %v7911_v54  ;;  %4602 = vmatpush1.bf16.msra.mxu0 %v7917_v13  ;;  %v4792_v54 = vadd.f32 1.0, %v8935_v42  ;;  %v4793_v13 = vadd.f32 1.0, %v8937_v44  ;;  %v4805_v17 = vadd.f32 1.0, %v8941_v51  ;;  %v267_v44 = vld [vmem:[#allocation5 + $0x588] sm:$0xff] }
 0x235   :  { %4345 = vmatprep.subr.bf16.mxu1 %v7936_v59  ;;  %4603 = vmatprep.subr.bf16.mxu0 %v7942_v0  ;;  %v7459_v59 = vcombine.low %v147_v40, %v159_v41  ;;  %v7484_v0 = vcombine.high %v171_v49, %v183_v31 }
 0x236   :  { %8942 = vrcp.f32 %v4792_v54 }
 0x237   :  { %8944 = vrcp.f32 %v4793_v13 }
 0x238   :  { %4346 = vmatpush1.bf16.msra.mxu1 %v7935_v8  ;;  %4604 = vmatpush1.bf16.msra.mxu0 %v7941_v9  ;;  %v8564_v8 = vld [vmem:[#allocation8 + $0x64] ss:$12 sps:$4 sm:$0xff]  }
 0x239   :  { %4347 = vmatprep.subr.bf16.mxu1 %v7960_v11  ;;  %4605 = vmatprep.subr.bf16.mxu0 %v7966_v12  ;;  %v231_v9 = vld [vmem:[#allocation5 + $0x468] sm:$0xff]  ;;  %v7507_v11 = vcombine.low %v195_v5, %v207_v38  ;;  %v8562_v12 = vld [vmem:[#allocation8 + $0x60] ss:$12 sps:$4 sm:$0xff]  }
 0x23a   :  { %v7532_v15 = vcombine.high %v219_v24, %v231_v9 }
 0x23c   :  { %4348 = vmatpush1.bf16.msra.mxu1 %v7959_v19  ;;  %4606 = vmatpush1.bf16.msra.mxu0 %v7965_v22  ;;  %v8567_v19 = vld [vmem:[#allocation8 + $0x7c] ss:$12 sps:$4 sm:$0xff]   ;;  %v243_v22 = vld [vmem:[#allocation5 + $0x4c8] sm:$0xff] }
 0x23d   :  { %4462 = vmatprep.subr.bf16.mxu1 %v7412_v28  ;;  %6861 = vmatprep.subr.bf16.mxu0 %v8552_v30  ;;  %v255_v28 = vld [vmem:[#allocation5 + $0x528] sm:$0xff]  ;;  %v9406_v30 = vsub.s32 5, %v9367_v3 }
 0x23e   :  { %v7556_v40 = vcombine.high %v243_v22, %v255_v28 }
 0x23f   :  { %4366 = vmatmul.mubr.bf16.vlgmr.msra.gmra.mrb[16].mxu1 %v9339_v4  ;;  %4624 = vmatmul.mubr.bf16.vlgmr.msra.gmra.mrb[16].mxu0 %v9339_v4  ;;  %v4804_v4 = vadd.f32 1.0, %v8939_v47 }
 0x240   :  { %4463 = vmatpush1.bf16.msra.mxu1 %v7411_v35  ;;  %6862 = vmatpush1.bf16.msra.mxu0 %v8550_v36  ;;  %v7531_v35 = vcombine.low %v219_v24, %v231_v9  ;;  %v8943_v36 = vpop.eup %8942 }
 0x241   :  { %4464 = vmatprep.subr.bf16.mxu1 %v7436_v37  ;;  %6863 = vmatprep.subr.bf16.mxu0 %v8555_v10  ;;  %8946 = vrcp.f32 %v4804_v4  ;;  %v727_v37 = vrot.slane %v9408_v32, %v9406_v30  ;;  %v8565_v10 = vld [vmem:[#allocation8 + $0x78] ss:$12 sps:$4 sm:$0xff]   ;;  %v8945_v41 = vpop.eup %8944  ;;  %v4864_v31 = vmul.f32 %v8943_v36, %v9384_v46  ;;  %v327_v36 = vld [vmem:[#allocation5 + $0x768] sm:$0xff] }
 0x242   :  { %4494 = vmatprep.mubr.bf16.mxu1 %v9343_v14  ;;  %v8559_v14 = vld [vmem:[#allocation8 + $0x48] ss:$12 sps:$4 sm:$0xff]   ;;  %8948 = vrcp.f32 %v4805_v17  ;;  %v4865_v4 = vmul.f32 %v8945_v41, %v9387_v50 }
 0x243   :  { %v291_v50 = vld [vmem:[#allocation5 + $0x648] sm:$0xff]  ;;  %v8579_v41 = vld [vmem:[#allocation8 + $0xdc] ss:$12 sps:$4 sm:$0xff]  }
 0x244   :  { %4465 = vmatpush1.bf16.msra.mxu1 %v7435_v43  ;;  %6864 = vmatpush1.bf16.msra.mxu0 %v8553_v45  ;;  %v8570_v43 = vld [vmem:[#allocation8 + $0x94] ss:$12 sps:$4 sm:$0xff]  }
 0x245   :  { %4466 = vmatprep.subr.bf16.mxu1 %v7460_v56  ;;  %6865 = vmatprep.subr.bf16.mxu0 %v8558_v48  ;;  %v279_v45 = vld [vmem:[#allocation5 + $0x5e8] sm:$0xff] }
 0x246   :  { %v7580_v5 = vcombine.high %v267_v44, %v279_v45 }
 0x248   :  { %4467 = vmatpush1.bf16.msra.mxu1 %v7459_v59  ;;  %6866 = vmatpush1.bf16.msra.mxu0 %v8556_v61  ;;  %v7555_v59 = vcombine.low %v243_v22, %v255_v28  ;;  %v8571_v22 = vld [vmem:[#allocation8 + $0xa8] ss:$12 sps:$4 sm:$0xff]  }
 0x249   :  { %4468 = vmatprep.subr.bf16.mxu1 %v7484_v0  ;;  %6867 = vmatprep.subr.bf16.mxu0 %v8561_v1  ;;  %v8568_v1 = vld [vmem:[#allocation8 + $0x90] ss:$12 sps:$4 sm:$0xff]  }
 0x24b   :  { %v8947_v56 = vpop.eup %8946 }
 0x24c   :  { %4469 = vmatpush1.bf16.msra.mxu1 %v7483_v21  ;;  %6868 = vmatpush1.bf16.msra.mxu0 %v8559_v14  ;;  %v8949_v49 = vpop.eup %8948  ;;  %v4876_v38 = vmul.f32 %v8947_v56, %v9390_v53  ;;  %v8577_v56 = vld [vmem:[#allocation8 + $0xd8] ss:$12 sps:$4 sm:$0xff]  }
 0x24d   :  { %4470 = vmatprep.subr.bf16.mxu1 %v7508_v7  ;;  %6869 = vmatprep.subr.bf16.mxu0 %v8564_v8  ;;  %v8573_v7 = vld [vmem:[#allocation8 + $0xac] ss:$12 sps:$4 sm:$0xff]   ;;  %v4877_v8 = vmul.f32 %v8949_v49, %v9393_v58  ;;  %v8582_v49 = vld [vmem:[#allocation8 + $0xf4] ss:$12 sps:$4 sm:$0xff]  }
 0x250   :  { %4471 = vmatpush1.bf16.msra.mxu1 %v7507_v11  ;;  %6870 = vmatpush1.bf16.msra.mxu0 %v8562_v12  ;;  %v303_v11 = vld [vmem:[#allocation5 + $0x6a8] sm:$0xff] }
 0x251   :  { %4472 = vmatprep.subr.bf16.mxu1 %v7532_v15  ;;  %6871 = vmatprep.subr.bf16.mxu0 %v8567_v19  ;;  %v7579_v15 = vcombine.low %v267_v44, %v279_v45  ;;  %v7604_v53 = vcombine.high %v291_v50, %v303_v11  ;;  %v7603_v58 = vcombine.low %v291_v50, %v303_v11  ;;  %v351_v44 = vld [vmem:[#allocation5 + $0x828] sm:$0xff]  ;;  %v8591_v50 = vld [vmem:[#allocation8 + $0x13c] ss:$12 sps:$4 sm:$0xff]  }
 0x252   :  { %v9414_v42 = vpop.f32.mrb[8].mxu1  ;;  %v4281_v47 = vpop.f32.mrb[8].mxu0  ;;  %v435_v11 = vld [vmem:[#allocation5 + $0xac8] sm:$0xff] }
 0x253   :  { %v9416_v48 = vpop.f32.mrb[9].mxu1  ;;  %v8437_v51 = vadd.f32 %v4281_v47, %v723_v34  ;;  %v4283_v54 = vpop.f32.mrb[9].mxu0 }
 0x254   :  { %v9419_v13 = vpop.f32.mrb[10].mxu1  ;;  %4473 = vmatpush1.bf16.msra.mxu1 %v7531_v35  ;;  %v8438_v61 = vadd.f32 %v4283_v54, %v727_v37  ;;  %v4285_v0 = vpop.f32.mrb[10].mxu0  ;;  %6872 = vmatpush1.bf16.msra.mxu0 %v8565_v10  ;;  %v315_v35 = vld [vmem:[#allocation5 + $0x708] sm:$0xff] }
 0x255   :  { %v9422_v17 = vpop.f32.mrb[11].mxu1  ;;  %4474 = vmatprep.subr.bf16.mxu1 %v7556_v40  ;;  %v4888_v21 = vmul.f32 %v8437_v51, %v4864_v31  ;;  %v8439_v46 = vadd.f32 %v4285_v0, %v723_v34  ;;  %v4287_v14 = vpop.f32.mrb[11].mxu0  ;;  %6873 = vmatprep.subr.bf16.mxu0 %v8570_v43  ;;  %v8576_v34 = vld [vmem:[#allocation8 + $0xc4] ss:$12 sps:$4 sm:$0xff]   ;;  %v7628_v40 = vcombine.high %v315_v35, %v327_v36 }
 0x256   :  { %v4889_v24 = vmul.f32 %v8438_v61, %v4865_v4  ;;  %v8440_v9 = vadd.f32 %v4287_v14, %v727_v37  ;;  %v8574_v37 = vld [vmem:[#allocation8 + $0xc0] ss:$12 sps:$4 sm:$0xff]   ;;  %v339_v43 = vld [vmem:[#allocation5 + $0x7c8] sm:$0xff]  ;;  %v7627_v45 = vcombine.low %v315_v35, %v327_v36 }
 0x257   :  { %v4900_v12 = vmul.f32 %v8439_v46, %v4876_v38  ;;  %v7652_v47 = vcombine.high %v339_v43, %v351_v44  ;;  %v363_v31 = vld [vmem:[#allocation5 + $0x888] sm:$0xff]  ;;  %v7651_v54 = vcombine.low %v339_v43, %v351_v44  ;;  %v8585_v61 = vld [vmem:[#allocation8 + $0x10c] ss:$12 sps:$4 sm:$0xff]  }
 0x258   :  { %4475 = vmatpush1.bf16.msra.mxu1 %v7555_v59  ;;  %v4901_v19 = vmul.f32 %v8440_v9, %v4877_v8  ;;  %6874 = vmatpush1.bf16.msra.mxu0 %v8568_v1  ;;  %v375_v51 = vld [vmem:[#allocation5 + $0x8e8] sm:$0xff] }
 0x259   :  { %4476 = vmatprep.subr.bf16.mxu1 %v7580_v5  ;;  %v9426_v28 = vpack.c.bf16 %v4900_v12, %v4888_v21  ;;  %6875 = vmatprep.subr.bf16.mxu0 %v8573_v7  ;;  %v8580_v59 = vld [vmem:[#allocation8 + $0xf0] ss:$12 sps:$4 sm:$0xff]   ;;  %v7676_v4 = vcombine.high %v363_v31, %v375_v51  ;;  %v7675_v5 = vcombine.low %v363_v31, %v375_v51  ;;  %v8583_v38 = vld [vmem:[#allocation8 + $0x108] ss:$12 sps:$4 sm:$0xff]  }
 0x25a   :  { %v9428_v10 = vpack.c.bf16 %v4901_v19, %v4889_v24  ;;  %v387_v0 = vld [vmem:[#allocation5 + $0x948] sm:$0xff]  ;;  %v8586_v24 = vld [vmem:[#allocation8 + $0x120] ss:$12 sps:$4 sm:$0xff]   ;;  %v8589_v19 = vld [vmem:[#allocation8 + $0x138] ss:$12 sps:$4 sm:$0xff]  }
 0x25b   :  { %v399_v1 = vld [vmem:[#allocation5 + $0x9a8] sm:$0xff] }
 0x25c   :  { %4477 = vmatpush1.bf16.msra.mxu1 %v7579_v15  ;;  %6876 = vmatpush1.bf16.msra.mxu0 %v8571_v22  ;;  %v7700_v21 = vcombine.high %v387_v0, %v399_v1  ;;  %v8588_v46 = vld [vmem:[#allocation8 + $0x124] ss:$12 sps:$4 sm:$0xff]   ;;  %v7699_v8 = vcombine.low %v387_v0, %v399_v1  ;;  %v8603_v0 = vld [vmem:[#allocation8 + $0x19c] ss:$12 sps:$4 sm:$0xff]  }
 0x25d   :  { %6893 = vmatprep.mubr.bf16.mxu0 %v9428_v10  ;;  %4478 = vmatprep.subr.bf16.mxu1 %v7604_v53  ;;  %v411_v14 = vld [vmem:[#allocation5 + $0xa08] sm:$0xff] }
 0x25e   :  { %6877 = vmatprep.subr.bf16.mxu0 %v8576_v34  ;;  %v423_v7 = vld [vmem:[#allocation5 + $0xa68] sm:$0xff] }
 0x25f   :  { %v7724_v9 = vcombine.high %v411_v14, %v423_v7  ;;  %v447_v12 = vld [vmem:[#allocation5 + $0xb28] sm:$0xff]  ;;  %v7723_v15 = vcombine.low %v411_v14, %v423_v7 }
 0x260   :  { %4479 = vmatpush1.bf16.msra.mxu1 %v7603_v58  ;;  %6878 = vmatpush1.bf16.msra.mxu0 %v8574_v37  ;;  %v7748_v22 = vcombine.high %v435_v11, %v447_v12  ;;  %v8594_v53 = vld [vmem:[#allocation8 + $0x154] ss:$12 sps:$4 sm:$0xff]   ;;  %v7747_v36 = vcombine.low %v435_v11, %v447_v12  ;;  %v8592_v58 = vld [vmem:[#allocation8 + $0x150] ss:$12 sps:$4 sm:$0xff]  }
 0x261   :  { %4480 = vmatprep.subr.bf16.mxu1 %v7628_v40  ;;  %6879 = vmatprep.subr.bf16.mxu0 %v8579_v41  ;;  %v459_v34 = vld [vmem:[#allocation5 + $0xb88] sm:$0xff]  ;;  %v8597_v40 = vld [vmem:[#allocation8 + $0x16c] ss:$12 sps:$4 sm:$0xff]  }
 0x262   :  { %v471_v35 = vld [vmem:[#allocation5 + $0xbe8] sm:$0xff] }
 0x263   :  { %v7772_v37 = vcombine.high %v459_v34, %v471_v35  ;;  %v483_v41 = vld [vmem:[#allocation5 + $0xc48] sm:$0xff]  ;;  %v7771_v44 = vcombine.low %v459_v34, %v471_v35  ;;  %v695_v34 = vrot.slane %v9374_v25, %v9406_v30 }
 0x264   :  { %4481 = vmatpush1.bf16.msra.mxu1 %v7627_v45  ;;  %6880 = vmatpush1.bf16.msra.mxu0 %v8577_v56  ;;  %v495_v43 = vld [vmem:[#allocation5 + $0xca8] sm:$0xff] }
 0x265   :  { %4482 = vmatprep.subr.bf16.mxu1 %v7652_v47  ;;  %6881 = vmatprep.subr.bf16.mxu0 %v8582_v49  ;;  %v8595_v45 = vld [vmem:[#allocation8 + $0x168] ss:$12 sps:$4 sm:$0xff]   ;;  %v7796_v56 = vcombine.high %v483_v41, %v495_v43  ;;  %v8600_v31 = vld [vmem:[#allocation8 + $0x184] ss:$12 sps:$4 sm:$0xff]   ;;  %v7795_v51 = vcombine.low %v483_v41, %v495_v43  ;;  %v8610_v43 = vld [vmem:[#allocation8 + $0x1e0] ss:$12 sps:$4 sm:$0xff]  }
 0x266   :  { %v507_v47 = vld [vmem:[#allocation5 + $0xd08] sm:$0xff] }
 0x267   :  { %v519_v49 = vld [vmem:[#allocation5 + $0xd68] sm:$0xff] }
 0x268   :  { %4483 = vmatpush1.bf16.msra.mxu1 %v7651_v54  ;;  %6882 = vmatpush1.bf16.msra.mxu0 %v8580_v59  ;;  %v7820_v54 = vcombine.high %v507_v47, %v519_v49  ;;  %v531_v59 = vld [vmem:[#allocation5 + $0xdc8] sm:$0xff]  ;;  %v7819_v1 = vcombine.low %v507_v47, %v519_v49  ;;  %v9448_v47 = vadd.f32 %v9333_v33, %v695_v34 }
 0x269   :  { %4484 = vmatprep.subr.bf16.mxu1 %v7676_v4  ;;  %6883 = vmatprep.subr.bf16.mxu0 %v8585_v61  ;;  %v543_v4 = vld [vmem:[#allocation5 + $0xe28] sm:$0xff]  ;;  %v8598_v61 = vld [vmem:[#allocation8 + $0x180] ss:$12 sps:$4 sm:$0xff]  }
 0x26a   :  { %v8606_v14 = vld [vmem:[#allocation8 + $0x1b4] ss:$12 sps:$4 sm:$0xff]   ;;  %v7843_v7 = vcombine.low %v531_v59, %v543_v4  ;;  %v8612_v35 = vld [vmem:[#allocation8 + $0x1e4] ss:$12 sps:$4 sm:$0xff]  }
 0x26b   :  { %v639_v41 = vld [vmem:[#allocation5 + $0x1128] sm:$0xff] }
 0x26c   :  { %4485 = vmatpush1.bf16.msra.mxu1 %v7675_v5  ;;  %6884 = vmatpush1.bf16.msra.mxu0 %v8583_v38  ;;  %v7844_v5 = vcombine.high %v531_v59, %v543_v4  ;;  %v555_v38 = vld [vmem:[#allocation5 + $0xe88] sm:$0xff] }
 0x26d   :  { %4486 = vmatprep.subr.bf16.mxu1 %v7700_v21  ;;  %6885 = vmatprep.subr.bf16.mxu0 %v8588_v46  ;;  %v567_v21 = vld [vmem:[#allocation5 + $0xee8] sm:$0xff]  ;;  %v8601_v46 = vld [vmem:[#allocation8 + $0x198] ss:$12 sps:$4 sm:$0xff]  }
 0x26e   :  { %v7867_v11 = vcombine.low %v555_v38, %v567_v21  ;;  %v8618_v59 = vld [vmem:[#allocation8 + $0x214] ss:$12 sps:$4 sm:$0xff]  }
 0x270   :  { %4487 = vmatpush1.bf16.msra.mxu1 %v7699_v8  ;;  %6886 = vmatpush1.bf16.msra.mxu0 %v8586_v24  ;;  %v7868_v8 = vcombine.high %v555_v38, %v567_v21  ;;  %v591_v24 = vld [vmem:[#allocation5 + $0xfa8] sm:$0xff]  ;;  %v8621_v38 = vld [vmem:[#allocation8 + $0x22c] ss:$12 sps:$4 sm:$0xff]  }
 0x271   :  { %4488 = vmatprep.subr.bf16.mxu1 %v7724_v9  ;;  %6887 = vmatprep.subr.bf16.mxu0 %v8591_v50  ;;  %v8604_v9 = vld [vmem:[#allocation8 + $0x1b0] ss:$12 sps:$4 sm:$0xff]   ;;  %v8609_v50 = vld [vmem:[#allocation8 + $0x1cc] ss:$12 sps:$4 sm:$0xff]  }
 0x274   :  { %4489 = vmatpush1.bf16.msra.mxu1 %v7723_v15  ;;  %6888 = vmatpush1.bf16.msra.mxu0 %v8589_v19  ;;  %v691_v15 = vrot.slane %v9374_v25, %v9403_v18  ;;  %v603_v19 = vld [vmem:[#allocation5 + $0x1008] sm:$0xff] }
 0x275   :  { %4490 = vmatprep.subr.bf16.mxu1 %v7748_v22  ;;  %6889 = vmatprep.subr.bf16.mxu0 %v8594_v53  ;;  %v615_v22 = vld [vmem:[#allocation5 + $0x1068] sm:$0xff] }
 0x276   :  { %v8607_v53 = vld [vmem:[#allocation8 + $0x1c8] ss:$12 sps:$4 sm:$0xff]   ;;  %v9445_v25 = vadd.f32 %v9331_v27, %v691_v15 }
 0x278   :  { %4491 = vmatpush1.bf16.msra.mxu1 %v7747_v36  ;;  %6890 = vmatpush1.bf16.msra.mxu0 %v8592_v58  ;;  %v7916_v58 = vcombine.high %v603_v19, %v615_v22  ;;  %v7985_v27 = vmul.f32 -1.442695, %v9445_v25 }
 0x279   :  { %4492 = vmatprep.subr.bf16.mxu1 %v7772_v37  ;;  %6891 = vmatprep.subr.bf16.mxu0 %v8597_v40  ;;  %v9439_v37 = vadd.f32 %v9323_v20, %v691_v15  ;;  %v627_v40 = vld [vmem:[#allocation5 + $0x10c8] sm:$0xff]  ;;  %v9454_v15 = vld [vmem:[#allocation2 + $0x8] ss:$12 sps:$4 sm:$0xff]  }
 0x27a   :  { %v7940_v20 = vcombine.high %v627_v40, %v639_v41  ;;  %v7939_v4 = vcombine.low %v627_v40, %v639_v41  ;;  %v173_v40 = vld [vmem:[#allocation5 + $0x298] sm:$0xff] }
 0x27b   :  { %v7973_v49 = vmul.f32 -1.442695, %v9439_v37  ;;  %v185_v41 = vld [vmem:[#allocation5 + $0x2f8] sm:$0xff] }
 0x27c   :  { %4493 = vmatpush1.bf16.msra.mxu1 %v7771_v44  ;;  %6892 = vmatpush1.bf16.msra.mxu0 %v8595_v45  ;;  %v9442_v44 = vadd.f32 %v9327_v23, %v695_v34  ;;  %v8615_v45 = vld [vmem:[#allocation8 + $0x1fc] ss:$12 sps:$4 sm:$0xff]   ;;  %v9037_v34 = vld [vmem:[#allocation2 + $0x4] ss:$12 sps:$4 sm:$0xff]  }
 0x27d   :  { %4505 = vmatprep.subr.bf16.mxu1 %v7796_v56  ;;  %6904 = vmatprep.subr.bf16.mxu0 %v8600_v31  ;;  %v7915_v56 = vcombine.low %v603_v19, %v615_v22  ;;  %v651_v31 = vld [vmem:[#allocation5 + $0x1188] sm:$0xff]  ;;  %8950 = vpow2.f32 %v7973_v49  ;;  %v8628_v19 = vld [vmem:[#allocation8 + $0x25c] ss:$12 sps:$4 sm:$0xff]  }
 0x27e   :  { %v7974_v23 = vmul.f32 -1.442695, %v9442_v44 }
 0x27f   :  { %4495 = vmatmul.mubr.bf16.vlgmr.msra.gmra.mrb[20].mxu1 %v9363_v55  ;;  %6894 = vmatmul.mubr.bf16.vlgmr.msra.gmra.mrb[20].mxu0 %v9426_v28  ;;  %v579_v55 = vld [vmem:[#allocation5 + $0xf48] sm:$0xff] }
 0x280   :  { %4506 = vmatpush1.bf16.msra.mxu1 %v7795_v51  ;;  %4537 = vmatprep.mubr.bf16.mxu1 %v9191_v29  ;;  %v7892_v12 = vcombine.high %v579_v55, %v591_v24  ;;  %v7891_v36 = vcombine.low %v579_v55, %v591_v24  ;;  %v663_v51 = vld [vmem:[#allocation5 + $0x11e8] sm:$0xff]  ;;  %8952 = vpow2.f32 %v7974_v23 }
 0x281   :  { %4507 = vmatprep.subr.bf16.mxu1 %v7820_v54  ;;  %6905 = vmatpush1.bf16.msra.mxu0 %v8598_v61  ;;  %v8613_v54 = vld [vmem:[#allocation8 + $0x1f8] ss:$12 sps:$4 sm:$0xff]   ;;  %v7986_v61 = vmul.f32 -1.442695, %v9448_v47  ;;  %v7964_v33 = vcombine.high %v651_v31, %v663_v51  ;;  %8954 = vpow2.f32 %v7985_v27  ;;  %v7963_v21 = vcombine.low %v651_v31, %v663_v51 }
 0x282   :  { %6906 = vmatprep.subr.bf16.mxu0 %v8603_v0  ;;  %v101_v0 = vld [vmem:[#allocation5 + $0x58] sm:$0xff] }
 0x283   :  { %8956 = vpow2.f32 %v7986_v61  ;;  %v8624_v55 = vld [vmem:[#allocation8 + $0x244] ss:$12 sps:$4 sm:$0xff]   ;;  %v8638_v61 = vld [vmem:[#allocation8 + $0x28c] ss:$12 sps:$4 sm:$0xff]  }
 0x284   :  { %4508 = vmatpush1.bf16.msra.mxu1 %v7819_v1  ;;  %v113_v1 = vld [vmem:[#allocation5 + $0xb8] sm:$0xff] }
 0x285   :  { %4509 = vmatprep.subr.bf16.mxu1 %v7844_v5  ;;  %6907 = vmatpush1.bf16.msra.mxu0 %v8601_v46  ;;  %v8616_v5 = vld [vmem:[#allocation8 + $0x210] ss:$12 sps:$4 sm:$0xff]   ;;  %v7416_v46 = vcombine.high %v101_v0, %v113_v1  ;;  %v7415_v24 = vcombine.low %v101_v0, %v113_v1  ;;  %v209_v27 = vld [vmem:[#allocation5 + $0x3b8] sm:$0xff] }
 0x286   :  { %6908 = vmatprep.subr.bf16.mxu0 %v8606_v14  ;;  %v125_v14 = vld [vmem:[#allocation5 + $0x118] sm:$0xff] }
 0x287   :  { %v8951_v22 = vpop.eup %8950  ;;  %v221_v1 = vld [vmem:[#allocation5 + $0x418] sm:$0xff] }
 0x288   :  { %4510 = vmatpush1.bf16.msra.mxu1 %v7843_v7  ;;  %v137_v7 = vld [vmem:[#allocation5 + $0x178] sm:$0xff] }
 0x289   :  { %4511 = vmatprep.subr.bf16.mxu1 %v7868_v8  ;;  %6909 = vmatpush1.bf16.msra.mxu0 %v8604_v9  ;;  %v8619_v8 = vld [vmem:[#allocation8 + $0x228] ss:$12 sps:$4 sm:$0xff]   ;;  %v7440_v9 = vcombine.high %v125_v14, %v137_v7 }
 0x28a   :  { %6910 = vmatprep.subr.bf16.mxu0 %v8609_v50  ;;  %v149_v50 = vld [vmem:[#allocation5 + $0x1d8] sm:$0xff] }
 0x28c   :  { %4512 = vmatpush1.bf16.msra.mxu1 %v7867_v11  ;;  %v161_v11 = vld [vmem:[#allocation5 + $0x238] sm:$0xff] }
 0x28d   :  { %4513 = vmatprep.subr.bf16.mxu1 %v7892_v12  ;;  %6911 = vmatpush1.bf16.msra.mxu0 %v8607_v53  ;;  %v8622_v12 = vld [vmem:[#allocation8 + $0x240] ss:$12 sps:$4 sm:$0xff]   ;;  %v7439_v53 = vcombine.low %v125_v14, %v137_v7  ;;  %v7463_v31 = vcombine.low %v149_v50, %v161_v11  ;;  %v9457_v14 = vld [vmem:[#allocation7 + $0x10] sm:$0xff] }
 0x28e   :  { %6912 = vmatprep.subr.bf16.mxu0 %v8612_v35  ;;  %v8953_v35 = vpop.eup %8952 }
 0x28f   :  { %v4797_v49 = vadd.f32 1.0, %v8953_v35  ;;  %v269_v35 = vld [vmem:[#allocation5 + $0x598] sm:$0xff] }
 0x290   :  { %4514 = vmatpush1.bf16.msra.mxu1 %v7891_v36  ;;  %v7464_v36 = vcombine.high %v149_v50, %v161_v11  ;;  %v739_v50 = vrot.slane %v9457_v14, %v9372_v16 }
 0x291   :  { %4515 = vmatprep.subr.bf16.mxu1 %v7916_v58  ;;  %6913 = vmatpush1.bf16.msra.mxu0 %v8610_v43  ;;  %v8955_v58 = vpop.eup %8954  ;;  %v8626_v43 = vld [vmem:[#allocation8 + $0x258] ss:$12 sps:$4 sm:$0xff]  }
 0x292   :  { %6914 = vmatprep.subr.bf16.mxu0 %v8615_v45  ;;  %v8957_v45 = vpop.eup %8956  ;;  %v4808_v51 = vadd.f32 1.0, %v8955_v58  ;;  %v8646_v58 = vld [vmem:[#allocation8 + $0x2b8] ss:$12 sps:$4 sm:$0xff]  }
 0x293   :  { %v4809_v23 = vadd.f32 1.0, %v8957_v45  ;;  %v8653_v45 = vld [vmem:[#allocation8 + $0x2d4] ss:$12 sps:$4 sm:$0xff]  }
 0x294   :  { %4516 = vmatpush1.bf16.msra.mxu1 %v7915_v56  ;;  %v4796_v56 = vadd.f32 1.0, %v8951_v22 }
 0x295   :  { %4517 = vmatprep.subr.bf16.mxu1 %v7940_v20  ;;  %6915 = vmatpush1.bf16.msra.mxu0 %v8613_v54  ;;  %v8633_v20 = vld [vmem:[#allocation8 + $0x274] ss:$12 sps:$4 sm:$0xff]   ;;  %v7488_v54 = vcombine.high %v173_v40, %v185_v41 }
 0x296   :  { %6916 = vmatprep.subr.bf16.mxu0 %v8618_v59  ;;  %v197_v59 = vld [vmem:[#allocation5 + $0x358] sm:$0xff]  ;;  %8958 = vrcp.f32 %v4796_v56 }
 0x297   :  { %8960 = vrcp.f32 %v4797_v49  ;;  %v7512_v0 = vcombine.high %v197_v59, %v209_v27 }
 0x298   :  { %4518 = vmatpush1.bf16.msra.mxu1 %v7939_v4  ;;  %v8631_v4 = vld [vmem:[#allocation8 + $0x270] ss:$12 sps:$4 sm:$0xff]   ;;  %8962 = vrcp.f32 %v4808_v51 }
 0x299   :  { %4519 = vmatprep.subr.bf16.mxu1 %v7964_v33  ;;  %6917 = vmatpush1.bf16.msra.mxu0 %v8616_v5  ;;  %v7487_v33 = vcombine.low %v173_v40, %v185_v41  ;;  %8964 = vrcp.f32 %v4809_v23  ;;  %v233_v5 = vld [vmem:[#allocation5 + $0x478] sm:$0xff] }
 0x29a   :  { %6918 = vmatprep.subr.bf16.mxu0 %v8621_v38  ;;  %v8636_v38 = vld [vmem:[#allocation8 + $0x288] ss:$12 sps:$4 sm:$0xff]   ;;  %v7536_v7 = vcombine.high %v221_v1, %v233_v5  ;;  %v7535_v11 = vcombine.low %v221_v1, %v233_v5 }
 0x29c   :  { %4520 = vmatpush1.bf16.msra.mxu1 %v7963_v21  ;;  %v8643_v21 = vld [vmem:[#allocation8 + $0x2a4] ss:$12 sps:$4 sm:$0xff]  }
 0x29d   :  { %4634 = vmatprep.subr.bf16.mxu1 %v7416_v46  ;;  %6919 = vmatpush1.bf16.msra.mxu0 %v8619_v8  ;;  %v7511_v46 = vcombine.low %v197_v59, %v209_v27  ;;  %v245_v8 = vld [vmem:[#allocation5 + $0x4d8] sm:$0xff] }
 0x29e   :  { %6920 = vmatprep.subr.bf16.mxu0 %v8624_v55  ;;  %v257_v55 = vld [vmem:[#allocation5 + $0x538] sm:$0xff] }
 0x29f   :  { %4538 = vmatmul.mubr.bf16.vlgmr.msra.gmra.mrb[20].mxu1 %v9454_v15  ;;  %v7560_v22 = vcombine.high %v245_v8, %v257_v55 }
 0x2a0   :  { %4635 = vmatpush1.bf16.msra.mxu1 %v7415_v24  ;;  %4666 = vmatprep.mubr.bf16.mxu1 %v9037_v34  ;;  %v8641_v24 = vld [vmem:[#allocation8 + $0x2a0] ss:$12 sps:$4 sm:$0xff]  }
 0x2a1   :  { %4636 = vmatprep.subr.bf16.mxu1 %v7440_v9  ;;  %6921 = vmatpush1.bf16.msra.mxu0 %v8622_v12  ;;  %v8648_v9 = vld [vmem:[#allocation8 + $0x2bc] ss:$12 sps:$4 sm:$0xff]   ;;  %v8959_v12 = vpop.eup %8958 }
 0x2a2   :  { %6922 = vmatprep.subr.bf16.mxu0 %v8628_v19  ;;  %v743_v19 = vrot.slane %v9457_v14, %v9377_v26 }
 0x2a4   :  { %4637 = vmatpush1.bf16.msra.mxu1 %v7439_v53  ;;  %v8961_v53 = vpop.eup %8960 }
 0x2a5   :  { %4638 = vmatprep.subr.bf16.mxu1 %v7464_v36  ;;  %6923 = vmatpush1.bf16.msra.mxu0 %v8626_v43  ;;  %v281_v36 = vld [vmem:[#allocation5 + $0x5f8] sm:$0xff]  ;;  %v8963_v40 = vpop.eup %8962  ;;  %v4869_v23 = vmul.f32 %v8961_v53, %v9442_v44  ;;  %v8658_v44 = vld [vmem:[#allocation8 + $0x2ec] ss:$12 sps:$4 sm:$0xff]  }
 0x2a6   :  { %6924 = vmatprep.subr.bf16.mxu0 %v8633_v20  ;;  %v8965_v56 = vpop.eup %8964  ;;  %v4868_v20 = vmul.f32 %v8959_v12, %v9439_v37  ;;  %v293_v37 = vld [vmem:[#allocation5 + $0x658] sm:$0xff] }
 0x2a7   :  { %v329_v12 = vld [vmem:[#allocation5 + $0x778] sm:$0xff] }
 0x2a8   :  { %4639 = vmatpush1.bf16.msra.mxu1 %v7463_v31  ;;  %v8663_v53 = vld [vmem:[#allocation8 + $0x304] ss:$12 sps:$4 sm:$0xff]  }
 0x2a9   :  { %4640 = vmatprep.subr.bf16.mxu1 %v7488_v54  ;;  %6925 = vmatpush1.bf16.msra.mxu0 %v8631_v4  ;;  %v7559_v54 = vcombine.low %v245_v8, %v257_v55 }
 0x2aa   :  { %6926 = vmatprep.subr.bf16.mxu0 %v8638_v61  ;;  %v7584_v61 = vcombine.high %v269_v35, %v281_v36 }
 0x2ac   :  { %4641 = vmatpush1.bf16.msra.mxu1 %v7487_v33  ;;  %v4880_v33 = vmul.f32 %v8963_v40, %v9445_v25  ;;  %v341_v40 = vld [vmem:[#allocation5 + $0x7d8] sm:$0xff] }
 0x2ad   :  { %4642 = vmatprep.subr.bf16.mxu1 %v7512_v0  ;;  %6927 = vmatpush1.bf16.msra.mxu0 %v8636_v38  ;;  %v305_v38 = vld [vmem:[#allocation5 + $0x6b8] sm:$0xff] }
 0x2ae   :  { %6928 = vmatprep.subr.bf16.mxu0 %v8643_v21  ;;  %v8651_v21 = vld [vmem:[#allocation8 + $0x2d0] ss:$12 sps:$4 sm:$0xff]  }
 0x2b0   :  { %4643 = vmatpush1.bf16.msra.mxu1 %v7511_v46  ;;  %v4881_v46 = vmul.f32 %v8965_v56, %v9448_v47  ;;  %v7607_v47 = vcombine.low %v293_v37, %v305_v38  ;;  %v377_v56 = vld [vmem:[#allocation5 + $0x8f8] sm:$0xff] }
 0x2b1   :  { %4644 = vmatprep.subr.bf16.mxu1 %v7536_v7  ;;  %6929 = vmatpush1.bf16.msra.mxu0 %v8641_v24  ;;  %v7583_v24 = vcombine.low %v269_v35, %v281_v36 }
 0x2b2   :  { %v9463_v34 = vpop.f32.mrb[12].mxu1  ;;  %v4453_v41 = vpop.f32.mrb[12].mxu0  ;;  %6930 = vmatprep.subr.bf16.mxu0 %v8648_v9 }
 0x2b3   :  { %v9465_v43 = vpop.f32.mrb[13].mxu1  ;;  %v8445_v49 = vadd.f32 %v4453_v41, %v739_v50  ;;  %v4455_v31 = vpop.f32.mrb[13].mxu0  ;;  %v353_v41 = vld [vmem:[#allocation5 + $0x838] sm:$0xff] }
 0x2b4   :  { %v9468_v51 = vpop.f32.mrb[14].mxu1  ;;  %4645 = vmatpush1.bf16.msra.mxu1 %v7535_v11  ;;  %v8446_v59 = vadd.f32 %v4455_v31, %v743_v19  ;;  %v4457_v27 = vpop.f32.mrb[14].mxu0  ;;  %v7608_v11 = vcombine.high %v293_v37, %v305_v38  ;;  %v7656_v36 = vcombine.high %v341_v40, %v353_v41  ;;  %v389_v31 = vld [vmem:[#allocation5 + $0x958] sm:$0xff] }
 0x2b5   :  { %v9471_v4 = vpop.f32.mrb[15].mxu1  ;;  %4646 = vmatprep.subr.bf16.mxu1 %v7560_v22  ;;  %v4892_v0 = vmul.f32 %v8445_v49, %v4868_v20  ;;  %v8447_v1 = vadd.f32 %v4457_v27, %v739_v50  ;;  %v4459_v5 = vpop.f32.mrb[15].mxu0  ;;  %6931 = vmatpush1.bf16.msra.mxu0 %v8646_v58  ;;  %v317_v50 = vld [vmem:[#allocation5 + $0x718] sm:$0xff]  ;;  %v8656_v22 = vld [vmem:[#allocation8 + $0x2e8] ss:$12 sps:$4 sm:$0xff]   ;;  %v7655_v20 = vcombine.low %v341_v40, %v353_v41  ;;  %v9481_v41 = vsub.s32 2, %v9367_v3 }
 0x2b6   :  { %v4893_v7 = vmul.f32 %v8446_v59, %v4869_v23  ;;  %v8448_v8 = vadd.f32 %v4459_v5, %v743_v19  ;;  %6932 = vmatprep.subr.bf16.mxu0 %v8653_v45  ;;  %v7632_v19 = vcombine.high %v317_v50, %v329_v12  ;;  %v7631_v35 = vcombine.low %v317_v50, %v329_v12  ;;  %v365_v45 = vld [vmem:[#allocation5 + $0x898] sm:$0xff] }
 0x2b7   :  { %v4904_v55 = vmul.f32 %v8447_v1, %v4880_v33  ;;  %v7680_v49 = vcombine.high %v365_v45, %v377_v56  ;;  %v7679_v23 = vcombine.low %v365_v45, %v377_v56  ;;  %v413_v27 = vld [vmem:[#allocation5 + $0xa18] sm:$0xff] }
 0x2b8   :  { %4647 = vmatpush1.bf16.msra.mxu1 %v7559_v54  ;;  %v4905_v9 = vmul.f32 %v8448_v8, %v4881_v46  ;;  %v401_v54 = vld [vmem:[#allocation5 + $0x9b8] sm:$0xff] }
 0x2b9   :  { %4648 = vmatprep.subr.bf16.mxu1 %v7584_v61  ;;  %v9475_v25 = vpack.c.bf16 %v4904_v55, %v4892_v0  ;;  %6933 = vmatpush1.bf16.msra.mxu0 %v8651_v21  ;;  %v7704_v59 = vcombine.high %v389_v31, %v401_v54  ;;  %v425_v61 = vld [vmem:[#allocation5 + $0xa78] sm:$0xff]  ;;  %v7703_v33 = vcombine.low %v389_v31, %v401_v54 }
 0x2ba   :  { %6934 = vmatprep.subr.bf16.mxu0 %v8658_v44  ;;  %v9477_v58 = vpack.c.bf16 %v4905_v9, %v4893_v7  ;;  %v7728_v0 = vcombine.high %v413_v27, %v425_v61  ;;  %v437_v1 = vld [vmem:[#allocation5 + $0xad8] sm:$0xff]  ;;  %v7727_v37 = vcombine.low %v413_v27, %v425_v61 }
 0x2bb   :  { %v449_v5 = vld [vmem:[#allocation5 + $0xb38] sm:$0xff] }
 0x2bc   :  { %4649 = vmatpush1.bf16.msra.mxu1 %v7583_v24  ;;  %v7752_v38 = vcombine.high %v437_v1, %v449_v5  ;;  %v461_v21 = vld [vmem:[#allocation5 + $0xb98] sm:$0xff]  ;;  %v7751_v7 = vcombine.low %v437_v1, %v449_v5  ;;  %v711_v5 = vrot.slane %v9408_v32, %v9377_v26 }
 0x2bd   :  { %4650 = vmatprep.subr.bf16.mxu1 %v7608_v11  ;;  %6935 = vmatpush1.bf16.msra.mxu0 %v8656_v22  ;;  %v473_v46 = vld [vmem:[#allocation5 + $0xbf8] sm:$0xff] }
 0x2be   :  { %6947 = vmatprep.subr.bf16.mxu0 %v8663_v53  ;;  %v7776_v8 = vcombine.high %v461_v21, %v473_v46  ;;  %v485_v44 = vld [vmem:[#allocation5 + $0xc58] sm:$0xff]  ;;  %v7775_v24 = vcombine.low %v461_v21, %v473_v46 }
 0x2bf   :  { %v497_v55 = vld [vmem:[#allocation5 + $0xcb8] sm:$0xff] }
 0x2c0   :  { %4651 = vmatpush1.bf16.msra.mxu1 %v7607_v47  ;;  %v7800_v9 = vcombine.high %v485_v44, %v497_v55  ;;  %v509_v11 = vld [vmem:[#allocation5 + $0xd18] sm:$0xff]  ;;  %v7799_v12 = vcombine.low %v485_v44, %v497_v55 }
 0x2c1   :  { %4652 = vmatprep.subr.bf16.mxu1 %v7632_v19  ;;  %v521_v50 = vld [vmem:[#allocation5 + $0xd78] sm:$0xff]  ;;  %v9038_v19 = vld [vmem:[#allocation2] ss:$12 sps:$4 sm:$0xff]  }
 0x2c2   :  { %v7824_v22 = vcombine.high %v509_v11, %v521_v50  ;;  %v533_v53 = vld [vmem:[#allocation5 + $0xdd8] sm:$0xff]  ;;  %v7823_v40 = vcombine.low %v509_v11, %v521_v50  ;;  %v9523_v50 = vadd.f32 %v9361_v6, %v711_v5 }
 0x2c3   :  { %v545_v47 = vld [vmem:[#allocation5 + $0xe38] sm:$0xff] }
 0x2c4   :  { %4653 = vmatpush1.bf16.msra.mxu1 %v7631_v35  ;;  %v7848_v35 = vcombine.high %v533_v53, %v545_v47  ;;  %v557_v45 = vld [vmem:[#allocation5 + $0xe98] sm:$0xff] }
 0x2c5   :  { %4654 = vmatprep.subr.bf16.mxu1 %v7656_v36  ;;  %v9484_v36 = vsub.s32 3, %v9367_v3  ;;  %v569_v56 = vld [vmem:[#allocation5 + $0xef8] sm:$0xff] }
 0x2c6   :  { %v7872_v54 = vcombine.high %v557_v45, %v569_v56  ;;  %v7871_v27 = vcombine.low %v557_v45, %v569_v56  ;;  %v629_v55 = vld [vmem:[#allocation5 + $0x10d8] sm:$0xff] }
 0x2c8   :  { %4655 = vmatpush1.bf16.msra.mxu1 %v7655_v20  ;;  %v7847_v20 = vcombine.low %v533_v53, %v545_v47  ;;  %v665_v53 = vld [vmem:[#allocation5 + $0x11f8] sm:$0xff] }
 0x2c9   :  { %4656 = vmatprep.subr.bf16.mxu1 %v7680_v49  ;;  %v9486_v49 = vld [vmem:[#allocation7] sm:$0xff] }
 0x2ca   :  { %v683_v31 = vrot.slane %v9486_v49, %v9481_v41 }
 0x2cc   :  { %4657 = vmatpush1.bf16.msra.mxu1 %v7679_v23  ;;  %v581_v23 = vld [vmem:[#allocation5 + $0xf58] sm:$0xff]  ;;  %v9493_v61 = vadd.f32 %v9347_v52, %v683_v31  ;;  %v9503_v21 = vadd.f32 %v9353_v39, %v683_v31 }
 0x2cd   :  { %4658 = vmatprep.subr.bf16.mxu1 %v7704_v59  ;;  %v593_v59 = vld [vmem:[#allocation5 + $0xfb8] sm:$0xff] }
 0x2ce   :  { %v7895_v52 = vcombine.low %v581_v23, %v593_v59  ;;  %v641_v39 = vld [vmem:[#allocation5 + $0x1138] sm:$0xff] }
 0x2cf   :  { %v7943_v47 = vcombine.low %v629_v55, %v641_v39 }
 0x2d0   :  { %4659 = vmatpush1.bf16.msra.mxu1 %v7703_v33  ;;  %v707_v33 = vrot.slane %v9408_v32, %v9372_v16  ;;  %v9514_v32 = vadd.f32 %v9355_v62, %v711_v5  ;;  %v7944_v62 = vcombine.high %v629_v55, %v641_v39  ;;  %v8634_v5 = vld [vmem:[#allocation8 + $0x20] ss:$12 sps:$4 sm:$0xff]   ;;  %v8639_v39 = vld [vmem:[#allocation8 + $0x38] ss:$12 sps:$4 sm:$0xff]  }
 0x2d1   :  { %4660 = vmatprep.subr.bf16.mxu1 %v7728_v0  ;;  %v7896_v0 = vcombine.high %v581_v23, %v593_v59 }
 0x2d4   :  { %4661 = vmatpush1.bf16.msra.mxu1 %v7727_v37  ;;  %v605_v37 = vld [vmem:[#allocation5 + $0x1018] sm:$0xff] }
 0x2d5   :  { %4662 = vmatprep.subr.bf16.mxu1 %v7752_v38  ;;  %v617_v38 = vld [vmem:[#allocation5 + $0x1078] sm:$0xff] }
 0x2d6   :  { %v7919_v11 = vcombine.low %v605_v37, %v617_v38 }
 0x2d8   :  { %4663 = vmatpush1.bf16.msra.mxu1 %v7751_v7  ;;  %v7971_v7 = vmul.f32 -1.442695, %v9493_v61 }
 0x2d9   :  { %4664 = vmatprep.subr.bf16.mxu1 %v7776_v8  ;;  %v9510_v8 = vadd.f32 %v9351_v60, %v707_v33 }
 0x2da   :  { %8966 = vpow2.f32 %v7971_v7 }
 0x2db   :  { %v7977_v60 = vmul.f32 -1.442695, %v9510_v8 }
 0x2dc   :  { %4665 = vmatpush1.bf16.msra.mxu1 %v7775_v24  ;;  %v7983_v24 = vmul.f32 -1.442695, %v9503_v21 }
 0x2dd   :  { %4677 = vmatprep.subr.bf16.mxu1 %v7800_v9 }
 0x2df   :  { %4667 = vmatmul.mubr.bf16.vlgmr.msra.gmra.mrb[24].mxu1 %v9038_v19  ;;  %v7990_v19 = vmul.f32 -1.442695, %v9523_v50 }
 0x2e0   :  { %4678 = vmatpush1.bf16.msra.mxu1 %v7799_v12  ;;  %4709 = vmatprep.mubr.bf16.mxu1 %v9191_v29  ;;  %v687_v29 = vrot.slane %v9486_v49, %v9484_v36  ;;  %v7978_v12 = vmul.f32 -1.442695, %v9514_v32 }
 0x2e1   :  { %4679 = vmatprep.subr.bf16.mxu1 %v7824_v22  ;;  %v653_v22 = vld [vmem:[#allocation5 + $0x1198] sm:$0xff] }
 0x2e2   :  { %v9498_v1 = vadd.f32 %v9349_v57, %v687_v29  ;;  %v9506_v46 = vadd.f32 %v9357_v63, %v687_v29  ;;  %v7920_v57 = vcombine.high %v605_v37, %v617_v38  ;;  %v9518_v63 = vadd.f32 %v9359_v2, %v707_v33 }
 0x2e3   :  { %v7967_v6 = vcombine.low %v653_v22, %v665_v53 }
 0x2e4   :  { %4680 = vmatpush1.bf16.msra.mxu1 %v7823_v40  ;;  %v7972_v44 = vmul.f32 -1.442695, %v9498_v1  ;;  %v7984_v9 = vmul.f32 -1.442695, %v9506_v46  ;;  %v7989_v2 = vmul.f32 -1.442695, %v9518_v63  ;;  %v7968_v40 = vcombine.high %v653_v22, %v665_v53  ;;  %v8967_v45 = vpop.eup %8966 }
 0x2e5   :  { %4681 = vmatprep.subr.bf16.mxu1 %v7848_v35  ;;  %v8625_v35 = vld [vmem:[#allocation8 + $0xc8] ss:$12 sps:$4 sm:$0xff]   ;;  %v4794_v23 = vadd.f32 1.0, %v8967_v45  ;;  %v8650_v22 = vld [vmem:[#allocation8 + $0x140] ss:$12 sps:$4 sm:$0xff]  }
 0x2e6   :  { %8968 = vpow2.f32 %v7972_v44 }
 0x2e7   :  { %8970 = vpow2.f32 %v7983_v24 }
 0x2e8   :  { %4682 = vmatpush1.bf16.msra.mxu1 %v7847_v20  ;;  %8972 = vpow2.f32 %v7984_v9  ;;  %v8629_v20 = vld [vmem:[#allocation8 + $0x8] ss:$12 sps:$4 sm:$0xff]  }
 0x2e9   :  { %4683 = vmatprep.subr.bf16.mxu1 %v7872_v54  ;;  %8974 = vpow2.f32 %v7977_v60  ;;  %v8630_v54 = vld [vmem:[#allocation8 + $0xe0] ss:$12 sps:$4 sm:$0xff]   ;;  %v8645_v9 = vld [vmem:[#allocation8 + $0x128] ss:$12 sps:$4 sm:$0xff]  }
 0x2ea   :  { %8976 = vpow2.f32 %v7978_v12  ;;  %v8649_v60 = vld [vmem:[#allocation8 + $0x68] ss:$12 sps:$4 sm:$0xff]   ;;  %v9531_v12 = vsub.s32 6, %v9367_v3 }
 0x2eb   :  { %8978 = vpow2.f32 %v7989_v2  ;;  %v9534_v2 = vsub.s32 7, %v9367_v3  ;;  %v759_v3 = vrot.slane %v9457_v14, %v9406_v30 }
 0x2ec   :  { %4684 = vmatpush1.bf16.msra.mxu1 %v7871_v27  ;;  %8980 = vpow2.f32 %v7990_v19  ;;  %v9536_v19 = vld [vmem:[#allocation7 + $0x8] sm:$0xff] }
 0x2ed   :  { %4685 = vmatprep.subr.bf16.mxu1 %v7896_v0  ;;  %8982 = vrcp.f32 %v4794_v23  ;;  %v735_v45 = vrot.slane %v9536_v19, %v9534_v2 }
 0x2f0   :  { %4686 = vmatpush1.bf16.msra.mxu1 %v7895_v52  ;;  %v8969_v56 = vpop.eup %8968  ;;  %v8635_v52 = vld [vmem:[#allocation8 + $0xf8] ss:$12 sps:$4 sm:$0xff]  }
 0x2f1   :  { %4687 = vmatprep.subr.bf16.mxu1 %v7920_v57  ;;  %v8971_v31 = vpop.eup %8970  ;;  %v4795_v27 = vadd.f32 1.0, %v8969_v56  ;;  %v8654_v56 = vld [vmem:[#allocation8 + $0x80] ss:$12 sps:$4 sm:$0xff]  }
 0x2f2   :  { %v8973_v29 = vpop.eup %8972  ;;  %v4806_v0 = vadd.f32 1.0, %v8971_v31  ;;  %v8655_v31 = vld [vmem:[#allocation8 + $0x158] ss:$12 sps:$4 sm:$0xff]  }
 0x2f3   :  { %v8975_v59 = vpop.eup %8974  ;;  %v4807_v38 = vadd.f32 1.0, %v8973_v29  ;;  %8984 = vrcp.f32 %v4795_v27 }
 0x2f4   :  { %4688 = vmatpush1.bf16.msra.mxu1 %v7919_v11  ;;  %v8977_v33 = vpop.eup %8976  ;;  %v4800_v7 = vadd.f32 1.0, %v8975_v59  ;;  %8986 = vrcp.f32 %v4806_v0 }
 0x2f5   :  { %4689 = vmatprep.subr.bf16.mxu1 %v7944_v62  ;;  %v8979_v37 = vpop.eup %8978  ;;  %v4801_v44 = vadd.f32 1.0, %v8977_v33  ;;  %8988 = vrcp.f32 %v4807_v38 }
 0x2f6   :  { %v8981_v57 = vpop.eup %8980  ;;  %v4812_v55 = vadd.f32 1.0, %v8979_v37  ;;  %8990 = vrcp.f32 %v4800_v7 }
 0x2f7   :  { %v4813_v24 = vadd.f32 1.0, %v8981_v57  ;;  %8992 = vrcp.f32 %v4801_v44  ;;  %v8983_v11 = vpop.eup %8982 }
 0x2f8   :  { %4690 = vmatpush1.bf16.msra.mxu1 %v7943_v47  ;;  %8994 = vrcp.f32 %v4812_v55  ;;  %v4866_v29 = vmul.f32 %v8983_v11, %v9493_v61  ;;  %v8659_v61 = vld [vmem:[#allocation8 + $0x98] ss:$12 sps:$4 sm:$0xff]  }
 0x2f9   :  { %4691 = vmatprep.subr.bf16.mxu1 %v7968_v40  ;;  %8996 = vrcp.f32 %v4813_v24  ;;  %v731_v40 = vrot.slane %v9536_v19, %v9531_v12  ;;  %v8660_v24 = vld [vmem:[#allocation8 + $0x170] ss:$12 sps:$4 sm:$0xff]  }
 0x2fc   :  { %4692 = vmatpush1.bf16.msra.mxu1 %v7967_v6 }
 0x2fd   :  { %8281 = vmatprep.subr.bf16.mxu1 %v8625_v35  ;;  %v8985_v62 = vpop.eup %8984  ;;  %v755_v35 = vrot.slane %v9457_v14, %v9403_v18 }
 0x2fe   :  { %v8987_v53 = vpop.eup %8986  ;;  %v4867_v59 = vmul.f32 %v8985_v62, %v9498_v1 }
 0x2ff   :  { %4710 = vmatmul.mubr.bf16.vlgmr.msra.gmra.mrb[24].mxu1 %v9454_v15  ;;  %v8640_v15 = vld [vmem:[#allocation8 + $0x110] ss:$12 sps:$4 sm:$0xff]   ;;  %v8989_v47 = vpop.eup %8988  ;;  %v4878_v27 = vmul.f32 %v8987_v53, %v9503_v21 }
 0x300   :  { %8282 = vmatpush3.bf16.msra.mxu1 %v8629_v20  ;;  %7151 = vmatprep.mubr.bf16.mxu1 %v9428_v10  ;;  %v8644_v10 = vld [vmem:[#allocation8 + $0x50] ss:$12 sps:$4 sm:$0xff]   ;;  %v8991_v6 = vpop.eup %8990  ;;  %v4879_v18 = vmul.f32 %v8989_v47, %v9506_v46 }
 0x301   :  { %8283 = vmatprep.subr.bf16.mxu1 %v8630_v54  ;;  %v8993_v20 = vpop.eup %8992  ;;  %v4872_v38 = vmul.f32 %v8991_v6, %v9510_v8 }
 0x302   :  { %v8995_v54 = vpop.eup %8994  ;;  %v4873_v30 = vmul.f32 %v8993_v20, %v9514_v32  ;;  %v8665_v20 = vld [vmem:[#allocation8 + $0x248] ss:$12 sps:$4 sm:$0xff]  }
 0x303   :  { %v8997_v37 = vpop.eup %8996  ;;  %v4884_v1 = vmul.f32 %v8995_v54, %v9518_v63  ;;  %v8664_v63 = vld [vmem:[#allocation8 + $0xb0] ss:$12 sps:$4 sm:$0xff]  }
 0x304   :  { %8284 = vmatpush3.bf16.msra.mxu1 %v8634_v5 }
 0x305   :  { %8285 = vmatprep.subr.bf16.mxu1 %v8635_v52 }
 0x308   :  { %8286 = vmatpush3.bf16.msra.mxu1 %v8639_v39 }
 0x309   :  { %8287 = vmatprep.subr.bf16.mxu1 %v8640_v15 }
 0x30c   :  { %8288 = vmatpush3.bf16.msra.mxu1 %v8644_v10 }
 0x30d   :  { %8289 = vmatprep.subr.bf16.mxu1 %v8645_v9 }
 0x310   :  { %8290 = vmatpush3.bf16.msra.mxu1 %v8649_v60  ;;  %v4885_v60 = vmul.f32 %v8997_v37, %v9523_v50  ;;  %v8669_v50 = vld [vmem:[#allocation8 + $0x188] ss:$12 sps:$4 sm:$0xff]   ;;  %v8680_v37 = vld [vmem:[#allocation8 + $0x290] ss:$12 sps:$4 sm:$0xff]  }
 0x311   :  { %8291 = vmatprep.subr.bf16.mxu1 %v8650_v22 }
 0x312   :  { %v4367_v23 = vpop.f32.mrb[16].mxu1  ;;  %v4625_v0 = vpop.f32.mrb[16].mxu0 }
 0x313   :  { %v8441_v33 = vadd.f32 %v4367_v23, %v731_v40  ;;  %v4369_v5 = vpop.f32.mrb[17].mxu1  ;;  %v8453_v52 = vadd.f32 %v4625_v0, %v755_v35  ;;  %v4627_v57 = vpop.f32.mrb[17].mxu0  ;;  %v8666_v23 = vld [vmem:[#allocation8 + $0x318] ss:$12 sps:$4 sm:$0xff]  }
 0x314   :  { %v8442_v7 = vadd.f32 %v4369_v5, %v735_v45  ;;  %v4371_v44 = vpop.f32.mrb[18].mxu1  ;;  %8292 = vmatpush3.bf16.msra.mxu1 %v8654_v56  ;;  %v8454_v21 = vadd.f32 %v4627_v57, %v759_v3  ;;  %v4629_v46 = vpop.f32.mrb[18].mxu0  ;;  %v8678_v0 = vld [vmem:[#allocation8 + $0x34c] ss:$12 sps:$4 sm:$0xff]   ;;  %v8688_v57 = vld [vmem:[#allocation8 + $0x37c] ss:$12 sps:$4 sm:$0xff]  }
 0x315   :  { %v4890_v55 = vmul.f32 %v8441_v33, %v4866_v29  ;;  %v8443_v39 = vadd.f32 %v4371_v44, %v731_v40  ;;  %v4373_v15 = vpop.f32.mrb[19].mxu1  ;;  %8293 = vmatprep.subr.bf16.mxu1 %v8655_v31  ;;  %v4896_v10 = vmul.f32 %v8453_v52, %v4872_v38  ;;  %v8455_v8 = vadd.f32 %v4629_v46, %v755_v35  ;;  %v4631_v32 = vpop.f32.mrb[19].mxu0  ;;  %v8661_v35 = vld [vmem:[#allocation8 + $0x300] ss:$12 sps:$4 sm:$0xff]   ;;  %v8671_v33 = vld [vmem:[#allocation8 + $0x330] ss:$12 sps:$4 sm:$0xff]  }
 0x316   :  { %v4891_v9 = vmul.f32 %v8442_v7, %v4867_v59  ;;  %v8444_v11 = vadd.f32 %v4373_v15, %v735_v45  ;;  %v4897_v62 = vmul.f32 %v8454_v21, %v4873_v30  ;;  %v8456_v53 = vadd.f32 %v4631_v32, %v759_v3  ;;  %v8668_v45 = vld [vmem:[#allocation8 + $0x31c] ss:$12 sps:$4 sm:$0xff]   ;;  %v8670_v3 = vld [vmem:[#allocation8 + $0x260] ss:$12 sps:$4 sm:$0xff]   ;;  %v8679_v5 = vld [vmem:[#allocation8 + $0x1b8] ss:$12 sps:$4 sm:$0xff]  }
 0x317   :  { %v4902_v22 = vmul.f32 %v8443_v39, %v4878_v27  ;;  %v4908_v47 = vmul.f32 %v8455_v8, %v4884_v1  ;;  %v8673_v59 = vld [vmem:[#allocation8 + $0x334] ss:$12 sps:$4 sm:$0xff]   ;;  %v8683_v30 = vld [vmem:[#allocation8 + $0x364] ss:$12 sps:$4 sm:$0xff]   ;;  %v8698_v15 = vld [vmem:[#allocation8 + $0x3ac] ss:$12 sps:$4 sm:$0xff]  }
 0x318   :  { %v4903_v6 = vmul.f32 %v8444_v11, %v4879_v18  ;;  %8294 = vmatpush3.bf16.msra.mxu1 %v8659_v61  ;;  %v4909_v40 = vmul.f32 %v8456_v53, %v4885_v60  ;;  %v8674_v27 = vld [vmem:[#allocation8 + $0x1a0] ss:$12 sps:$4 sm:$0xff]   ;;  %v8675_v18 = vld [vmem:[#allocation8 + $0x278] ss:$12 sps:$4 sm:$0xff]   ;;  %v8676_v38 = vld [vmem:[#allocation8 + $0x348] ss:$12 sps:$4 sm:$0xff]  }
 0x319   :  { %v9554_v56 = vpack.c.bf16 %v4902_v22, %v4890_v55  ;;  %8295 = vmatprep.subr.bf16.mxu1 %v8660_v24  ;;  %v9556_v31 = vpack.c.bf16 %v4908_v47, %v4896_v10  ;;  %v8685_v52 = vld [vmem:[#allocation8 + $0x2a8] ss:$12 sps:$4 sm:$0xff]   ;;  %v8681_v7 = vld [vmem:[#allocation8 + $0x360] ss:$12 sps:$4 sm:$0xff]   ;;  %v8686_v1 = vld [vmem:[#allocation8 + $0x378] ss:$12 sps:$4 sm:$0xff]  }
 0x31a   :  { %v4915_v54 = vpack.c.bf16 %v4903_v6, %v4891_v9  ;;  %v9558_v29 = vpack.c.bf16 %v4909_v40, %v4897_v62  ;;  %v8689_v44 = vld [vmem:[#allocation8 + $0x1e8] ss:$12 sps:$4 sm:$0xff]   ;;  %v8690_v61 = vld [vmem:[#allocation8 + $0x2c0] ss:$12 sps:$4 sm:$0xff]   ;;  %v8695_v39 = vld [vmem:[#allocation8 + $0x2d8] ss:$12 sps:$4 sm:$0xff]  }
 0x31b   :  { %v8693_v55 = vld [vmem:[#allocation8 + $0x394] ss:$12 sps:$4 sm:$0xff]   ;;  %v8691_v46 = vld [vmem:[#allocation8 + $0x390] ss:$12 sps:$4 sm:$0xff]   ;;  %v8699_v24 = vld [vmem:[#allocation8 + $0x218] ss:$12 sps:$4 sm:$0xff]  }
 0x31c   :  { %6936 = vmatprep.mubr.bf16.mxu0 %v4915_v54  ;;  %8296 = vmatpush3.bf16.msra.mxu1 %v8664_v63  ;;  %v8694_v21 = vld [vmem:[#allocation8 + $0x200] ss:$12 sps:$4 sm:$0xff]   ;;  %v8700_v10 = vld [vmem:[#allocation8 + $0x2f0] ss:$12 sps:$4 sm:$0xff]   ;;  %v8696_v9 = vld [vmem:[#allocation8 + $0x3a8] ss:$12 sps:$4 sm:$0xff]  }
 0x31d   :  { %6937 = vmatmul.mubr.bf16.vlgmr.msra.gmra.mrb[20].mxu0 %v9554_v56  ;;  %8303 = vmatprep.subr.bf16.mxu1 %v8665_v20  ;;  %v8703_v8 = vld [vmem:[#allocation8 + $0x3c4] ss:$12 sps:$4 sm:$0xff]   ;;  %v8705_v32 = vld [vmem:[#allocation8 + $0x3c8] ss:$12 sps:$4 sm:$0xff]   ;;  %v8701_v60 = vld [vmem:[#allocation8 + $0x3c0] ss:$12 sps:$4 sm:$0xff]  }
 0x31e   :  { %6948 = vmatpush1.bf16.msra.mxu0 %v8661_v35  ;;  %6979 = vmatprep.mubr.bf16.mxu0 %v9477_v58  ;;  %v8704_v11 = vld [vmem:[#allocation8 + $0x230] ss:$12 sps:$4 sm:$0xff]   ;;  %v8709_v22 = vld [vmem:[#allocation8 + $0x308] ss:$12 sps:$4 sm:$0xff]   ;;  %v8710_v53 = vld [vmem:[#allocation8 + $0x3e0] ss:$12 sps:$4 sm:$0xff]  }
 0x31f   :  { %7152 = vmatmul.mubr.bf16.vlgmr.msra.gmra.mrb[28].mxu1 %v9426_v28  ;;  %6949 = vmatprep.subr.bf16.mxu0 %v8668_v45  ;;  %v8684_v28 = vld [vmem:[#allocation8 + $0x1d0] ss:$12 sps:$4 sm:$0xff]   ;;  %v8706_v47 = vld [vmem:[#allocation8 + $0x3d8] ss:$12 sps:$4 sm:$0xff]   ;;  %v8713_v6 = vld [vmem:[#allocation8 + $0x3f4] ss:$12 sps:$4 sm:$0xff]  }
 0x320   :  { %8304 = vmatpush3.bf16.msra.mxu1 %v8669_v50  ;;  %7192 = vmatprep.mubr.bf16.mxu1 %v4915_v54  ;;  %v8708_v62 = vld [vmem:[#allocation8 + $0x3dc] ss:$12 sps:$4 sm:$0xff]   ;;  %v8714_v63 = vld [vmem:[#allocation8 + $0x320] ss:$12 sps:$4 sm:$0xff]   ;;  %v8715_v40 = vld [vmem:[#allocation8 + $0x3f8] ss:$12 sps:$4 sm:$0xff]  }
 0x321   :  { %8305 = vmatprep.subr.bf16.mxu1 %v8670_v3  ;;  %v8711_v20 = vld [vmem:[#allocation8 + $0x3f0] ss:$12 sps:$4 sm:$0xff]   ;;  %v8718_v54 = vld [vmem:[#allocation8 + $0x40c] ss:$12 sps:$4 sm:$0xff]   ;;  %v8716_v50 = vld [vmem:[#allocation8 + $0x408] ss:$12 sps:$4 sm:$0xff]  }
 0x322   :  { %6950 = vmatpush1.bf16.msra.mxu0 %v8666_v23  ;;  %v8719_v35 = vld [vmem:[#allocation8 + $0x338] ss:$12 sps:$4 sm:$0xff]   ;;  %v8720_v45 = vld [vmem:[#allocation8 + $0x410] ss:$12 sps:$4 sm:$0xff]   ;;  %v8725_v23 = vld [vmem:[#allocation8 + $0x428] ss:$12 sps:$4 sm:$0xff]  }
 0x323   :  { %6951 = vmatprep.subr.bf16.mxu0 %v8673_v59  ;;  %v8724_v3 = vld [vmem:[#allocation8 + $0x350] ss:$12 sps:$4 sm:$0xff]   ;;  %v703_v59 = vrot.slane %v9486_v49, %v9534_v2 }
 0x324   :  { %8306 = vmatpush3.bf16.msra.mxu1 %v8674_v27  ;;  %v8721_v27 = vld [vmem:[#allocation8 + $0x420] ss:$12 sps:$4 sm:$0xff]  }
 0x325   :  { %8307 = vmatprep.subr.bf16.mxu1 %v8675_v18  ;;  %v8728_v18 = vld [vmem:[#allocation8 + $0x43c] ss:$12 sps:$4 sm:$0xff]  }
 0x326   :  { %6952 = vmatpush1.bf16.msra.mxu0 %v8671_v33  ;;  %v8729_v33 = vld [vmem:[#allocation8 + $0x368] ss:$12 sps:$4 sm:$0xff]  }
 0x327   :  { %6953 = vmatprep.subr.bf16.mxu0 %v8678_v0 }
 0x328   :  { %8308 = vmatpush3.bf16.msra.mxu1 %v8679_v5  ;;  %v8730_v5 = vld [vmem:[#allocation8 + $0x440] ss:$12 sps:$4 sm:$0xff]  }
 0x329   :  { %8309 = vmatprep.subr.bf16.mxu1 %v8680_v37  ;;  %v9573_v37 = vadd.f32 %v9416_v48, %v703_v59  ;;  %v8731_v48 = vld [vmem:[#allocation8 + $0x450] ss:$12 sps:$4 sm:$0xff]  }
 0x32a   :  { %6954 = vmatpush1.bf16.msra.mxu0 %v8676_v38  ;;  %v8726_v38 = vld [vmem:[#allocation8 + $0x438] ss:$12 sps:$4 sm:$0xff]  }
 0x32b   :  { %6955 = vmatprep.subr.bf16.mxu0 %v8683_v30 }
 0x32c   :  { %8310 = vmatpush3.bf16.msra.mxu1 %v8684_v28  ;;  %v9579_v28 = vadd.f32 %v9422_v17, %v703_v59  ;;  %v8740_v17 = vld [vmem:[#allocation8 + $0x470] ss:$12 sps:$4 sm:$0xff]  }
 0x32d   :  { %8311 = vmatprep.subr.bf16.mxu1 %v8685_v52  ;;  %v8734_v52 = vld [vmem:[#allocation8 + $0x380] ss:$12 sps:$4 sm:$0xff]   ;;  %v8768_v59 = vld [vmem:[#allocation8 + $0x4fc] ss:$12 sps:$4 sm:$0xff]  }
 0x32e   :  { %6956 = vmatpush1.bf16.msra.mxu0 %v8681_v7  ;;  %v8735_v7 = vld [vmem:[#allocation8 + $0x458] ss:$12 sps:$4 sm:$0xff]  }
 0x32f   :  { %6957 = vmatprep.subr.bf16.mxu0 %v8688_v57  ;;  %v7976_v57 = vmul.f32 -1.442695, %v9573_v37 }
 0x330   :  { %8312 = vmatpush3.bf16.msra.mxu1 %v8689_v44 }
 0x331   :  { %8313 = vmatprep.subr.bf16.mxu1 %v8690_v61  ;;  %v7988_v61 = vmul.f32 -1.442695, %v9579_v28 }
 0x332   :  { %6958 = vmatpush1.bf16.msra.mxu0 %v8686_v1  ;;  %v8739_v1 = vld [vmem:[#allocation8 + $0x398] ss:$12 sps:$4 sm:$0xff]  }
 0x333   :  { %6959 = vmatprep.subr.bf16.mxu0 %v8693_v55  ;;  %v8736_v55 = vld [vmem:[#allocation8 + $0x468] ss:$12 sps:$4 sm:$0xff]  }
 0x334   :  { %8314 = vmatpush3.bf16.msra.mxu1 %v8694_v21  ;;  %v8743_v21 = vld [vmem:[#allocation8 + $0x484] ss:$12 sps:$4 sm:$0xff]  }
 0x335   :  { %8315 = vmatprep.subr.bf16.mxu1 %v8695_v39  ;;  %v8744_v39 = vld [vmem:[#allocation8 + $0x3b0] ss:$12 sps:$4 sm:$0xff]  }
 0x336   :  { %6960 = vmatpush1.bf16.msra.mxu0 %v8691_v46  ;;  %v8745_v46 = vld [vmem:[#allocation8 + $0x548] ss:$12 sps:$4 sm:$0xff]  }
 0x337   :  { %6961 = vmatprep.subr.bf16.mxu0 %v8698_v15  ;;  %v8741_v15 = vld [vmem:[#allocation8 + $0x480] ss:$12 sps:$4 sm:$0xff]  }
 0x338   :  { %8316 = vmatpush3.bf16.msra.mxu1 %v8699_v24  ;;  %v8748_v24 = vld [vmem:[#allocation8 + $0x49c] ss:$12 sps:$4 sm:$0xff]  }
 0x339   :  { %8317 = vmatprep.subr.bf16.mxu1 %v8700_v10  ;;  %v8749_v10 = vld [vmem:[#allocation8 + $0x488] ss:$12 sps:$4 sm:$0xff]  }
 0x33a   :  { %6962 = vmatpush1.bf16.msra.mxu0 %v8696_v9  ;;  %v8750_v9 = vld [vmem:[#allocation8 + $0x560] ss:$12 sps:$4 sm:$0xff]  }
 0x33b   :  { %6963 = vmatprep.subr.bf16.mxu0 %v8703_v8  ;;  %v8746_v8 = vld [vmem:[#allocation8 + $0x498] ss:$12 sps:$4 sm:$0xff]  }
 0x33c   :  { %8318 = vmatpush3.bf16.msra.mxu1 %v8704_v11 }
 0x33d   :  { %8325 = vmatprep.subr.bf16.mxu1 %v8705_v32  ;;  %v8753_v32 = vld [vmem:[#allocation8 + $0x4b4] ss:$12 sps:$4 sm:$0xff]  }
 0x33e   :  { %6964 = vmatpush1.bf16.msra.mxu0 %v8701_v60 }
 0x33f   :  { %7193 = vmatmul.mubr.bf16.vlgmr.msra.gmra.mrb[32].mxu1 %v9554_v56  ;;  %6965 = vmatprep.subr.bf16.mxu0 %v8708_v62  ;;  %v8723_v56 = vld [vmem:[#allocation8 + $0x424] ss:$12 sps:$4 sm:$0xff]   ;;  %v8754_v62 = vld [vmem:[#allocation8 + $0x4a0] ss:$12 sps:$4 sm:$0xff]  }
 0x340   :  { %8326 = vmatpush3.bf16.msra.mxu1 %v8709_v22  ;;  %7233 = vmatprep.mubr.bf16.mxu1 %v9477_v58  ;;  %v699_v58 = vrot.slane %v9486_v49, %v9531_v12  ;;  %v8733_v49 = vld [vmem:[#allocation8 + $0x454] ss:$12 sps:$4 sm:$0xff]  }
 0x341   :  { %8327 = vmatprep.subr.bf16.mxu1 %v8710_v53  ;;  %v8755_v53 = vld [vmem:[#allocation8 + $0x578] ss:$12 sps:$4 sm:$0xff]  }
 0x342   :  { %6966 = vmatpush1.bf16.msra.mxu0 %v8706_v47  ;;  %v9570_v0 = vadd.f32 %v9414_v42, %v699_v58  ;;  %v9576_v30 = vadd.f32 %v9419_v13, %v699_v58  ;;  %v8738_v13 = vld [vmem:[#allocation8 + $0x46c] ss:$12 sps:$4 sm:$0xff]   ;;  %v8765_v58 = vld [vmem:[#allocation8 + $0x5a8] ss:$12 sps:$4 sm:$0xff]  }
 0x343   :  { %6967 = vmatprep.subr.bf16.mxu0 %v8713_v6 }
 0x344   :  { %8328 = vmatpush3.bf16.msra.mxu1 %v8714_v63  ;;  %v7975_v42 = vmul.f32 -1.442695, %v9570_v0  ;;  %v7987_v44 = vmul.f32 -1.442695, %v9576_v30  ;;  %v8751_v63 = vld [vmem:[#allocation8 + $0x4b0] ss:$12 sps:$4 sm:$0xff]  }
 0x345   :  { %8329 = vmatprep.subr.bf16.mxu1 %v8715_v40 }
 0x346   :  { %6968 = vmatpush1.bf16.msra.mxu0 %v8711_v20  ;;  %8998 = vpow2.f32 %v7975_v42  ;;  %v8758_v20 = vld [vmem:[#allocation8 + $0x4cc] ss:$12 sps:$4 sm:$0xff]  }
 0x347   :  { %6969 = vmatprep.subr.bf16.mxu0 %v8718_v54  ;;  %9000 = vpow2.f32 %v7976_v57  ;;  %v8774_v42 = vld [vmem:[#allocation8 + $0x500] ss:$12 sps:$4 sm:$0xff]   ;;  %v8775_v57 = vld [vmem:[#allocation8 + $0x5d8] ss:$12 sps:$4 sm:$0xff]  }
 0x348   :  { %8330 = vmatpush3.bf16.msra.mxu1 %v8719_v35  ;;  %9002 = vpow2.f32 %v7987_v44  ;;  %v8759_v35 = vld [vmem:[#allocation8 + $0x4b8] ss:$12 sps:$4 sm:$0xff]  }
 0x349   :  { %8331 = vmatprep.subr.bf16.mxu1 %v8720_v45  ;;  %9004 = vpow2.f32 %v7988_v61 }
 0x34a   :  { %6970 = vmatpush1.bf16.msra.mxu0 %v8716_v50  ;;  %v8756_v50 = vld [vmem:[#allocation8 + $0x4c8] ss:$12 sps:$4 sm:$0xff]  }
 0x34b   :  { %6971 = vmatprep.subr.bf16.mxu0 %v8723_v56  ;;  %v8763_v56 = vld [vmem:[#allocation8 + $0x4e4] ss:$12 sps:$4 sm:$0xff]  }
 0x34c   :  { %8332 = vmatpush3.bf16.msra.mxu1 %v8724_v3  ;;  %v8764_v3 = vld [vmem:[#allocation8 + $0x4d0] ss:$12 sps:$4 sm:$0xff]  }
 0x34d   :  { %8333 = vmatprep.subr.bf16.mxu1 %v8725_v23  ;;  %v8761_v23 = vld [vmem:[#allocation8 + $0x4e0] ss:$12 sps:$4 sm:$0xff]  }
 0x34e   :  { %6972 = vmatpush1.bf16.msra.mxu0 %v8721_v27  ;;  %v8769_v27 = vld [vmem:[#allocation8 + $0x4e8] ss:$12 sps:$4 sm:$0xff]  }
 0x34f   :  { %6973 = vmatprep.subr.bf16.mxu0 %v8728_v18  ;;  %v8770_v18 = vld [vmem:[#allocation8 + $0x5c0] ss:$12 sps:$4 sm:$0xff]  }
 0x350   :  { %8334 = vmatpush3.bf16.msra.mxu1 %v8729_v33  ;;  %v8999_v11 = vpop.eup %8998  ;;  %v8766_v33 = vld [vmem:[#allocation8 + $0x4f8] ss:$12 sps:$4 sm:$0xff]  }
 0x351   :  { %8335 = vmatprep.subr.bf16.mxu1 %v8730_v5  ;;  %v9001_v60 = vpop.eup %9000  ;;  %v4798_v6 = vadd.f32 1.0, %v8999_v11  ;;  %v747_v5 = vrot.slane %v9457_v14, %v9481_v41  ;;  %v8780_v11 = vld [vmem:[#allocation8 + $0x5f0] ss:$12 sps:$4 sm:$0xff]  }
 0x352   :  { %6974 = vmatpush1.bf16.msra.mxu0 %v8726_v38  ;;  %v9003_v22 = vpop.eup %9002  ;;  %v4799_v40 = vadd.f32 1.0, %v9001_v60  ;;  %v8773_v38 = vld [vmem:[#allocation8 + $0x514] ss:$12 sps:$4 sm:$0xff]  }
 0x353   :  { %6975 = vmatprep.subr.bf16.mxu0 %v8733_v49  ;;  %v9005_v47 = vpop.eup %9004  ;;  %v4810_v54 = vadd.f32 1.0, %v9003_v22  ;;  %9006 = vrcp.f32 %v4798_v6 }
 0x354   :  { %8336 = vmatpush3.bf16.msra.mxu1 %v8734_v52  ;;  %v4811_v45 = vadd.f32 1.0, %v9005_v47  ;;  %9008 = vrcp.f32 %v4799_v40  ;;  %v751_v52 = vrot.slane %v9457_v14, %v9484_v36  ;;  %v8779_v14 = vld [vmem:[#allocation8 + $0x518] ss:$12 sps:$4 sm:$0xff]   ;;  %v8784_v47 = vld [vmem:[#allocation8 + $0x530] ss:$12 sps:$4 sm:$0xff]  }
 0x355   :  { %8337 = vmatprep.subr.bf16.mxu1 %v8735_v7  ;;  %9010 = vrcp.f32 %v4810_v54  ;;  %v8790_v54 = vld [vmem:[#allocation8 + $0x6e0] ss:$12 sps:$4 sm:$0xff]  }
 0x356   :  { %6976 = vmatpush1.bf16.msra.mxu0 %v8731_v48  ;;  %9012 = vrcp.f32 %v4811_v45  ;;  %v8793_v45 = vld [vmem:[#allocation8 + $0x574] ss:$12 sps:$4 sm:$0xff]  }
 0x357   :  { %6977 = vmatprep.subr.bf16.mxu0 %v8738_v13  ;;  %v8771_v13 = vld [vmem:[#allocation8 + $0x510] ss:$12 sps:$4 sm:$0xff]  }
 0x358   :  { %8338 = vmatpush3.bf16.msra.mxu1 %v8739_v1 }
 0x359   :  { %8339 = vmatprep.subr.bf16.mxu1 %v8740_v17 }
 0x35a   :  { %6978 = vmatpush1.bf16.msra.mxu0 %v8736_v55 }
 0x35b   :  { %6990 = vmatprep.subr.bf16.mxu0 %v8743_v21  ;;  %v8778_v21 = vld [vmem:[#allocation8 + $0x52c] ss:$12 sps:$4 sm:$0xff]  }
 0x35c   :  { %8340 = vmatpush3.bf16.msra.mxu1 %v8744_v39 }
 0x35d   :  { %6980 = vmatmul.mubr.bf16.vlgmr.msra.gmra.mrb[20].mxu0 %v9475_v25  ;;  %8347 = vmatprep.subr.bf16.mxu1 %v8745_v46  ;;  %v9007_v49 = vpop.eup %9006 }
 0x35e   :  { %6991 = vmatpush1.bf16.msra.mxu0 %v8741_v15  ;;  %v9009_v7 = vpop.eup %9008  ;;  %v4870_v1 = vmul.f32 %v9007_v49, %v9570_v0  ;;  %v8809_v49 = vld [vmem:[#allocation8 + $0x668] ss:$12 sps:$4 sm:$0xff]  }
 0x35f   :  { %7234 = vmatmul.mubr.bf16.vlgmr.msra.gmra.mrb[36].mxu1 %v9475_v25  ;;  %6992 = vmatprep.subr.bf16.mxu0 %v8748_v24  ;;  %v8760_v25 = vld [vmem:[#allocation8 + $0x590] ss:$12 sps:$4 sm:$0xff]   ;;  %v9011_v48 = vpop.eup %9010  ;;  %v4871_v39 = vmul.f32 %v9009_v7, %v9573_v37  ;;  %v8813_v7 = vld [vmem:[#allocation8 + $0x5d4] ss:$12 sps:$4 sm:$0xff]  }
 0x360   :  { %8348 = vmatpush3.bf16.msra.mxu1 %v8749_v10  ;;  %v9013_v61 = vpop.eup %9012  ;;  %v4882_v24 = vmul.f32 %v9011_v48, %v9576_v30  ;;  %v8783_v37 = vld [vmem:[#allocation8 + $0x544] ss:$12 sps:$4 sm:$0xff]   ;;  %v8785_v30 = vld [vmem:[#allocation8 + $0x6c8] ss:$12 sps:$4 sm:$0xff]  }
 0x361   :  { %8349 = vmatprep.subr.bf16.mxu1 %v8750_v9  ;;  %v8815_v48 = vld [vmem:[#allocation8 + $0x758] ss:$12 sps:$4 sm:$0xff]  }
 0x362   :  { %6993 = vmatpush1.bf16.msra.mxu0 %v8746_v8 }
 0x363   :  { %6994 = vmatprep.subr.bf16.mxu0 %v8753_v32  ;;  %v4883_v32 = vmul.f32 %v9013_v61, %v9579_v28  ;;  %v8789_v28 = vld [vmem:[#allocation8 + $0x608] ss:$12 sps:$4 sm:$0xff]   ;;  %v8819_v61 = vld [vmem:[#allocation8 + $0x698] ss:$12 sps:$4 sm:$0xff]  }
 0x364   :  { %8350 = vmatpush3.bf16.msra.mxu1 %v8754_v62  ;;  %v8776_v62 = vld [vmem:[#allocation8 + $0x528] ss:$12 sps:$4 sm:$0xff]  }
 0x365   :  { %8351 = vmatprep.subr.bf16.mxu1 %v8755_v53 }
 0x366   :  { %6995 = vmatpush1.bf16.msra.mxu0 %v8751_v63  ;;  %v8781_v63 = vld [vmem:[#allocation8 + $0x540] ss:$12 sps:$4 sm:$0xff]  }
 0x367   :  { %6996 = vmatprep.subr.bf16.mxu0 %v8758_v20  ;;  %v8788_v20 = vld [vmem:[#allocation8 + $0x55c] ss:$12 sps:$4 sm:$0xff]  }
 0x368   :  { %8352 = vmatpush3.bf16.msra.mxu1 %v8759_v35  ;;  %v8786_v35 = vld [vmem:[#allocation8 + $0x558] ss:$12 sps:$4 sm:$0xff]  }
 0x369   :  { %8353 = vmatprep.subr.bf16.mxu1 %v8760_v25  ;;  %v8794_v25 = vld [vmem:[#allocation8 + $0x620] ss:$12 sps:$4 sm:$0xff]  }
 0x36a   :  { %6997 = vmatpush1.bf16.msra.mxu0 %v8756_v50  ;;  %v8795_v50 = vld [vmem:[#allocation8 + $0x6f8] ss:$12 sps:$4 sm:$0xff]  }
 0x36b   :  { %6998 = vmatprep.subr.bf16.mxu0 %v8763_v56  ;;  %v8791_v56 = vld [vmem:[#allocation8 + $0x570] ss:$12 sps:$4 sm:$0xff]  }
 0x36c   :  { %8354 = vmatpush3.bf16.msra.mxu1 %v8764_v3  ;;  %v8798_v3 = vld [vmem:[#allocation8 + $0x58c] ss:$12 sps:$4 sm:$0xff]  }
 0x36d   :  { %8355 = vmatprep.subr.bf16.mxu1 %v8765_v58  ;;  %v8799_v58 = vld [vmem:[#allocation8 + $0x638] ss:$12 sps:$4 sm:$0xff]  }
 0x36e   :  { %6999 = vmatpush1.bf16.msra.mxu0 %v8761_v23  ;;  %v8800_v23 = vld [vmem:[#allocation8 + $0x710] ss:$12 sps:$4 sm:$0xff]  }
 0x36f   :  { %7000 = vmatprep.subr.bf16.mxu0 %v8768_v59  ;;  %v8796_v59 = vld [vmem:[#allocation8 + $0x588] ss:$12 sps:$4 sm:$0xff]  }
 0x370   :  { %8356 = vmatpush3.bf16.msra.mxu1 %v8769_v27  ;;  %v8803_v27 = vld [vmem:[#allocation8 + $0x5a4] ss:$12 sps:$4 sm:$0xff]  }
 0x371   :  { %8357 = vmatprep.subr.bf16.mxu1 %v8770_v18  ;;  %v8804_v18 = vld [vmem:[#allocation8 + $0x650] ss:$12 sps:$4 sm:$0xff]  }
 0x372   :  { %7001 = vmatpush1.bf16.msra.mxu0 %v8766_v33  ;;  %v4539_v44 = vpop.f32.mrb[20].mxu1  ;;  %v8805_v33 = vld [vmem:[#allocation8 + $0x728] ss:$12 sps:$4 sm:$0xff]  }
 0x373   :  { %v8449_v17 = vadd.f32 %v4539_v44, %v747_v5  ;;  %v4541_v55 = vpop.f32.mrb[21].mxu1  ;;  %7002 = vmatprep.subr.bf16.mxu0 %v8773_v38  ;;  %v8808_v38 = vld [vmem:[#allocation8 + $0x5bc] ss:$12 sps:$4 sm:$0xff]  }
 0x374   :  { %v8450_v46 = vadd.f32 %v4541_v55, %v751_v52  ;;  %v4543_v15 = vpop.f32.mrb[22].mxu1  ;;  %8358 = vmatpush3.bf16.msra.mxu1 %v8774_v42  ;;  %v8806_v42 = vld [vmem:[#allocation8 + $0x5b8] ss:$12 sps:$4 sm:$0xff]   ;;  %v8811_v44 = vld [vmem:[#allocation8 + $0x5d0] ss:$12 sps:$4 sm:$0xff]  }
 0x375   :  { %v4894_v10 = vmul.f32 %v8449_v17, %v4870_v1  ;;  %v8451_v9 = vadd.f32 %v4543_v15, %v747_v5  ;;  %v4545_v8 = vpop.f32.mrb[23].mxu1  ;;  %8359 = vmatprep.subr.bf16.mxu1 %v8775_v57  ;;  %v8801_v5 = vld [vmem:[#allocation8 + $0x5a0] ss:$12 sps:$4 sm:$0xff]   ;;  %v8820_v1 = vld [vmem:[#allocation8 + $0x770] ss:$12 sps:$4 sm:$0xff]  }
 0x376   :  { %v4895_v0 = vmul.f32 %v8450_v46, %v4871_v39  ;;  %v8452_v60 = vadd.f32 %v4545_v8, %v751_v52  ;;  %7003 = vmatpush1.bf16.msra.mxu0 %v8771_v13  ;;  %v8810_v52 = vld [vmem:[#allocation8 + $0x740] ss:$12 sps:$4 sm:$0xff]   ;;  %v8816_v17 = vld [vmem:[#allocation8 + $0x5e8] ss:$12 sps:$4 sm:$0xff]   ;;  %v8823_v55 = vld [vmem:[#allocation8 + $0x604] ss:$12 sps:$4 sm:$0xff]  }
 0x377   :  { %v4906_v22 = vmul.f32 %v8451_v9, %v4882_v24  ;;  %7004 = vmatprep.subr.bf16.mxu0 %v8778_v21  ;;  %v8814_v57 = vld [vmem:[#allocation8 + $0x680] ss:$12 sps:$4 sm:$0xff]   ;;  %v8824_v21 = vld [vmem:[#allocation8 + $0x6b0] ss:$12 sps:$4 sm:$0xff]   ;;  %v8849_v39 = vld [vmem:[#allocation8 + $0x848] ss:$12 sps:$4 sm:$0xff]  }
 0x378   :  { %v4907_v53 = vmul.f32 %v8452_v60, %v4883_v32  ;;  %8360 = vmatpush3.bf16.msra.mxu1 %v8779_v14  ;;  %v8818_v13 = vld [vmem:[#allocation8 + $0x5ec] ss:$12 sps:$4 sm:$0xff]   ;;  %v8827_v15 = vld [vmem:[#allocation8 + $0x61c] ss:$12 sps:$4 sm:$0xff]   ;;  %v8830_v9 = vld [vmem:[#allocation8 + $0x634] ss:$12 sps:$4 sm:$0xff]  }
 0x379   :  { %v9595_v6 = vpack.c.bf16 %v4906_v22, %v4894_v10  ;;  %8361 = vmatprep.subr.bf16.mxu1 %v8780_v11  ;;  %v8821_v46 = vld [vmem:[#allocation8 + $0x600] ss:$12 sps:$4 sm:$0xff]   ;;  %v8850_v14 = vld [vmem:[#allocation8 + $0x788] ss:$12 sps:$4 sm:$0xff]   ;;  %v8825_v10 = vld [vmem:[#allocation8 + $0x618] ss:$12 sps:$4 sm:$0xff]  }
 0x37a   :  { %7005 = vmatpush1.bf16.msra.mxu0 %v8776_v62  ;;  %v4919_v40 = vpack.c.bf16 %v4907_v53, %v4895_v0  ;;  %v8854_v24 = vld [vmem:[#allocation8 + $0x860] ss:$12 sps:$4 sm:$0xff]   ;;  %v8859_v11 = vld [vmem:[#allocation8 + $0x878] ss:$12 sps:$4 sm:$0xff]   ;;  %v8828_v32 = vld [vmem:[#allocation8 + $0x630] ss:$12 sps:$4 sm:$0xff]   ;;  %v715_v53 = vrot.slane %v9536_v19, %v9481_v41 }
 0x37b   :  { %7006 = vmatprep.subr.bf16.mxu0 %v8783_v37  ;;  %v8855_v8 = vld [vmem:[#allocation8 + $0x7a0] ss:$12 sps:$4 sm:$0xff]   ;;  %v8860_v60 = vld [vmem:[#allocation8 + $0x7b8] ss:$12 sps:$4 sm:$0xff]   ;;  %v8864_v62 = vld [vmem:[#allocation8 + $0x890] ss:$12 sps:$4 sm:$0xff]  }
 0x37c   :  { %7022 = vmatprep.mubr.bf16.mxu0 %v4919_v40  ;;  %8362 = vmatpush3.bf16.msra.mxu1 %v8784_v47  ;;  %v8833_v0 = vld [vmem:[#allocation8 + $0x64c] ss:$12 sps:$4 sm:$0xff]   ;;  %v8831_v22 = vld [vmem:[#allocation8 + $0x648] ss:$12 sps:$4 sm:$0xff]   ;;  %v8865_v37 = vld [vmem:[#allocation8 + $0x7d0] ss:$12 sps:$4 sm:$0xff]  }
 0x37d   :  { %7274 = vmatprep.mubr.bf16.mxu1 %v4919_v40  ;;  %8369 = vmatprep.subr.bf16.mxu1 %v8785_v30  ;;  %v8869_v47 = vld [vmem:[#allocation8 + $0x8a8] ss:$12 sps:$4 sm:$0xff]   ;;  %v8834_v30 = vld [vmem:[#allocation8 + $0x660] ss:$12 sps:$4 sm:$0xff]  }
 0x37e   :  { %7007 = vmatpush1.bf16.msra.mxu0 %v8781_v63  ;;  %v8839_v63 = vld [vmem:[#allocation8 + $0x67c] ss:$12 sps:$4 sm:$0xff]  }
 0x37f   :  { %7275 = vmatmul.mubr.bf16.vlgmr.msra.gmra.mrb[40].mxu1 %v9595_v6  ;;  %7008 = vmatprep.subr.bf16.mxu0 %v8788_v20  ;;  %v8870_v40 = vld [vmem:[#allocation8 + $0x7e8] ss:$12 sps:$4 sm:$0xff]   ;;  %v9607_v20 = vadd.f32 %v9463_v34, %v715_v53 }
 0x380   :  { %8370 = vmatpush3.bf16.msra.mxu1 %v8789_v28  ;;  %7315 = vmatprep.mubr.bf16.mxu1 %v9558_v29  ;;  %v8874_v28 = vld [vmem:[#allocation8 + $0x8c0] ss:$12 sps:$4 sm:$0xff]  }
 0x381   :  { %8371 = vmatprep.subr.bf16.mxu1 %v8790_v54  ;;  %v7979_v34 = vmul.f32 -1.442695, %v9607_v20 }
 0x382   :  { %7009 = vmatpush1.bf16.msra.mxu0 %v8786_v35  ;;  %v8837_v35 = vld [vmem:[#allocation8 + $0x678] ss:$12 sps:$4 sm:$0xff]  }
 0x383   :  { %7010 = vmatprep.subr.bf16.mxu0 %v8793_v45  ;;  %v9613_v45 = vadd.f32 %v9468_v51, %v715_v53  ;;  %v8845_v51 = vld [vmem:[#allocation8 + $0x6ac] ss:$12 sps:$4 sm:$0xff]   ;;  %9014 = vpow2.f32 %v7979_v34  ;;  %v8888_v34 = vld [vmem:[#allocation8 + $0x784] ss:$12 sps:$4 sm:$0xff]  }
 0x384   :  { %8372 = vmatpush3.bf16.msra.mxu1 %v8794_v25  ;;  %v8875_v25 = vld [vmem:[#allocation8 + $0x800] ss:$12 sps:$4 sm:$0xff]  }
 0x385   :  { %8373 = vmatprep.subr.bf16.mxu1 %v8795_v50  ;;  %v8879_v50 = vld [vmem:[#allocation8 + $0x8d8] ss:$12 sps:$4 sm:$0xff]  }
 0x386   :  { %7011 = vmatpush1.bf16.msra.mxu0 %v8791_v56  ;;  %v8883_v53 = vld [vmem:[#allocation8 + $0x76c] ss:$12 sps:$4 sm:$0xff]  }
 0x387   :  { %7012 = vmatprep.subr.bf16.mxu0 %v8798_v3  ;;  %v7991_v3 = vmul.f32 -1.442695, %v9613_v45 }
 0x388   :  { %8374 = vmatpush3.bf16.msra.mxu1 %v8799_v58 }
 0x389   :  { %8375 = vmatprep.subr.bf16.mxu1 %v8800_v23  ;;  %v8880_v23 = vld [vmem:[#allocation8 + $0x818] ss:$12 sps:$4 sm:$0xff]  }
 0x38a   :  { %7013 = vmatpush1.bf16.msra.mxu0 %v8796_v59  ;;  %v8843_v59 = vld [vmem:[#allocation8 + $0x6a8] ss:$12 sps:$4 sm:$0xff]  }
 0x38b   :  { %7014 = vmatprep.subr.bf16.mxu0 %v8803_v27  ;;  %v8848_v27 = vld [vmem:[#allocation8 + $0x6c4] ss:$12 sps:$4 sm:$0xff]  }
 0x38c   :  { %8376 = vmatpush3.bf16.msra.mxu1 %v8804_v18  ;;  %v8885_v18 = vld [vmem:[#allocation8 + $0x830] ss:$12 sps:$4 sm:$0xff]  }
 0x38d   :  { %8377 = vmatprep.subr.bf16.mxu1 %v8805_v33  ;;  %v8846_v33 = vld [vmem:[#allocation8 + $0x6c0] ss:$12 sps:$4 sm:$0xff]  }
 0x38e   :  { %7015 = vmatpush1.bf16.msra.mxu0 %v8801_v5  ;;  %v8853_v5 = vld [vmem:[#allocation8 + $0x6dc] ss:$12 sps:$4 sm:$0xff]  }
 0x38f   :  { %7016 = vmatprep.subr.bf16.mxu0 %v8808_v38  ;;  %v8851_v38 = vld [vmem:[#allocation8 + $0x6d8] ss:$12 sps:$4 sm:$0xff]  }
 0x390   :  { %8378 = vmatpush3.bf16.msra.mxu1 %v8809_v49  ;;  %v9015_v49 = vpop.eup %9014 }
 0x391   :  { %8379 = vmatprep.subr.bf16.mxu1 %v8810_v52  ;;  %v8858_v52 = vld [vmem:[#allocation8 + $0x6f4] ss:$12 sps:$4 sm:$0xff]  }
 0x392   :  { %7017 = vmatpush1.bf16.msra.mxu0 %v8806_v42 }
 0x393   :  { %7018 = vmatprep.subr.bf16.mxu0 %v8813_v7 }
 0x394   :  { %8380 = vmatpush3.bf16.msra.mxu1 %v8814_v57 }
 0x395   :  { %8381 = vmatprep.subr.bf16.mxu1 %v8815_v48  ;;  %v4802_v48 = vadd.f32 1.0, %v9015_v49  ;;  %v8909_v49 = vld [vmem:[#allocation8 + $0x82c] ss:$12 sps:$4 sm:$0xff]  }
 0x396   :  { %7019 = vmatpush1.bf16.msra.mxu0 %v8811_v44  ;;  %v8856_v44 = vld [vmem:[#allocation8 + $0x6f0] ss:$12 sps:$4 sm:$0xff]  }
 0x397   :  { %7020 = vmatprep.subr.bf16.mxu0 %v8818_v13 }
 0x398   :  { %8382 = vmatpush3.bf16.msra.mxu1 %v8819_v61  ;;  %v8863_v61 = vld [vmem:[#allocation8 + $0x70c] ss:$12 sps:$4 sm:$0xff]  }
 0x399   :  { %8383 = vmatprep.subr.bf16.mxu1 %v8820_v1 }
 0x39a   :  { %7021 = vmatpush1.bf16.msra.mxu0 %v8816_v17 }
 0x39b   :  { %7033 = vmatprep.subr.bf16.mxu0 %v8823_v55  ;;  %v8861_v55 = vld [vmem:[#allocation8 + $0x708] ss:$12 sps:$4 sm:$0xff]  }
 0x39c   :  { %8384 = vmatpush3.bf16.msra.mxu1 %v8824_v21  ;;  %v8868_v21 = vld [vmem:[#allocation8 + $0x724] ss:$12 sps:$4 sm:$0xff]  }
 0x39d   :  { %7023 = vmatmul.mubr.bf16.vlgmr.msra.gmra.mrb[20].mxu0 %v9595_v6  ;;  %8391 = vmatprep.subr.bf16.mxu1 %v8849_v39  ;;  %v719_v6 = vrot.slane %v9536_v19, %v9484_v36  ;;  %v8842_v36 = vld [vmem:[#allocation8 + $0x694] ss:$12 sps:$4 sm:$0xff]  }
 0x39e   :  { %7034 = vmatpush1.bf16.msra.mxu0 %v8821_v46  ;;  %7065 = vmatprep.mubr.bf16.mxu0 %v9558_v29  ;;  %v8836_v29 = vld [vmem:[#allocation8 + $0x664] ss:$12 sps:$4 sm:$0xff]   ;;  %v8866_v39 = vld [vmem:[#allocation8 + $0x720] ss:$12 sps:$4 sm:$0xff]   ;;  %v8873_v46 = vld [vmem:[#allocation8 + $0x73c] ss:$12 sps:$4 sm:$0xff]  }
 0x39f   :  { %7316 = vmatmul.mubr.bf16.vlgmr.msra.gmra.mrb[44].mxu1 %v9556_v31  ;;  %7035 = vmatprep.subr.bf16.mxu0 %v8827_v15  ;;  %v9610_v54 = vadd.f32 %v9465_v43, %v719_v6  ;;  %v9616_v19 = vadd.f32 %v9471_v4, %v719_v6  ;;  %v8840_v43 = vld [vmem:[#allocation8 + $0x690] ss:$12 sps:$4 sm:$0xff]   ;;  %v8871_v15 = vld [vmem:[#allocation8 + $0x738] ss:$12 sps:$4 sm:$0xff]  }
 0x3a0   :  { %8392 = vmatpush3.bf16.msra.mxu1 %v8850_v14  ;;  %v8884_v4 = vld [vmem:[#allocation8 + $0x8f0] ss:$12 sps:$4 sm:$0xff]  }
 0x3a1   :  { %8393 = vmatprep.subr.bf16.mxu1 %v8854_v24  ;;  %v7980_v56 = vmul.f32 -1.442695, %v9610_v54  ;;  %v7992_v58 = vmul.f32 -1.442695, %v9616_v19  ;;  %v9041_v14 = vld [vmem:[#allocation7 + $0x10] sm:$0xff] }
 0x3a2   :  { %7036 = vmatpush1.bf16.msra.mxu0 %v8825_v10  ;;  %v763_v24 = vrot.slane %v9041_v14, %v9531_v12  ;;  %v8878_v10 = vld [vmem:[#allocation8 + $0x754] ss:$12 sps:$4 sm:$0xff]  }
 0x3a3   :  { %7037 = vmatprep.subr.bf16.mxu0 %v8830_v9  ;;  %9016 = vpow2.f32 %v7980_v56 }
 0x3a4   :  { %8394 = vmatpush3.bf16.msra.mxu1 %v8855_v8  ;;  %9018 = vpow2.f32 %v7991_v3  ;;  %v767_v8 = vrot.slane %v9041_v14, %v9534_v2  ;;  %v8894_v3 = vld [vmem:[#allocation8 + $0x7b4] ss:$12 sps:$4 sm:$0xff]   ;;  %v8927_v14 = vld [vmem:[#allocation8 + $0x8bc] ss:$12 sps:$4 sm:$0xff]  }
 0x3a5   :  { %8395 = vmatprep.subr.bf16.mxu1 %v8859_v11  ;;  %9020 = vpow2.f32 %v7992_v58  ;;  %v8897_v58 = vld [vmem:[#allocation8 + $0x7cc] ss:$12 sps:$4 sm:$0xff]  }
 0x3a6   :  { %7038 = vmatpush1.bf16.msra.mxu0 %v8828_v32  ;;  %9022 = vrcp.f32 %v4802_v48  ;;  %v8907_v48 = vld [vmem:[#allocation8 + $0x828] ss:$12 sps:$4 sm:$0xff]  }
 0x3a7   :  { %7039 = vmatprep.subr.bf16.mxu0 %v8833_v0 }
 0x3a8   :  { %8396 = vmatpush3.bf16.msra.mxu1 %v8860_v60  ;;  %v8876_v60 = vld [vmem:[#allocation8 + $0x750] ss:$12 sps:$4 sm:$0xff]  }
 0x3a9   :  { %8397 = vmatprep.subr.bf16.mxu1 %v8864_v62 }
 0x3aa   :  { %7040 = vmatpush1.bf16.msra.mxu0 %v8831_v22 }
 0x3ab   :  { %7041 = vmatprep.subr.bf16.mxu0 %v8836_v29 }
 0x3ac   :  { %8398 = vmatpush3.bf16.msra.mxu1 %v8865_v37 }
 0x3ad   :  { %8399 = vmatprep.subr.bf16.mxu1 %v8869_v47  ;;  %v9017_v42 = vpop.eup %9016 }
 0x3ae   :  { %7042 = vmatpush1.bf16.msra.mxu0 %v8834_v30  ;;  %v9019_v7 = vpop.eup %9018  ;;  %v4803_v13 = vadd.f32 1.0, %v9017_v42 }
 0x3af   :  { %7043 = vmatprep.subr.bf16.mxu0 %v8839_v63  ;;  %v9021_v57 = vpop.eup %9020  ;;  %v4814_v1 = vadd.f32 1.0, %v9019_v7 }
 0x3b0   :  { %8400 = vmatpush3.bf16.msra.mxu1 %v8870_v40  ;;  %v4815_v17 = vadd.f32 1.0, %v9021_v57  ;;  %9024 = vrcp.f32 %v4803_v13  ;;  %v9023_v9 = vpop.eup %9022  ;;  %v8910_v13 = vld [vmem:[#allocation8 + $0x840] ss:$12 sps:$4 sm:$0xff]  }
 0x3b1   :  { %8401 = vmatprep.subr.bf16.mxu1 %v8874_v28  ;;  %9026 = vrcp.f32 %v4814_v1  ;;  %v4874_v22 = vmul.f32 %v9023_v9, %v9607_v20  ;;  %v8913_v1 = vld [vmem:[#allocation8 + $0x858] ss:$12 sps:$4 sm:$0xff]   ;;  %v8930_v9 = vld [vmem:[#allocation8 + $0x8d4] ss:$12 sps:$4 sm:$0xff]  }
 0x3b2   :  { %7044 = vmatpush1.bf16.msra.mxu0 %v8837_v35  ;;  %9028 = vrcp.f32 %v4815_v17  ;;  %v8918_v17 = vld [vmem:[#allocation8 + $0x874] ss:$12 sps:$4 sm:$0xff]  }
 0x3b3   :  { %7045 = vmatprep.subr.bf16.mxu0 %v8842_v36 }
 0x3b4   :  { %8402 = vmatpush3.bf16.msra.mxu1 %v8875_v25  ;;  %v8881_v25 = vld [vmem:[#allocation8 + $0x768] ss:$12 sps:$4 sm:$0xff]  }
 0x3b5   :  { %8403 = vmatprep.subr.bf16.mxu1 %v8879_v50 }
 0x3b6   :  { %7046 = vmatpush1.bf16.msra.mxu0 %v8840_v43 }
 0x3b7   :  { %7047 = vmatprep.subr.bf16.mxu0 %v8845_v51  ;;  %v8892_v51 = vld [vmem:[#allocation8 + $0x7b0] ss:$12 sps:$4 sm:$0xff]  }
 0x3b8   :  { %8404 = vmatpush3.bf16.msra.mxu1 %v8880_v23  ;;  %v8895_v23 = vld [vmem:[#allocation8 + $0x7c8] ss:$12 sps:$4 sm:$0xff]  }
 0x3b9   :  { %8405 = vmatprep.subr.bf16.mxu1 %v8884_v4  ;;  %v8900_v4 = vld [vmem:[#allocation8 + $0x7e4] ss:$12 sps:$4 sm:$0xff]  }
 0x3ba   :  { %7048 = vmatpush1.bf16.msra.mxu0 %v8843_v59  ;;  %v9025_v11 = vpop.eup %9024  ;;  %v8898_v59 = vld [vmem:[#allocation8 + $0x7e0] ss:$12 sps:$4 sm:$0xff]  }
 0x3bb   :  { %7049 = vmatprep.subr.bf16.mxu0 %v8848_v27  ;;  %v9027_v32 = vpop.eup %9026  ;;  %v4875_v47 = vmul.f32 %v9025_v11, %v9610_v54  ;;  %v8886_v54 = vld [vmem:[#allocation8 + $0x780] ss:$12 sps:$4 sm:$0xff]   ;;  %v8903_v27 = vld [vmem:[#allocation8 + $0x7fc] ss:$12 sps:$4 sm:$0xff]  }
 0x3bc   :  { %8406 = vmatpush3.bf16.msra.mxu1 %v8885_v18  ;;  %v9029_v62 = vpop.eup %9028  ;;  %v4886_v30 = vmul.f32 %v9027_v32, %v9613_v45  ;;  %v8891_v45 = vld [vmem:[#allocation8 + $0x79c] ss:$12 sps:$4 sm:$0xff]   ;;  %v8906_v18 = vld [vmem:[#allocation8 + $0x814] ss:$12 sps:$4 sm:$0xff]  }
 0x3bd   :  { %v4887_v28 = vmul.f32 %v9029_v62, %v9616_v19  ;;  %v8889_v19 = vld [vmem:[#allocation8 + $0x798] ss:$12 sps:$4 sm:$0xff]   ;;  %v8928_v32 = vld [vmem:[#allocation8 + $0x8d0] ss:$12 sps:$4 sm:$0xff]  }
 0x3be   :  { %7050 = vmatpush1.bf16.msra.mxu0 %v8846_v33 }
 0x3bf   :  { %7051 = vmatprep.subr.bf16.mxu0 %v8853_v5  ;;  %v8904_v5 = vld [vmem:[#allocation8 + $0x810] ss:$12 sps:$4 sm:$0xff]  }
 0x3c2   :  { %7052 = vmatpush1.bf16.msra.mxu0 %v8851_v38 }
 0x3c3   :  { %7053 = vmatprep.subr.bf16.mxu0 %v8858_v52 }
 0x3c6   :  { %7054 = vmatpush1.bf16.msra.mxu0 %v8856_v44  ;;  %v8912_v44 = vld [vmem:[#allocation8 + $0x844] ss:$12 sps:$4 sm:$0xff]  }
 0x3c7   :  { %7055 = vmatprep.subr.bf16.mxu0 %v8863_v61  ;;  %v8915_v61 = vld [vmem:[#allocation8 + $0x85c] ss:$12 sps:$4 sm:$0xff]  }
 0x3ca   :  { %7056 = vmatpush1.bf16.msra.mxu0 %v8861_v55  ;;  %v8916_v55 = vld [vmem:[#allocation8 + $0x870] ss:$12 sps:$4 sm:$0xff]  }
 0x3cb   :  { %7057 = vmatprep.subr.bf16.mxu0 %v8868_v21  ;;  %v8921_v21 = vld [vmem:[#allocation8 + $0x88c] ss:$12 sps:$4 sm:$0xff]  }
 0x3ce   :  { %7058 = vmatpush1.bf16.msra.mxu0 %v8866_v39  ;;  %v8919_v39 = vld [vmem:[#allocation8 + $0x888] ss:$12 sps:$4 sm:$0xff]  }
 0x3cf   :  { %7059 = vmatprep.subr.bf16.mxu0 %v8873_v46  ;;  %v8924_v46 = vld [vmem:[#allocation8 + $0x8a4] ss:$12 sps:$4 sm:$0xff]  }
 0x3d2   :  { %7060 = vmatpush1.bf16.msra.mxu0 %v8871_v15  ;;  %v4711_v0 = vpop.f32.mrb[24].mxu1  ;;  %v8922_v15 = vld [vmem:[#allocation8 + $0x8a0] ss:$12 sps:$4 sm:$0xff]  }
 0x3d3   :  { %v8457_v29 = vadd.f32 %v4711_v0, %v763_v24  ;;  %v4713_v37 = vpop.f32.mrb[25].mxu1  ;;  %7061 = vmatprep.subr.bf16.mxu0 %v8878_v10  ;;  %v8925_v10 = vld [vmem:[#allocation8 + $0x8b8] ss:$12 sps:$4 sm:$0xff]  }
 0x3d4   :  { %v8458_v6 = vadd.f32 %v4713_v37, %v767_v8  ;;  %v4715_v12 = vpop.f32.mrb[26].mxu1 }
 0x3d5   :  { %v4898_v63 = vmul.f32 %v8457_v29, %v4874_v22  ;;  %v8459_v2 = vadd.f32 %v4715_v12, %v763_v24  ;;  %v4717_v40 = vpop.f32.mrb[27].mxu1  ;;  %v5308_v24 = vld [vmem:[#allocation10] sm:$0x7]  ;;  %v8931_v12 = vld [vmem:[#allocation8 + $0x8e8] ss:$12 sps:$4 sm:$0xff]  }
 0x3d6   :  { %v4899_v35 = vmul.f32 %v8458_v6, %v4875_v47  ;;  %v8460_v36 = vadd.f32 %v4717_v40, %v767_v8  ;;  %7062 = vmatpush1.bf16.msra.mxu0 %v8876_v60  ;;  %v5321_v8 = vrot.slane %v5308_v24, %v9481_v41  ;;  %v8933_v60 = vld [vmem:[#allocation8 + $0x8ec] ss:$12 sps:$4 sm:$0xff]  }
 0x3d7   :  { %v4910_v20 = vmul.f32 %v8459_v2, %v4886_v30  ;;  %7063 = vmatprep.subr.bf16.mxu0 %v8883_v53 }
 0x3d8   :  { %v4911_v50 = vmul.f32 %v8460_v36, %v4887_v28 }
 0x3d9   :  { %v9628_v56 = vpack.c.bf16 %v4910_v20, %v4898_v63 }
 0x3da   :  { %7064 = vmatpush1.bf16.msra.mxu0 %v8881_v25  ;;  %v4923_v43 = vpack.c.bf16 %v4911_v50, %v4899_v35 }
 0x3db   :  { %7076 = vmatprep.subr.bf16.mxu0 %v8888_v34 }
 0x3dc   :  { %7356 = vmatprep.mubr.bf16.mxu1 %v4923_v43 }
 0x3dd   :  { %7066 = vmatmul.mubr.bf16.vlgmr.msra.gmra.mrb[20].mxu0 %v9556_v31  ;;  %7357 = vmatmul.mubr.bf16.vlgmr.msra.gmra.mrb[48].mxu1 %v9628_v56  ;;  %v8901_v31 = vld [vmem:[#allocation8 + $0x7f8] ss:$12 sps:$4 sm:$0xff]  }
 0x3de   :  { %7077 = vmatpush1.bf16.msra.mxu0 %v8886_v54  ;;  %7108 = vmatprep.mubr.bf16.mxu0 %v4923_v43 }
 0x3df   :  { %7078 = vmatprep.subr.bf16.mxu0 %v8891_v45 }
 0x3e2   :  { %7079 = vmatpush1.bf16.msra.mxu0 %v8889_v19 }
 0x3e3   :  { %7080 = vmatprep.subr.bf16.mxu0 %v8894_v3 }
 0x3e6   :  { %7081 = vmatpush1.bf16.msra.mxu0 %v8892_v51 }
 0x3e7   :  { %7082 = vmatprep.subr.bf16.mxu0 %v8897_v58 }
 0x3ea   :  { %7083 = vmatpush1.bf16.msra.mxu0 %v8895_v23 }
 0x3eb   :  { %7084 = vmatprep.subr.bf16.mxu0 %v8900_v4 }
 0x3ee   :  { %7085 = vmatpush1.bf16.msra.mxu0 %v8898_v59 }
 0x3ef   :  { %7086 = vmatprep.subr.bf16.mxu0 %v8903_v27 }
 0x3f2   :  { %7087 = vmatpush1.bf16.msra.mxu0 %v8901_v31  ;;  %v8297_v33 = vpop.f32.mrb[28].mxu1 }
 0x3f3   :  { %v8298_v38 = vpop.f32.mrb[29].mxu1  ;;  %7088 = vmatprep.subr.bf16.mxu0 %v8906_v18 }
 0x3f4   :  { %v8299_v52 = vadd.f32 %v8298_v38, %v8297_v33  ;;  %v8300_v42 = vpop.f32.mrb[30].mxu1 }
 0x3f5   :  { %v8301_v7 = vpop.f32.mrb[31].mxu1 }
 0x3f6   :  { %7089 = vmatpush1.bf16.msra.mxu0 %v8904_v5  ;;  %v8302_v57 = vadd.f32 %v8301_v7, %v8300_v42  ;;  %v7154_v62 = vadd.f32 %v8299_v52, %v5321_v8 }
 0x3f7   :  { %7090 = vmatprep.subr.bf16.mxu0 %v8909_v49 }
 0x3f8   :  { %v7157_v53 = vadd.f32 %v8302_v57, %v5321_v8  ;;  %v5313_v57 = vrot.slane %v5308_v24, %v9372_v16 }
 0x3fa   :  { %7091 = vmatpush1.bf16.msra.mxu0 %v8907_v48  ;;  %v5317_v48 = vrot.slane %v5308_v24, %v9377_v26 }
 0x3fb   :  { %7092 = vmatprep.subr.bf16.mxu0 %v8912_v44 }
 0x3fe   :  { %7093 = vmatpush1.bf16.msra.mxu0 %v8910_v13 }
 0x3ff   :  { %7094 = vmatprep.subr.bf16.mxu0 %v8915_v61 }
 0x402   :  { %7095 = vmatpush1.bf16.msra.mxu0 %v8913_v1 }
 0x403   :  { %7096 = vmatprep.subr.bf16.mxu0 %v8918_v17 }
 0x406   :  { %7097 = vmatpush1.bf16.msra.mxu0 %v8916_v55 }
 0x407   :  { %7098 = vmatprep.subr.bf16.mxu0 %v8921_v21 }
 0x40a   :  { %7099 = vmatpush1.bf16.msra.mxu0 %v8919_v39 }
 0x40b   :  { %7100 = vmatprep.subr.bf16.mxu0 %v8924_v46 }
 0x40e   :  { %7101 = vmatpush1.bf16.msra.mxu0 %v8922_v15 }
 0x40f   :  { %7102 = vmatprep.subr.bf16.mxu0 %v8927_v14 }
 0x412   :  { %7103 = vmatpush1.bf16.msra.mxu0 %v8925_v10  ;;  %v8319_v11 = vpop.f32.mrb[32].mxu1 }
 0x413   :  { %v8320_v0 = vpop.f32.mrb[33].mxu1  ;;  %7104 = vmatprep.subr.bf16.mxu0 %v8930_v9 }
 0x414   :  { %v8321_v22 = vadd.f32 %v8320_v0, %v8319_v11  ;;  %v8322_v29 = vpop.f32.mrb[34].mxu1 }
 0x415   :  { %v8323_v37 = vpop.f32.mrb[35].mxu1 }
 0x416   :  { %v7195_v47 = vadd.f32 %v8321_v22, %v7154_v62  ;;  %7105 = vmatpush1.bf16.msra.mxu0 %v8928_v32  ;;  %v8324_v6 = vadd.f32 %v8323_v37, %v8322_v29 }
 0x417   :  { %7106 = vmatprep.subr.bf16.mxu0 %v8933_v60 }
 0x418   :  { %v7198_v30 = vadd.f32 %v8324_v6, %v7157_v53 }
 0x41a   :  { %7107 = vmatpush1.bf16.msra.mxu0 %v8931_v12 }
 0x41d   :  { %7109 = vmatmul.mubr.bf16.vlgmr.msra.gmra.mrb[20].mxu0 %v9628_v56 }
 0x432   :  { %v8341_v41 = vpop.f32.mrb[36].mxu1 }
 0x433   :  { %v8342_v63 = vpop.f32.mrb[37].mxu1 }
 0x434   :  { %v8343_v2 = vadd.f32 %v8342_v63, %v8341_v41  ;;  %v8344_v40 = vpop.f32.mrb[38].mxu1 }
 0x435   :  { %v8345_v28 = vpop.f32.mrb[39].mxu1 }
 0x436   :  { %v7236_v35 = vadd.f32 %v8343_v2, %v7195_v47  ;;  %v8346_v36 = vadd.f32 %v8345_v28, %v8344_v40 }
 0x438   :  { %v7239_v25 = vadd.f32 %v8346_v36, %v7198_v30 }
 0x452   :  { %v8363_v20 = vpop.f32.mrb[40].mxu1 }
 0x453   :  { %v8364_v34 = vpop.f32.mrb[41].mxu1 }
 0x454   :  { %v8365_v50 = vadd.f32 %v8364_v34, %v8363_v20  ;;  %v8366_v54 = vpop.f32.mrb[42].mxu1 }
 0x455   :  { %v8367_v43 = vpop.f32.mrb[43].mxu1 }
 0x456   :  { %v7277_v45 = vadd.f32 %v8365_v50, %v7236_v35  ;;  %v8368_v19 = vadd.f32 %v8367_v43, %v8366_v54 }
 0x458   :  { %v7280_v3 = vadd.f32 %v8368_v19, %v7239_v25 }
 0x472   :  { %v8385_v51 = vpop.f32.mrb[44].mxu1 }
 0x473   :  { %v8386_v58 = vpop.f32.mrb[45].mxu1 }
 0x474   :  { %v8387_v23 = vadd.f32 %v8386_v58, %v8385_v51  ;;  %v8388_v56 = vpop.f32.mrb[46].mxu1 }
 0x475   :  { %v8389_v4 = vpop.f32.mrb[47].mxu1 }
 0x476   :  { %v7318_v59 = vadd.f32 %v8387_v23, %v7277_v45  ;;  %v8390_v27 = vadd.f32 %v8389_v4, %v8388_v56 }
 0x478   :  { %v7321_v31 = vadd.f32 %v8390_v27, %v7280_v3 }
 0x4b0   :  { %v8407_v18 = vpop.f32.mrb[48].mxu1 }
 0x4b1   :  { %v8408_v33 = vpop.f32.mrb[49].mxu1 }
 0x4b2   :  { %v8409_v5 = vadd.f32 %v8408_v33, %v8407_v18  ;;  %v8410_v38 = vpop.f32.mrb[50].mxu1 }
 0x4b3   :  { %v8411_v49 = vpop.f32.mrb[51].mxu1 }
 0x4b4   :  { %v7359_v52 = vadd.f32 %v8409_v5, %v7318_v59  ;;  %v8412_v42 = vadd.f32 %v8411_v49, %v8410_v38 }
 0x4b6   :  { %7367 = vst [vmem:[#allocation11 + $0x10] sm:$0xff] %v7359_v52  ;;  %v7362_v7 = vadd.f32 %v8412_v42, %v7321_v31 }
 0x4b8   :  { %7370 = vst [vmem:[#allocation11 + $0x28] sm:$0xff] %v7362_v7 }
 0x4f0   :  { %v7110_v44 = vpop.f32.mrb[20].mxu0 }
 0x4f1   :  { %v8461_v13 = vadd.f32 %v7110_v44, %v5313_v57  ;;  %v7112_v61 = vpop.f32.mrb[21].mxu0 }
 0x4f2   :  { %v8462_v1 = vadd.f32 %v7112_v61, %v5317_v48  ;;  %v7114_v17 = vpop.f32.mrb[22].mxu0 }
 0x4f3   :  { %7365 = vst [vmem:[#allocation11] sm:$0xff] %v8461_v13  ;;  %v8463_v55 = vadd.f32 %v7114_v17, %v5313_v57  ;;  %v7116_v21 = vpop.f32.mrb[23].mxu0 }
 0x4f4   :  { %7366 = vst [vmem:[#allocation11 + $0x8] sm:$0xff] %v8462_v1  ;;  %v8464_v39 = vadd.f32 %v7116_v21, %v5317_v48 }
 0x4f5   :  { %7368 = vst [vmem:[#allocation11 + $0x18] sm:$0xff] %v8463_v55 }
 0x4f6   :  { %7369 = vst [vmem:[#allocation11 + $0x20] sm:$0xff] %v8464_v39 }
 0x4f7   :  { %9163 = shalt.err (!%p9160_p2)
}
 0x4f8   :  { %s9164_s6 = scalar_lea.hbm %s9653_s5, 768 }
 0x4f9   :  { %p9165_p3 = scmp.ne.s32.totalorder %s9653_s5, %s9164_s6  ;;  %p9168_p4 = scmp.lt.u32.totalorder %s9164_s6, %s9653_s5 }
 0x4fb   :  { %p9170_p5 = pnand %p9168_p4, %p9165_p3 }
 0x4fd   :  { %9173 = shalt.err (!%p9170_p5)
}
 0x4fe   :  { %s9193_s12 = smov 384   ;;  %s9194_s13 = smov 24  }
 0x4ff   :  { %7382 = dma.vmem_to_hbm [thread:$0]  %s7377_s28, 768, %s9653_s5, [#allocation4], %s9193_s12, %s9193_s12, %s9194_s13  }
 0x500   :  { %9180 = dma.done.wait [#allocation4], 768  }
 0x501   :  { %9181 = vsyncadd [#allocation4], 4294966528 }
 0x502   :  { %7386 = vsyncpa [#allocation3], 1 }
 0x503   :  { %7387 = vsyncpa [#allocation6], 1 }
 0x504   :  { %7388 = vsyncpa [#allocation9], 1 }
 0x505   :  { %7389 = vsyncpa [#allocation4], 1 }

</bundles_post_ra>
